<compile_context>
chip_gen: v7x
topology: tpu7x:2x2x1
jax: 0.10.0
libtpu: 0.0.40
codegen_flags: <defaults>
</compile_context>

<pallas_src>
import functools

import jax
import jax.numpy as jnp
from jax import lax
from jax.experimental import pallas as pl
from jax.experimental.pallas import tpu as pltpu


# ----------------------------------------------------------------------------
# Pallas kernel: 3x3 modality-conv + folded BN + ReLU + elementwise gate
# ----------------------------------------------------------------------------
def _modal_fuse_kernel(wf_ref, shift_ref, x_ref, o_ref, *, C, H, W, n_mod, kh, kw):
    """One batch element.

    wf_ref:    SMEM (C*n_mod*kh*kw,)  conv weights with BN scale folded in,
                                      flat layout [co, mod, ky, kx]
    shift_ref: SMEM (C,)              folded BN shift (conv bias folded in)
    x_ref:     VMEM (1, C, H, W)      input (modalities are channels 0..n_mod-1)
    o_ref:     VMEM (1, C, H, W)
    """
    # Tile-aligned zero halo (8 sublanes top/bottom, 128 lanes left/right) so
    # both in-kernel concatenations stay on (8, 128) vreg-tile boundaries; the
    # 1-pixel conv halo then becomes a static slice of the padded value.
    RPAD, CPAD = 8, 128
    zrows = jnp.zeros((RPAD, W), jnp.float32)
    zcols = jnp.zeros((H + 2 * RPAD, CPAD), jnp.float32)

    # One f32 accumulator per output channel; every shifted tap below is
    # computed once and FMA'd into all of them (tap reuse across Cout).
    accs = [jnp.zeros((H, W), jnp.float32) for _ in range(C)]

    for ci in range(n_mod):
        plane = x_ref[0, ci, :, :].astype(jnp.float32)             # (H, W)
        padded = jnp.concatenate([zrows, plane, zrows], axis=0)     # (H+16, W)
        padded = jnp.concatenate([zcols, padded, zcols], axis=1)    # (H+16, W+256)
        for ky in range(kh):
            for kx in range(kw):
                # tap[y, x] = plane[y + ky - 1, x + kx - 1], zero outside.
                tap = padded[RPAD - 1 + ky: RPAD - 1 + ky + H,
                             CPAD - 1 + kx: CPAD - 1 + kx + W]
                for co in range(C):
                    wv = wf_ref[((co * n_mod + ci) * kh + ky) * kw + kx]
                    accs[co] = accs[co] + wv * tap

    for co in range(C):
        y = jnp.maximum(accs[co] + shift_ref[co], 0.0)   # folded BN + ReLU
        o_ref[0, co, :, :] = y * x_ref[0, co, :, :]      # out = w * x


# ----------------------------------------------------------------------------
# Wrapper
# ----------------------------------------------------------------------------
def modal_fuse_forward(x, w2d, scale, shift):
    """x: (N, C, H, W) f32 with channels 0..2 = (ct, suv, ki) modalities."""
    n, c, h, w = x.shape
    cout, n_mod, kh, kw = w2d.shape
    assert c >= n_mod, "need at least the modality channels"
    assert cout == c, "out = w * x here requires Cout == C (Cout==1 broadcast unsupported)"

    # Fold the eval-mode BatchNorm scale into the conv weights (exact algebra);
    # only the additive shift is applied in-kernel.
    wf = (w2d * scale[:, None, None, None]).reshape(-1).astype(jnp.float32)
    shift = shift.astype(jnp.float32)

    kern = functools.partial(_modal_fuse_kernel, C=c, H=h, W=w,
                             n_mod=n_mod, kh=kh, kw=kw)
    flops = 2 * n * cout * h * w * (n_mod * kh * kw) + 3 * n * c * h * w
    bytes_accessed = 4 * 2 * int(x.size)          # read x once + write out once

    return pl.pallas_call(
        kern,
        out_shape=jax.ShapeDtypeStruct((n, c, h, w), jnp.float32),
        grid=(n,),
        in_specs=[
            pl.BlockSpec(memory_space=pltpu.MemorySpace.SMEM),    # folded conv weights
            pl.BlockSpec(memory_space=pltpu.MemorySpace.SMEM),    # folded BN shift
            pl.BlockSpec((1, c, h, w), lambda i: (i, 0, 0, 0)),   # x, single HBM operand
        ],
        out_specs=pl.BlockSpec((1, c, h, w), lambda i: (i, 0, 0, 0)),
        compiler_params=pltpu.CompilerParams(
            dimension_semantics=("parallel",)),   # N >= 2 keeps both v7x TCs busy
        cost_estimate=pl.CostEstimate(flops=int(flops), transcendentals=0,
                                      bytes_accessed=int(bytes_accessed)),
    )(wf, shift, x)


# ----------------------------------------------------------------------------
# Pure-JAX reference (uses the UNfolded params, cross-checking the BN fold)
# ----------------------------------------------------------------------------
def modal_fuse_reference(x, w2d, scale, shift):
    xm = x[:, :w2d.shape[1]]
    conv = lax.conv_general_dilated(
        xm, w2d, window_strides=(1, 1), padding=((1, 1), (1, 1)),
        dimension_numbers=("NCHW", "OIHW", "NCHW"))
    y = conv * scale[None, :, None, None] + shift[None, :, None, None]
    y = jnp.maximum(y, 0.0)
    return y * x


def make_params(key, out_channels=3, m=3, eps=1e-5):
    kconv, kb, kg, kbe, kmean, kvar = jax.random.split(key, 6)
    # Conv3d weight is (Cout, Cin=1, 3, 3, m); remap to the equivalent 2-D conv
    # layout  w2d[co, modality, ky, kx] = w3d[co, 0, ky, kx, modality].
    w3d = 0.1 * jax.random.normal(kconv, (out_channels, 1, 3, 3, m), jnp.float32)
    w2d = jnp.transpose(w3d[:, 0], (0, 3, 1, 2))             # (Cout, m, 3, 3)
    bias = 0.05 * jax.random.normal(kb, (out_channels,), jnp.float32)
    gamma = 1.0 + 0.1 * jax.random.normal(kg, (out_channels,), jnp.float32)
    beta = 0.1 * jax.random.normal(kbe, (out_channels,), jnp.float32)
    rmean = 0.05 * jax.random.normal(kmean, (out_channels,), jnp.float32)
    rvar = jax.random.uniform(kvar, (out_channels,), jnp.float32, 0.5, 1.5)
    # Eval-mode BN fold (conv bias folded into the shift).
    scale = gamma / jnp.sqrt(rvar + eps)
    shift = (bias - rmean) * scale + beta
    return w2d, scale, shift


if __name__ == "__main__":
    key = jax.random.PRNGKey(0)
    kx, kp = jax.random.split(key)

    # Small demo: batch=2, the 3 modality channels (ct, suv, ki), spatial
    # 16 x 128 (lane-dense width so stores are full-tile vst).
    N, C, H, W = 2, 3, 16, 128
    x = jax.random.normal(kx, (N, C, H, W), jnp.float32)
    w2d, scale, shift = make_params(kp, out_channels=C, m=3)

    out = jax.block_until_ready(modal_fuse_forward(x, w2d, scale, shift))

    assert out.shape == (N, C, H, W), out.shape
    assert out.dtype == jnp.float32
    assert bool(jnp.all(jnp.isfinite(out)))

    ref = modal_fuse_reference(x, w2d, scale, shift)
    err = float(jnp.max(jnp.abs(out - ref)))
    assert err < 1e-4, f"max |pallas - reference| = {err}"
    print("KERNEL_OK")
</pallas_src>

<mosaic_0001>
module attributes {stable_mosaic.version = 11 : i64} {
  func.func @_modal_fuse_kernel(%arg0: i32, %arg1: memref<81xf32, #tpu.memory_space<smem>>, %arg2: memref<3xf32, #tpu.memory_space<smem>>, %arg3: memref<1x3x16x128xf32, #tpu.memory_space<vmem>>, %arg4: memref<1x3x16x128xf32, #tpu.memory_space<vmem>>) attributes {dimension_semantics = [#tpu.dimension_semantics<parallel>], iteration_bounds = array<i64: 2>, scalar_prefetch = 0 : i64, scratch_operands = 0 : i64, tpu.core_type = #tpu.core_type<tc>, window_params = [{transform_indices = @transform_0, window_bounds = array<i64: 81>}, {transform_indices = @transform_1, window_bounds = array<i64: 3>}, {transform_indices = @transform_2, window_bounds = array<i64: 1, 3, 16, 128>}, {transform_indices = @transform_3, window_bounds = array<i64: 1, 3, 16, 128>}]} {
    %cst = arith.constant 0.000000e+00 : f32
    %0 = vector.broadcast %cst : f32 to vector<8x128xf32>
    %cst_0 = arith.constant 0.000000e+00 : f32
    %1 = vector.broadcast %cst_0 : f32 to vector<32x128xf32>
    %cst_1 = arith.constant 0.000000e+00 : f32
    %2 = vector.broadcast %cst_1 : f32 to vector<16x128xf32>
    %cst_2 = arith.constant 0.000000e+00 : f32
    %3 = vector.broadcast %cst_2 : f32 to vector<16x128xf32>
    %cst_3 = arith.constant 0.000000e+00 : f32
    %4 = vector.broadcast %cst_3 : f32 to vector<16x128xf32>
    %c0 = arith.constant 0 : index
    %c0_4 = arith.constant 0 : index
    %c0_5 = arith.constant 0 : index
    %c0_6 = arith.constant 0 : index
    %5 = vector.load %arg3[%c0, %c0_4, %c0_5, %c0_6] : memref<1x3x16x128xf32, #tpu.memory_space<vmem>>, vector<1x1x16x128xf32>
    %6 = vector.shape_cast %5 : vector<1x1x16x128xf32> to vector<16x128xf32>
    %7 = tpu.concatenate %0, %6, %0 in 0 : vector<8x128xf32>, vector<16x128xf32>, vector<8x128xf32> -> vector<32x128xf32>
    %8 = tpu.concatenate %1, %7, %1 in 1 : vector<32x128xf32>, vector<32x128xf32>, vector<32x128xf32> -> vector<32x384xf32>
    %9 = vector.extract_strided_slice %8 {offsets = [7, 127], sizes = [16, 128], strides = [1, 1]} : vector<32x384xf32> to vector<16x128xf32>
    %c0_7 = arith.constant 0 : index
    %10 = memref.load %arg1[%c0_7] : memref<81xf32, #tpu.memory_space<smem>>
    %11 = vector.broadcast %10 : f32 to vector<16x128xf32>
    %12 = arith.mulf %11, %9 : vector<16x128xf32>
    %13 = arith.addf %2, %12 : vector<16x128xf32>
    %c27 = arith.constant 27 : index
    %14 = memref.load %arg1[%c27] : memref<81xf32, #tpu.memory_space<smem>>
    %15 = vector.broadcast %14 : f32 to vector<16x128xf32>
    %16 = arith.mulf %15, %9 : vector<16x128xf32>
    %17 = arith.addf %3, %16 : vector<16x128xf32>
    %c54 = arith.constant 54 : index
    %18 = memref.load %arg1[%c54] : memref<81xf32, #tpu.memory_space<smem>>
    %19 = vector.broadcast %18 : f32 to vector<16x128xf32>
    %20 = arith.mulf %19, %9 : vector<16x128xf32>
    %21 = arith.addf %4, %20 : vector<16x128xf32>
    %22 = vector.extract_strided_slice %8 {offsets = [7, 128], sizes = [16, 128], strides = [1, 1]} : vector<32x384xf32> to vector<16x128xf32>
    %c1 = arith.constant 1 : index
    %23 = memref.load %arg1[%c1] : memref<81xf32, #tpu.memory_space<smem>>
    %24 = vector.broadcast %23 : f32 to vector<16x128xf32>
    %25 = arith.mulf %24, %22 : vector<16x128xf32>
    %26 = arith.addf %13, %25 : vector<16x128xf32>
    %c28 = arith.constant 28 : index
    %27 = memref.load %arg1[%c28] : memref<81xf32, #tpu.memory_space<smem>>
    %28 = vector.broadcast %27 : f32 to vector<16x128xf32>
    %29 = arith.mulf %28, %22 : vector<16x128xf32>
    %30 = arith.addf %17, %29 : vector<16x128xf32>
    %c55 = arith.constant 55 : index
    %31 = memref.load %arg1[%c55] : memref<81xf32, #tpu.memory_space<smem>>
    %32 = vector.broadcast %31 : f32 to vector<16x128xf32>
    %33 = arith.mulf %32, %22 : vector<16x128xf32>
    %34 = arith.addf %21, %33 : vector<16x128xf32>
    %35 = vector.extract_strided_slice %8 {offsets = [7, 129], sizes = [16, 128], strides = [1, 1]} : vector<32x384xf32> to vector<16x128xf32>
    %c2 = arith.constant 2 : index
    %36 = memref.load %arg1[%c2] : memref<81xf32, #tpu.memory_space<smem>>
    %37 = vector.broadcast %36 : f32 to vector<16x128xf32>
    %38 = arith.mulf %37, %35 : vector<16x128xf32>
    %39 = arith.addf %26, %38 : vector<16x128xf32>
    %c29 = arith.constant 29 : index
    %40 = memref.load %arg1[%c29] : memref<81xf32, #tpu.memory_space<smem>>
    %41 = vector.broadcast %40 : f32 to vector<16x128xf32>
    %42 = arith.mulf %41, %35 : vector<16x128xf32>
    %43 = arith.addf %30, %42 : vector<16x128xf32>
    %c56 = arith.constant 56 : index
    %44 = memref.load %arg1[%c56] : memref<81xf32, #tpu.memory_space<smem>>
    %45 = vector.broadcast %44 : f32 to vector<16x128xf32>
    %46 = arith.mulf %45, %35 : vector<16x128xf32>
    %47 = arith.addf %34, %46 : vector<16x128xf32>
    %48 = vector.extract_strided_slice %8 {offsets = [8, 127], sizes = [16, 128], strides = [1, 1]} : vector<32x384xf32> to vector<16x128xf32>
    %c3 = arith.constant 3 : index
    %49 = memref.load %arg1[%c3] : memref<81xf32, #tpu.memory_space<smem>>
    %50 = vector.broadcast %49 : f32 to vector<16x128xf32>
    %51 = arith.mulf %50, %48 : vector<16x128xf32>
    %52 = arith.addf %39, %51 : vector<16x128xf32>
    %c30 = arith.constant 30 : index
    %53 = memref.load %arg1[%c30] : memref<81xf32, #tpu.memory_space<smem>>
    %54 = vector.broadcast %53 : f32 to vector<16x128xf32>
    %55 = arith.mulf %54, %48 : vector<16x128xf32>
    %56 = arith.addf %43, %55 : vector<16x128xf32>
    %c57 = arith.constant 57 : index
    %57 = memref.load %arg1[%c57] : memref<81xf32, #tpu.memory_space<smem>>
    %58 = vector.broadcast %57 : f32 to vector<16x128xf32>
    %59 = arith.mulf %58, %48 : vector<16x128xf32>
    %60 = arith.addf %47, %59 : vector<16x128xf32>
    %61 = vector.extract_strided_slice %8 {offsets = [8, 128], sizes = [16, 128], strides = [1, 1]} : vector<32x384xf32> to vector<16x128xf32>
    %c4 = arith.constant 4 : index
    %62 = memref.load %arg1[%c4] : memref<81xf32, #tpu.memory_space<smem>>
    %63 = vector.broadcast %62 : f32 to vector<16x128xf32>
    %64 = arith.mulf %63, %61 : vector<16x128xf32>
    %65 = arith.addf %52, %64 : vector<16x128xf32>
    %c31 = arith.constant 31 : index
    %66 = memref.load %arg1[%c31] : memref<81xf32, #tpu.memory_space<smem>>
    %67 = vector.broadcast %66 : f32 to vector<16x128xf32>
    %68 = arith.mulf %67, %61 : vector<16x128xf32>
    %69 = arith.addf %56, %68 : vector<16x128xf32>
    %c58 = arith.constant 58 : index
    %70 = memref.load %arg1[%c58] : memref<81xf32, #tpu.memory_space<smem>>
    %71 = vector.broadcast %70 : f32 to vector<16x128xf32>
    %72 = arith.mulf %71, %61 : vector<16x128xf32>
    %73 = arith.addf %60, %72 : vector<16x128xf32>
    %74 = vector.extract_strided_slice %8 {offsets = [8, 129], sizes = [16, 128], strides = [1, 1]} : vector<32x384xf32> to vector<16x128xf32>
    %c5 = arith.constant 5 : index
    %75 = memref.load %arg1[%c5] : memref<81xf32, #tpu.memory_space<smem>>
    %76 = vector.broadcast %75 : f32 to vector<16x128xf32>
    %77 = arith.mulf %76, %74 : vector<16x128xf32>
    %78 = arith.addf %65, %77 : vector<16x128xf32>
    %c32 = arith.constant 32 : index
    %79 = memref.load %arg1[%c32] : memref<81xf32, #tpu.memory_space<smem>>
    %80 = vector.broadcast %79 : f32 to vector<16x128xf32>
    %81 = arith.mulf %80, %74 : vector<16x128xf32>
    %82 = arith.addf %69, %81 : vector<16x128xf32>
    %c59 = arith.constant 59 : index
    %83 = memref.load %arg1[%c59] : memref<81xf32, #tpu.memory_space<smem>>
    %84 = vector.broadcast %83 : f32 to vector<16x128xf32>
    %85 = arith.mulf %84, %74 : vector<16x128xf32>
    %86 = arith.addf %73, %85 : vector<16x128xf32>
    %87 = vector.extract_strided_slice %8 {offsets = [9, 127], sizes = [16, 128], strides = [1, 1]} : vector<32x384xf32> to vector<16x128xf32>
    %c6 = arith.constant 6 : index
    %88 = memref.load %arg1[%c6] : memref<81xf32, #tpu.memory_space<smem>>
    %89 = vector.broadcast %88 : f32 to vector<16x128xf32>
    %90 = arith.mulf %89, %87 : vector<16x128xf32>
    %91 = arith.addf %78, %90 : vector<16x128xf32>
    %c33 = arith.constant 33 : index
    %92 = memref.load %arg1[%c33] : memref<81xf32, #tpu.memory_space<smem>>
    %93 = vector.broadcast %92 : f32 to vector<16x128xf32>
    %94 = arith.mulf %93, %87 : vector<16x128xf32>
    %95 = arith.addf %82, %94 : vector<16x128xf32>
    %c60 = arith.constant 60 : index
    %96 = memref.load %arg1[%c60] : memref<81xf32, #tpu.memory_space<smem>>
    %97 = vector.broadcast %96 : f32 to vector<16x128xf32>
    %98 = arith.mulf %97, %87 : vector<16x128xf32>
    %99 = arith.addf %86, %98 : vector<16x128xf32>
    %100 = vector.extract_strided_slice %8 {offsets = [9, 128], sizes = [16, 128], strides = [1, 1]} : vector<32x384xf32> to vector<16x128xf32>
    %c7 = arith.constant 7 : index
    %101 = memref.load %arg1[%c7] : memref<81xf32, #tpu.memory_space<smem>>
    %102 = vector.broadcast %101 : f32 to vector<16x128xf32>
    %103 = arith.mulf %102, %100 : vector<16x128xf32>
    %104 = arith.addf %91, %103 : vector<16x128xf32>
    %c34 = arith.constant 34 : index
    %105 = memref.load %arg1[%c34] : memref<81xf32, #tpu.memory_space<smem>>
    %106 = vector.broadcast %105 : f32 to vector<16x128xf32>
    %107 = arith.mulf %106, %100 : vector<16x128xf32>
    %108 = arith.addf %95, %107 : vector<16x128xf32>
    %c61 = arith.constant 61 : index
    %109 = memref.load %arg1[%c61] : memref<81xf32, #tpu.memory_space<smem>>
    %110 = vector.broadcast %109 : f32 to vector<16x128xf32>
    %111 = arith.mulf %110, %100 : vector<16x128xf32>
    %112 = arith.addf %99, %111 : vector<16x128xf32>
    %113 = vector.extract_strided_slice %8 {offsets = [9, 129], sizes = [16, 128], strides = [1, 1]} : vector<32x384xf32> to vector<16x128xf32>
    %c8 = arith.constant 8 : index
    %114 = memref.load %arg1[%c8] : memref<81xf32, #tpu.memory_space<smem>>
    %115 = vector.broadcast %114 : f32 to vector<16x128xf32>
    %116 = arith.mulf %115, %113 : vector<16x128xf32>
    %117 = arith.addf %104, %116 : vector<16x128xf32>
    %c35 = arith.constant 35 : index
    %118 = memref.load %arg1[%c35] : memref<81xf32, #tpu.memory_space<smem>>
    %119 = vector.broadcast %118 : f32 to vector<16x128xf32>
    %120 = arith.mulf %119, %113 : vector<16x128xf32>
    %121 = arith.addf %108, %120 : vector<16x128xf32>
    %c62 = arith.constant 62 : index
    %122 = memref.load %arg1[%c62] : memref<81xf32, #tpu.memory_space<smem>>
    %123 = vector.broadcast %122 : f32 to vector<16x128xf32>
    %124 = arith.mulf %123, %113 : vector<16x128xf32>
    %125 = arith.addf %112, %124 : vector<16x128xf32>
    %c0_8 = arith.constant 0 : index
    %c1_9 = arith.constant 1 : index
    %c0_10 = arith.constant 0 : index
    %c0_11 = arith.constant 0 : index
    %126 = vector.load %arg3[%c0_8, %c1_9, %c0_10, %c0_11] : memref<1x3x16x128xf32, #tpu.memory_space<vmem>>, vector<1x1x16x128xf32>
    %127 = vector.shape_cast %126 : vector<1x1x16x128xf32> to vector<16x128xf32>
    %128 = tpu.concatenate %0, %127, %0 in 0 : vector<8x128xf32>, vector<16x128xf32>, vector<8x128xf32> -> vector<32x128xf32>
    %129 = tpu.concatenate %1, %128, %1 in 1 : vector<32x128xf32>, vector<32x128xf32>, vector<32x128xf32> -> vector<32x384xf32>
    %130 = vector.extract_strided_slice %129 {offsets = [7, 127], sizes = [16, 128], strides = [1, 1]} : vector<32x384xf32> to vector<16x128xf32>
    %c9 = arith.constant 9 : index
    %131 = memref.load %arg1[%c9] : memref<81xf32, #tpu.memory_space<smem>>
    %132 = vector.broadcast %131 : f32 to vector<16x128xf32>
    %133 = arith.mulf %132, %130 : vector<16x128xf32>
    %134 = arith.addf %117, %133 : vector<16x128xf32>
    %c36 = arith.constant 36 : index
    %135 = memref.load %arg1[%c36] : memref<81xf32, #tpu.memory_space<smem>>
    %136 = vector.broadcast %135 : f32 to vector<16x128xf32>
    %137 = arith.mulf %136, %130 : vector<16x128xf32>
    %138 = arith.addf %121, %137 : vector<16x128xf32>
    %c63 = arith.constant 63 : index
    %139 = memref.load %arg1[%c63] : memref<81xf32, #tpu.memory_space<smem>>
    %140 = vector.broadcast %139 : f32 to vector<16x128xf32>
    %141 = arith.mulf %140, %130 : vector<16x128xf32>
    %142 = arith.addf %125, %141 : vector<16x128xf32>
    %143 = vector.extract_strided_slice %129 {offsets = [7, 128], sizes = [16, 128], strides = [1, 1]} : vector<32x384xf32> to vector<16x128xf32>
    %c10 = arith.constant 10 : index
    %144 = memref.load %arg1[%c10] : memref<81xf32, #tpu.memory_space<smem>>
    %145 = vector.broadcast %144 : f32 to vector<16x128xf32>
    %146 = arith.mulf %145, %143 : vector<16x128xf32>
    %147 = arith.addf %134, %146 : vector<16x128xf32>
    %c37 = arith.constant 37 : index
    %148 = memref.load %arg1[%c37] : memref<81xf32, #tpu.memory_space<smem>>
    %149 = vector.broadcast %148 : f32 to vector<16x128xf32>
    %150 = arith.mulf %149, %143 : vector<16x128xf32>
    %151 = arith.addf %138, %150 : vector<16x128xf32>
    %c64 = arith.constant 64 : index
    %152 = memref.load %arg1[%c64] : memref<81xf32, #tpu.memory_space<smem>>
    %153 = vector.broadcast %152 : f32 to vector<16x128xf32>
    %154 = arith.mulf %153, %143 : vector<16x128xf32>
    %155 = arith.addf %142, %154 : vector<16x128xf32>
    %156 = vector.extract_strided_slice %129 {offsets = [7, 129], sizes = [16, 128], strides = [1, 1]} : vector<32x384xf32> to vector<16x128xf32>
    %c11 = arith.constant 11 : index
    %157 = memref.load %arg1[%c11] : memref<81xf32, #tpu.memory_space<smem>>
    %158 = vector.broadcast %157 : f32 to vector<16x128xf32>
    %159 = arith.mulf %158, %156 : vector<16x128xf32>
    %160 = arith.addf %147, %159 : vector<16x128xf32>
    %c38 = arith.constant 38 : index
    %161 = memref.load %arg1[%c38] : memref<81xf32, #tpu.memory_space<smem>>
    %162 = vector.broadcast %161 : f32 to vector<16x128xf32>
    %163 = arith.mulf %162, %156 : vector<16x128xf32>
    %164 = arith.addf %151, %163 : vector<16x128xf32>
    %c65 = arith.constant 65 : index
    %165 = memref.load %arg1[%c65] : memref<81xf32, #tpu.memory_space<smem>>
    %166 = vector.broadcast %165 : f32 to vector<16x128xf32>
    %167 = arith.mulf %166, %156 : vector<16x128xf32>
    %168 = arith.addf %155, %167 : vector<16x128xf32>
    %169 = vector.extract_strided_slice %129 {offsets = [8, 127], sizes = [16, 128], strides = [1, 1]} : vector<32x384xf32> to vector<16x128xf32>
    %c12 = arith.constant 12 : index
    %170 = memref.load %arg1[%c12] : memref<81xf32, #tpu.memory_space<smem>>
    %171 = vector.broadcast %170 : f32 to vector<16x128xf32>
    %172 = arith.mulf %171, %169 : vector<16x128xf32>
    %173 = arith.addf %160, %172 : vector<16x128xf32>
    %c39 = arith.constant 39 : index
    %174 = memref.load %arg1[%c39] : memref<81xf32, #tpu.memory_space<smem>>
    %175 = vector.broadcast %174 : f32 to vector<16x128xf32>
    %176 = arith.mulf %175, %169 : vector<16x128xf32>
    %177 = arith.addf %164, %176 : vector<16x128xf32>
    %c66 = arith.constant 66 : index
    %178 = memref.load %arg1[%c66] : memref<81xf32, #tpu.memory_space<smem>>
    %179 = vector.broadcast %178 : f32 to vector<16x128xf32>
    %180 = arith.mulf %179, %169 : vector<16x128xf32>
    %181 = arith.addf %168, %180 : vector<16x128xf32>
    %182 = vector.extract_strided_slice %129 {offsets = [8, 128], sizes = [16, 128], strides = [1, 1]} : vector<32x384xf32> to vector<16x128xf32>
    %c13 = arith.constant 13 : index
    %183 = memref.load %arg1[%c13] : memref<81xf32, #tpu.memory_space<smem>>
    %184 = vector.broadcast %183 : f32 to vector<16x128xf32>
    %185 = arith.mulf %184, %182 : vector<16x128xf32>
    %186 = arith.addf %173, %185 : vector<16x128xf32>
    %c40 = arith.constant 40 : index
    %187 = memref.load %arg1[%c40] : memref<81xf32, #tpu.memory_space<smem>>
    %188 = vector.broadcast %187 : f32 to vector<16x128xf32>
    %189 = arith.mulf %188, %182 : vector<16x128xf32>
    %190 = arith.addf %177, %189 : vector<16x128xf32>
    %c67 = arith.constant 67 : index
    %191 = memref.load %arg1[%c67] : memref<81xf32, #tpu.memory_space<smem>>
    %192 = vector.broadcast %191 : f32 to vector<16x128xf32>
    %193 = arith.mulf %192, %182 : vector<16x128xf32>
    %194 = arith.addf %181, %193 : vector<16x128xf32>
    %195 = vector.extract_strided_slice %129 {offsets = [8, 129], sizes = [16, 128], strides = [1, 1]} : vector<32x384xf32> to vector<16x128xf32>
    %c14 = arith.constant 14 : index
    %196 = memref.load %arg1[%c14] : memref<81xf32, #tpu.memory_space<smem>>
    %197 = vector.broadcast %196 : f32 to vector<16x128xf32>
    %198 = arith.mulf %197, %195 : vector<16x128xf32>
    %199 = arith.addf %186, %198 : vector<16x128xf32>
    %c41 = arith.constant 41 : index
    %200 = memref.load %arg1[%c41] : memref<81xf32, #tpu.memory_space<smem>>
    %201 = vector.broadcast %200 : f32 to vector<16x128xf32>
    %202 = arith.mulf %201, %195 : vector<16x128xf32>
    %203 = arith.addf %190, %202 : vector<16x128xf32>
    %c68 = arith.constant 68 : index
    %204 = memref.load %arg1[%c68] : memref<81xf32, #tpu.memory_space<smem>>
    %205 = vector.broadcast %204 : f32 to vector<16x128xf32>
    %206 = arith.mulf %205, %195 : vector<16x128xf32>
    %207 = arith.addf %194, %206 : vector<16x128xf32>
    %208 = vector.extract_strided_slice %129 {offsets = [9, 127], sizes = [16, 128], strides = [1, 1]} : vector<32x384xf32> to vector<16x128xf32>
    %c15 = arith.constant 15 : index
    %209 = memref.load %arg1[%c15] : memref<81xf32, #tpu.memory_space<smem>>
    %210 = vector.broadcast %209 : f32 to vector<16x128xf32>
    %211 = arith.mulf %210, %208 : vector<16x128xf32>
    %212 = arith.addf %199, %211 : vector<16x128xf32>
    %c42 = arith.constant 42 : index
    %213 = memref.load %arg1[%c42] : memref<81xf32, #tpu.memory_space<smem>>
    %214 = vector.broadcast %213 : f32 to vector<16x128xf32>
    %215 = arith.mulf %214, %208 : vector<16x128xf32>
    %216 = arith.addf %203, %215 : vector<16x128xf32>
    %c69 = arith.constant 69 : index
    %217 = memref.load %arg1[%c69] : memref<81xf32, #tpu.memory_space<smem>>
    %218 = vector.broadcast %217 : f32 to vector<16x128xf32>
    %219 = arith.mulf %218, %208 : vector<16x128xf32>
    %220 = arith.addf %207, %219 : vector<16x128xf32>
    %221 = vector.extract_strided_slice %129 {offsets = [9, 128], sizes = [16, 128], strides = [1, 1]} : vector<32x384xf32> to vector<16x128xf32>
    %c16 = arith.constant 16 : index
    %222 = memref.load %arg1[%c16] : memref<81xf32, #tpu.memory_space<smem>>
    %223 = vector.broadcast %222 : f32 to vector<16x128xf32>
    %224 = arith.mulf %223, %221 : vector<16x128xf32>
    %225 = arith.addf %212, %224 : vector<16x128xf32>
    %c43 = arith.constant 43 : index
    %226 = memref.load %arg1[%c43] : memref<81xf32, #tpu.memory_space<smem>>
    %227 = vector.broadcast %226 : f32 to vector<16x128xf32>
    %228 = arith.mulf %227, %221 : vector<16x128xf32>
    %229 = arith.addf %216, %228 : vector<16x128xf32>
    %c70 = arith.constant 70 : index
    %230 = memref.load %arg1[%c70] : memref<81xf32, #tpu.memory_space<smem>>
    %231 = vector.broadcast %230 : f32 to vector<16x128xf32>
    %232 = arith.mulf %231, %221 : vector<16x128xf32>
    %233 = arith.addf %220, %232 : vector<16x128xf32>
    %234 = vector.extract_strided_slice %129 {offsets = [9, 129], sizes = [16, 128], strides = [1, 1]} : vector<32x384xf32> to vector<16x128xf32>
    %c17 = arith.constant 17 : index
    %235 = memref.load %arg1[%c17] : memref<81xf32, #tpu.memory_space<smem>>
    %236 = vector.broadcast %235 : f32 to vector<16x128xf32>
    %237 = arith.mulf %236, %234 : vector<16x128xf32>
    %238 = arith.addf %225, %237 : vector<16x128xf32>
    %c44 = arith.constant 44 : index
    %239 = memref.load %arg1[%c44] : memref<81xf32, #tpu.memory_space<smem>>
    %240 = vector.broadcast %239 : f32 to vector<16x128xf32>
    %241 = arith.mulf %240, %234 : vector<16x128xf32>
    %242 = arith.addf %229, %241 : vector<16x128xf32>
    %c71 = arith.constant 71 : index
    %243 = memref.load %arg1[%c71] : memref<81xf32, #tpu.memory_space<smem>>
    %244 = vector.broadcast %243 : f32 to vector<16x128xf32>
    %245 = arith.mulf %244, %234 : vector<16x128xf32>
    %246 = arith.addf %233, %245 : vector<16x128xf32>
    %c0_12 = arith.constant 0 : index
    %c2_13 = arith.constant 2 : index
    %c0_14 = arith.constant 0 : index
    %c0_15 = arith.constant 0 : index
    %247 = vector.load %arg3[%c0_12, %c2_13, %c0_14, %c0_15] : memref<1x3x16x128xf32, #tpu.memory_space<vmem>>, vector<1x1x16x128xf32>
    %248 = vector.shape_cast %247 : vector<1x1x16x128xf32> to vector<16x128xf32>
    %249 = tpu.concatenate %0, %248, %0 in 0 : vector<8x128xf32>, vector<16x128xf32>, vector<8x128xf32> -> vector<32x128xf32>
    %250 = tpu.concatenate %1, %249, %1 in 1 : vector<32x128xf32>, vector<32x128xf32>, vector<32x128xf32> -> vector<32x384xf32>
    %251 = vector.extract_strided_slice %250 {offsets = [7, 127], sizes = [16, 128], strides = [1, 1]} : vector<32x384xf32> to vector<16x128xf32>
    %c18 = arith.constant 18 : index
    %252 = memref.load %arg1[%c18] : memref<81xf32, #tpu.memory_space<smem>>
    %253 = vector.broadcast %252 : f32 to vector<16x128xf32>
    %254 = arith.mulf %253, %251 : vector<16x128xf32>
    %255 = arith.addf %238, %254 : vector<16x128xf32>
    %c45 = arith.constant 45 : index
    %256 = memref.load %arg1[%c45] : memref<81xf32, #tpu.memory_space<smem>>
    %257 = vector.broadcast %256 : f32 to vector<16x128xf32>
    %258 = arith.mulf %257, %251 : vector<16x128xf32>
    %259 = arith.addf %242, %258 : vector<16x128xf32>
    %c72 = arith.constant 72 : index
    %260 = memref.load %arg1[%c72] : memref<81xf32, #tpu.memory_space<smem>>
    %261 = vector.broadcast %260 : f32 to vector<16x128xf32>
    %262 = arith.mulf %261, %251 : vector<16x128xf32>
    %263 = arith.addf %246, %262 : vector<16x128xf32>
    %264 = vector.extract_strided_slice %250 {offsets = [7, 128], sizes = [16, 128], strides = [1, 1]} : vector<32x384xf32> to vector<16x128xf32>
    %c19 = arith.constant 19 : index
    %265 = memref.load %arg1[%c19] : memref<81xf32, #tpu.memory_space<smem>>
    %266 = vector.broadcast %265 : f32 to vector<16x128xf32>
    %267 = arith.mulf %266, %264 : vector<16x128xf32>
    %268 = arith.addf %255, %267 : vector<16x128xf32>
    %c46 = arith.constant 46 : index
    %269 = memref.load %arg1[%c46] : memref<81xf32, #tpu.memory_space<smem>>
    %270 = vector.broadcast %269 : f32 to vector<16x128xf32>
    %271 = arith.mulf %270, %264 : vector<16x128xf32>
    %272 = arith.addf %259, %271 : vector<16x128xf32>
    %c73 = arith.constant 73 : index
    %273 = memref.load %arg1[%c73] : memref<81xf32, #tpu.memory_space<smem>>
    %274 = vector.broadcast %273 : f32 to vector<16x128xf32>
    %275 = arith.mulf %274, %264 : vector<16x128xf32>
    %276 = arith.addf %263, %275 : vector<16x128xf32>
    %277 = vector.extract_strided_slice %250 {offsets = [7, 129], sizes = [16, 128], strides = [1, 1]} : vector<32x384xf32> to vector<16x128xf32>
    %c20 = arith.constant 20 : index
    %278 = memref.load %arg1[%c20] : memref<81xf32, #tpu.memory_space<smem>>
    %279 = vector.broadcast %278 : f32 to vector<16x128xf32>
    %280 = arith.mulf %279, %277 : vector<16x128xf32>
    %281 = arith.addf %268, %280 : vector<16x128xf32>
    %c47 = arith.constant 47 : index
    %282 = memref.load %arg1[%c47] : memref<81xf32, #tpu.memory_space<smem>>
    %283 = vector.broadcast %282 : f32 to vector<16x128xf32>
    %284 = arith.mulf %283, %277 : vector<16x128xf32>
    %285 = arith.addf %272, %284 : vector<16x128xf32>
    %c74 = arith.constant 74 : index
    %286 = memref.load %arg1[%c74] : memref<81xf32, #tpu.memory_space<smem>>
    %287 = vector.broadcast %286 : f32 to vector<16x128xf32>
    %288 = arith.mulf %287, %277 : vector<16x128xf32>
    %289 = arith.addf %276, %288 : vector<16x128xf32>
    %290 = vector.extract_strided_slice %250 {offsets = [8, 127], sizes = [16, 128], strides = [1, 1]} : vector<32x384xf32> to vector<16x128xf32>
    %c21 = arith.constant 21 : index
    %291 = memref.load %arg1[%c21] : memref<81xf32, #tpu.memory_space<smem>>
    %292 = vector.broadcast %291 : f32 to vector<16x128xf32>
    %293 = arith.mulf %292, %290 : vector<16x128xf32>
    %294 = arith.addf %281, %293 : vector<16x128xf32>
    %c48 = arith.constant 48 : index
    %295 = memref.load %arg1[%c48] : memref<81xf32, #tpu.memory_space<smem>>
    %296 = vector.broadcast %295 : f32 to vector<16x128xf32>
    %297 = arith.mulf %296, %290 : vector<16x128xf32>
    %298 = arith.addf %285, %297 : vector<16x128xf32>
    %c75 = arith.constant 75 : index
    %299 = memref.load %arg1[%c75] : memref<81xf32, #tpu.memory_space<smem>>
    %300 = vector.broadcast %299 : f32 to vector<16x128xf32>
    %301 = arith.mulf %300, %290 : vector<16x128xf32>
    %302 = arith.addf %289, %301 : vector<16x128xf32>
    %303 = vector.extract_strided_slice %250 {offsets = [8, 128], sizes = [16, 128], strides = [1, 1]} : vector<32x384xf32> to vector<16x128xf32>
    %c22 = arith.constant 22 : index
    %304 = memref.load %arg1[%c22] : memref<81xf32, #tpu.memory_space<smem>>
    %305 = vector.broadcast %304 : f32 to vector<16x128xf32>
    %306 = arith.mulf %305, %303 : vector<16x128xf32>
    %307 = arith.addf %294, %306 : vector<16x128xf32>
    %c49 = arith.constant 49 : index
    %308 = memref.load %arg1[%c49] : memref<81xf32, #tpu.memory_space<smem>>
    %309 = vector.broadcast %308 : f32 to vector<16x128xf32>
    %310 = arith.mulf %309, %303 : vector<16x128xf32>
    %311 = arith.addf %298, %310 : vector<16x128xf32>
    %c76 = arith.constant 76 : index
    %312 = memref.load %arg1[%c76] : memref<81xf32, #tpu.memory_space<smem>>
    %313 = vector.broadcast %312 : f32 to vector<16x128xf32>
    %314 = arith.mulf %313, %303 : vector<16x128xf32>
    %315 = arith.addf %302, %314 : vector<16x128xf32>
    %316 = vector.extract_strided_slice %250 {offsets = [8, 129], sizes = [16, 128], strides = [1, 1]} : vector<32x384xf32> to vector<16x128xf32>
    %c23 = arith.constant 23 : index
    %317 = memref.load %arg1[%c23] : memref<81xf32, #tpu.memory_space<smem>>
    %318 = vector.broadcast %317 : f32 to vector<16x128xf32>
    %319 = arith.mulf %318, %316 : vector<16x128xf32>
    %320 = arith.addf %307, %319 : vector<16x128xf32>
    %c50 = arith.constant 50 : index
    %321 = memref.load %arg1[%c50] : memref<81xf32, #tpu.memory_space<smem>>
    %322 = vector.broadcast %321 : f32 to vector<16x128xf32>
    %323 = arith.mulf %322, %316 : vector<16x128xf32>
    %324 = arith.addf %311, %323 : vector<16x128xf32>
    %c77 = arith.constant 77 : index
    %325 = memref.load %arg1[%c77] : memref<81xf32, #tpu.memory_space<smem>>
    %326 = vector.broadcast %325 : f32 to vector<16x128xf32>
    %327 = arith.mulf %326, %316 : vector<16x128xf32>
    %328 = arith.addf %315, %327 : vector<16x128xf32>
    %329 = vector.extract_strided_slice %250 {offsets = [9, 127], sizes = [16, 128], strides = [1, 1]} : vector<32x384xf32> to vector<16x128xf32>
    %c24 = arith.constant 24 : index
    %330 = memref.load %arg1[%c24] : memref<81xf32, #tpu.memory_space<smem>>
    %331 = vector.broadcast %330 : f32 to vector<16x128xf32>
    %332 = arith.mulf %331, %329 : vector<16x128xf32>
    %333 = arith.addf %320, %332 : vector<16x128xf32>
    %c51 = arith.constant 51 : index
    %334 = memref.load %arg1[%c51] : memref<81xf32, #tpu.memory_space<smem>>
    %335 = vector.broadcast %334 : f32 to vector<16x128xf32>
    %336 = arith.mulf %335, %329 : vector<16x128xf32>
    %337 = arith.addf %324, %336 : vector<16x128xf32>
    %c78 = arith.constant 78 : index
    %338 = memref.load %arg1[%c78] : memref<81xf32, #tpu.memory_space<smem>>
    %339 = vector.broadcast %338 : f32 to vector<16x128xf32>
    %340 = arith.mulf %339, %329 : vector<16x128xf32>
    %341 = arith.addf %328, %340 : vector<16x128xf32>
    %342 = vector.extract_strided_slice %250 {offsets = [9, 128], sizes = [16, 128], strides = [1, 1]} : vector<32x384xf32> to vector<16x128xf32>
    %c25 = arith.constant 25 : index
    %343 = memref.load %arg1[%c25] : memref<81xf32, #tpu.memory_space<smem>>
    %344 = vector.broadcast %343 : f32 to vector<16x128xf32>
    %345 = arith.mulf %344, %342 : vector<16x128xf32>
    %346 = arith.addf %333, %345 : vector<16x128xf32>
    %c52 = arith.constant 52 : index
    %347 = memref.load %arg1[%c52] : memref<81xf32, #tpu.memory_space<smem>>
    %348 = vector.broadcast %347 : f32 to vector<16x128xf32>
    %349 = arith.mulf %348, %342 : vector<16x128xf32>
    %350 = arith.addf %337, %349 : vector<16x128xf32>
    %c79 = arith.constant 79 : index
    %351 = memref.load %arg1[%c79] : memref<81xf32, #tpu.memory_space<smem>>
    %352 = vector.broadcast %351 : f32 to vector<16x128xf32>
    %353 = arith.mulf %352, %342 : vector<16x128xf32>
    %354 = arith.addf %341, %353 : vector<16x128xf32>
    %355 = vector.extract_strided_slice %250 {offsets = [9, 129], sizes = [16, 128], strides = [1, 1]} : vector<32x384xf32> to vector<16x128xf32>
    %c26 = arith.constant 26 : index
    %356 = memref.load %arg1[%c26] : memref<81xf32, #tpu.memory_space<smem>>
    %357 = vector.broadcast %356 : f32 to vector<16x128xf32>
    %358 = arith.mulf %357, %355 : vector<16x128xf32>
    %359 = arith.addf %346, %358 : vector<16x128xf32>
    %c53 = arith.constant 53 : index
    %360 = memref.load %arg1[%c53] : memref<81xf32, #tpu.memory_space<smem>>
    %361 = vector.broadcast %360 : f32 to vector<16x128xf32>
    %362 = arith.mulf %361, %355 : vector<16x128xf32>
    %363 = arith.addf %350, %362 : vector<16x128xf32>
    %c80 = arith.constant 80 : index
    %364 = memref.load %arg1[%c80] : memref<81xf32, #tpu.memory_space<smem>>
    %365 = vector.broadcast %364 : f32 to vector<16x128xf32>
    %366 = arith.mulf %365, %355 : vector<16x128xf32>
    %367 = arith.addf %354, %366 : vector<16x128xf32>
    %c0_16 = arith.constant 0 : index
    %368 = memref.load %arg2[%c0_16] : memref<3xf32, #tpu.memory_space<smem>>
    %369 = vector.broadcast %368 : f32 to vector<16x128xf32>
    %370 = arith.addf %359, %369 : vector<16x128xf32>
    %cst_17 = arith.constant 0.000000e+00 : f32
    %371 = vector.broadcast %cst_17 : f32 to vector<16x128xf32>
    %372 = arith.maximumf %370, %371 : vector<16x128xf32>
    %c0_18 = arith.constant 0 : index
    %c0_19 = arith.constant 0 : index
    %c0_20 = arith.constant 0 : index
    %c0_21 = arith.constant 0 : index
    %373 = vector.load %arg3[%c0_18, %c0_19, %c0_20, %c0_21] : memref<1x3x16x128xf32, #tpu.memory_space<vmem>>, vector<1x1x16x128xf32>
    %374 = vector.shape_cast %373 : vector<1x1x16x128xf32> to vector<16x128xf32>
    %375 = arith.mulf %372, %374 : vector<16x128xf32>
    %c0_22 = arith.constant 0 : index
    %c0_23 = arith.constant 0 : index
    %c0_24 = arith.constant 0 : index
    %c0_25 = arith.constant 0 : index
    %376 = vector.load %arg4[%c0_22, %c0_23, %c0_24, %c0_25] : memref<1x3x16x128xf32, #tpu.memory_space<vmem>>, vector<1x1x16x128xf32>
    %377 = vector.shape_cast %376 : vector<1x1x16x128xf32> to vector<16x128xf32>
    %378 = vector.shape_cast %375 : vector<16x128xf32> to vector<1x1x16x128xf32>
    tpu.vector_store %arg4[%c0_22, %c0_23, %c0_24, %c0_25], %378 {strides = array<i32>} : memref<1x3x16x128xf32, #tpu.memory_space<vmem>>, vector<1x1x16x128xf32>,
    %c1_26 = arith.constant 1 : index
    %379 = memref.load %arg2[%c1_26] : memref<3xf32, #tpu.memory_space<smem>>
    %380 = vector.broadcast %379 : f32 to vector<16x128xf32>
    %381 = arith.addf %363, %380 : vector<16x128xf32>
    %cst_27 = arith.constant 0.000000e+00 : f32
    %382 = vector.broadcast %cst_27 : f32 to vector<16x128xf32>
    %383 = arith.maximumf %381, %382 : vector<16x128xf32>
    %c0_28 = arith.constant 0 : index
    %c1_29 = arith.constant 1 : index
    %c0_30 = arith.constant 0 : index
    %c0_31 = arith.constant 0 : index
    %384 = vector.load %arg3[%c0_28, %c1_29, %c0_30, %c0_31] : memref<1x3x16x128xf32, #tpu.memory_space<vmem>>, vector<1x1x16x128xf32>
    %385 = vector.shape_cast %384 : vector<1x1x16x128xf32> to vector<16x128xf32>
    %386 = arith.mulf %383, %385 : vector<16x128xf32>
    %c0_32 = arith.constant 0 : index
    %c1_33 = arith.constant 1 : index
    %c0_34 = arith.constant 0 : index
    %c0_35 = arith.constant 0 : index
    %387 = vector.load %arg4[%c0_32, %c1_33, %c0_34, %c0_35] : memref<1x3x16x128xf32, #tpu.memory_space<vmem>>, vector<1x1x16x128xf32>
    %388 = vector.shape_cast %387 : vector<1x1x16x128xf32> to vector<16x128xf32>
    %389 = vector.shape_cast %386 : vector<16x128xf32> to vector<1x1x16x128xf32>
    tpu.vector_store %arg4[%c0_32, %c1_33, %c0_34, %c0_35], %389 {strides = array<i32>} : memref<1x3x16x128xf32, #tpu.memory_space<vmem>>, vector<1x1x16x128xf32>,
    %c2_36 = arith.constant 2 : index
    %390 = memref.load %arg2[%c2_36] : memref<3xf32, #tpu.memory_space<smem>>
    %391 = vector.broadcast %390 : f32 to vector<16x128xf32>
    %392 = arith.addf %367, %391 : vector<16x128xf32>
    %cst_37 = arith.constant 0.000000e+00 : f32
    %393 = vector.broadcast %cst_37 : f32 to vector<16x128xf32>
    %394 = arith.maximumf %392, %393 : vector<16x128xf32>
    %c0_38 = arith.constant 0 : index
    %c2_39 = arith.constant 2 : index
    %c0_40 = arith.constant 0 : index
    %c0_41 = arith.constant 0 : index
    %395 = vector.load %arg3[%c0_38, %c2_39, %c0_40, %c0_41] : memref<1x3x16x128xf32, #tpu.memory_space<vmem>>, vector<1x1x16x128xf32>
    %396 = vector.shape_cast %395 : vector<1x1x16x128xf32> to vector<16x128xf32>
    %397 = arith.mulf %394, %396 : vector<16x128xf32>
    %c0_42 = arith.constant 0 : index
    %c2_43 = arith.constant 2 : index
    %c0_44 = arith.constant 0 : index
    %c0_45 = arith.constant 0 : index
    %398 = vector.load %arg4[%c0_42, %c2_43, %c0_44, %c0_45] : memref<1x3x16x128xf32, #tpu.memory_space<vmem>>, vector<1x1x16x128xf32>
    %399 = vector.shape_cast %398 : vector<1x1x16x128xf32> to vector<16x128xf32>
    %400 = vector.shape_cast %397 : vector<16x128xf32> to vector<1x1x16x128xf32>
    tpu.vector_store %arg4[%c0_42, %c2_43, %c0_44, %c0_45], %400 {strides = array<i32>} : memref<1x3x16x128xf32, #tpu.memory_space<vmem>>, vector<1x1x16x128xf32>,
    return
  }
  func.func @transform_0(%arg0: i32) -> i32 {
    %c0_i32 = arith.constant 0 : i32
    %c0_i32_0 = arith.constant 0 : i32
    return %c0_i32 : i32
  }
  func.func @transform_1(%arg0: i32) -> i32 {
    %c0_i32 = arith.constant 0 : i32
    %c0_i32_0 = arith.constant 0 : i32
    return %c0_i32 : i32
  }
  func.func @transform_2(%arg0: i32) -> (i32, i32, i32, i32) {
    %c0_i32 = arith.constant 0 : i32
    %c0_i32_0 = arith.constant 0 : i32
    %c0_i32_1 = arith.constant 0 : i32
    %c0_i32_2 = arith.constant 0 : i32
    return %arg0, %c0_i32, %c0_i32_0, %c0_i32_1 : i32, i32, i32, i32
  }
  func.func @transform_3(%arg0: i32) -> (i32, i32, i32, i32) {
    %c0_i32 = arith.constant 0 : i32
    %c0_i32_0 = arith.constant 0 : i32
    %c0_i32_1 = arith.constant 0 : i32
    %c0_i32_2 = arith.constant 0 : i32
    return %arg0, %c0_i32, %c0_i32_0, %c0_i32_1 : i32, i32, i32, i32
  }
}

</mosaic_0001>

<bundles_post_ra>
// kernel: tpu_custom_call.1
= control target key start
LH: loop header
LB: loop body
LE: loop exit
PB: predicated region body
PF: predicated region fallthrough
CT: control target
= control target key end

     0   :  { %8 = vsyncpa [#allocation5], 0  ;;  %s5465_s0 = inlined_call_operand.hbm [shape: f32[81], index: 0, kind: input, shape index: {}]   ;;  %s5466_s1 = inlined_call_operand.vmem [shape: f32[3], index: 1, kind: input, shape index: {}]   ;;  %s5467_s2 = inlined_call_operand.hbm [shape: f32[2,3,16,128], index: 2, kind: input, shape index: {}]   ;;  %s5468_s3 = inlined_call_operand.hbm [shape: f32[2,3,16,128], index: 3, kind: output, shape index: {}]  }
   0x1   :  { %9 = vsyncpa [#allocation6], 0 }
   0x2   :  { %10 = vsyncpa [#allocation3], 0 }
   0x3   :  { %12 = vsyncpa [#allocation3 + $0x1], 0 }
   0x4   :  { %13 = vsyncpa [#allocation4], 0 }
   0x5   :  { %15 = vsyncpa [#allocation4 + $0x1], 0  ;;  %s3020_s12 = smov 0   ;;  %s3022_s13 = smov 0  }
   0x6   :  { %s3024_s14 = smov 0   ;;  %s3026_s15 = smov 0  }
   0x7 LB: > { %s3041_s16 = sadd.s32 4294967295, %s2987_s15   ;;  %s2662_s17 = sadd.s32 4294967294, %s2987_s15   ;;  %s2987_s15 = sphi %s3026_s15, %s5970_s15   ;;  %s2983_s14 = sphi %s3024_s14, %s5969_s14   ;;  %s2979_s13 = sphi %s3022_s13, %s5968_s13   ;;  %s2975_s12 = sphi %s3020_s12, %s5967_s12  }
   0x8   : > { %s3045_s18 = sadd.s32 1, %s2987_s15   ;;  %s70_s19 = sadd.s32 1, %s2983_s14 }
   0x9   : > { %s67_s20 = ssub.s32 %s2987_s15, %s3045_s18  ;;  %p77_p0 = scmp.ne.s32.totalorder %s2983_s14, %s2979_s13 }
   0xa   : > { %p68_p1 = scmp.eq.s32.totalorder %s67_s20, 0  ;;  %p78_p2 = scmp.eq.s32.totalorder %s2987_s15, 0 }
   0xb   : > { %p83_p3 = scmp.ne.s32.totalorder %s2979_s13, %s2975_s12  ;;  %p5469_p4 = scmp.eq.s32.totalorder %s3041_s16, 0 }
   0xc   : > { %s3057_s21 = scalar_select %p68_p1, %s2983_s14, %s70_s19  }
   0xd   : > { %p3059_p5 = por %p78_p2, %p77_p0  ;;  %p3065_p6 = por %p5469_p4, %p83_p3 }
   0xe   : > { %p107_p7 = scmp.eq.s32.totalorder %s3041_s16, 1  ;;  %p113_p8 = scmp.eq.s32.totalorder %s2662_s17, 1 }
   0xf   : > { %s5596_s23 = scalar_select %p3065_p6, 1, 0 }
  0x10   : > { %p2663_p9 = scmp.ge.s32.totalorder %s2987_s15, 1  ;;  %p120_p10 = scmp.lt.s32.totalorder %s2987_s15, 3 }
  0x11   : > { %p3072_p11 = por %p107_p7, %p77_p0  ;;  %p3076_p12 = por %p113_p8, %p83_p3 }
  0x12   : > { %p3080_p13 = pnand %p2663_p9, %p120_p10  ;;  %p2803_p4 = scmp.lt.s32.totalorder %s2987_s15, 2 }
  0x13   : > { %s5597_s24 = scalar_select %p3072_p11, 1, 0 }
  0x14   : > { %s5598_s25 = scalar_select %p3076_p12, 1, 0 }
  0x15   : > { %p2786_p2 = pneg %p3080_p13  ;;  %s142_s29 = sshll.u32 %s5466_s1, 4  ;;  %s143_s29 = int_to_ptr.vmem [resolvable:$true] %s142_s29 }
  0x16   : > { %p5600_p0 = scmp.eq.s32.totalorder %s3041_s16, 0  ;;  %p3099_p3 = pnand %p2803_p4, %p3059_p5 }
  0x17   : > { %s153_s5 = sand.u32 1, %s2983_s14   ;;  %s2855_s8 = scalar_lea.hbm %s5465_s0, 16 }
  0x18   : > { %p3093_p7 = pnand %p2786_p2, %p5600_p0  ;;  %p2856_p8 = scmp.ne.s32.totalorder %s5465_s0, %s2855_s8 }
  0x19   : > { %p2862_p4 = scmp.lt.u32.totalorder %s2855_s8, %s5465_s0 }
  0x1a   : > { %p2857_p9 = pneg %p3093_p7 }
  0x1c   : > { %p2858_p10 = pnand %p2857_p9, %p2856_p8 }
  0x1e   : > { %p2859_p2 = pneg %p2858_p10 }
  0x20   : > { %p2864_p5 = pnand %p2862_p4, %p2859_p2 }
  0x22   : > { %2867 = shalt.err (!%p2864_p5)
}
  0x23   : > { %s2989_s19 = smov [#allocation2]   ;;  %s2868_s27 = scalar_lea.vmem %s143_s29, 16 }
  0x24   : > { %2789 = dma.hbm_to_smem (!%p3093_p7), %s5465_s0, 16, %s2989_s19, [#allocation5]  }
  0x25   : > { %p2869_p0 = scmp.ne.s32.totalorder %s143_s29, %s2868_s27  ;;  %p2876_p11 = scmp.lt.s32.totalorder %s143_s29, %s143_s29 }
  0x26   : > { %p2877_p8 = scmp.lt.s32.totalorder %s2868_s27, %s2868_s27 }
  0x27   : > { %p2871_p1 = pnand %p2869_p0, %p2857_p9 }
  0x28   : > { %p2878_p10 = por %p2877_p8, %p2876_p11 }
  0x29   : > { %p2872_p12 = pneg %p2871_p1 }
  0x2b   : > { %p2879_p6 = pnand %p2878_p10, %p2872_p12 }
  0x2d   : > { %2882 = shalt.err (!%p2879_p6)
}
  0x2e   : > { %s2990_s28 = smov [#allocation7]   ;;  %s2770_s6 = smul.u32 48, %s153_s5 }
  0x2f   : > { %2792 = dma.vmem_to_smem (!%p3093_p7), %s143_s29, 16, %s2990_s28, [#allocation6]  }
  0x30   : > { %s2771_s7 = smul.u32 768, %s2987_s15  ;;  %s157_s11 = scalar_lea.vmem [#allocation8], %s2770_s6 }
  0x31   : > { %s164_s17 = sshll.u32 %s157_s11, 4  ;;  %s3130_s30 = scalar_lea.sflag [#allocation3], %s153_s5  ;;  %s3128_s17 = int_to_ptr.vmem [resolvable:$true] %s164_s17 }
  0x32   : > { %s3126_s10 = scalar_lea.hbm %s5467_s2, %s2771_s7  ;;  %p2885_p11 = pneg %p3099_p3 }
  0x33   : > { %s2883_s19 = scalar_lea.hbm %s3126_s10, 768  ;;  %s2888_s22 = scalar_lea.hbm %s5467_s2, 1536 }
  0x34   : > { %p2884_p6 = scmp.ne.s32.totalorder %s3126_s10, %s2883_s19  ;;  %p2889_p7 = scmp.lt.u32.totalorder %s3126_s10, %s5467_s2 }
  0x35   : > { %p2890_p9 = scmp.lt.u32.totalorder %s2888_s22, %s2883_s19  ;;  %p2892_p4 = scmp.lt.u32.totalorder %s2883_s19, %s3126_s10 }
  0x36   : > { %p2886_p12 = pnand %p2885_p11, %p2884_p6 }
  0x37   : > { %p2891_p2 = por %p2890_p9, %p2889_p7 }
  0x38   : > { %p2887_p1 = pneg %p2886_p12 }
  0x39   : > { %p2893_p5 = por %p2892_p4, %p2891_p2 }
  0x3b   : > { %p2894_p0 = pnand %p2893_p5, %p2887_p1 }
  0x3d   : > { %2897 = shalt.err (!%p2894_p0)
}
  0x3e   : > { %s2898_s5 = scalar_lea.vmem %s3128_s17, 768  ;;  %s2991_s6 = smov [#allocation8]  }
  0x3f   : > { %p2899_p8 = scmp.ne.s32.totalorder %s3128_s17, %s2898_s5  ;;  %s2903_s7 = sshll.u32 %s2991_s6, 4  ;;  %s2904_s7 = int_to_ptr.vmem [resolvable:$false] %s2903_s7 }
  0x40   : > { %s2905_s8 = scalar_lea.vmem %s2904_s7, 1536  ;;  %p2906_p12 = scmp.lt.s32.totalorder %s3128_s17, %s2904_s7 }
  0x41   : > { %p2901_p10 = pnand %p2899_p8, %p2885_p11  ;;  %p2907_p7 = scmp.lt.s32.totalorder %s2905_s8, %s2898_s5 }
  0x43   : > { %p2902_p6 = pneg %p2901_p10  ;;  %p2908_p9 = por %p2907_p7, %p2906_p12 }
  0x45   : > { %p2909_p2 = pnand %p2908_p9, %p2902_p6 }
  0x47   : > { %2912 = shalt.err (!%p2909_p2)
}
  0x48   : > { %s2992_s9 = smov 128   ;;  %s2993_s11 = smov 8  }
  0x49   : > { %2796 = dma.hbm_to_vmem [thread:$0]  (!%p3099_p3), %s3126_s10, 768, %s3128_s17, %s3130_s30, %s2992_s9, %s2992_s9, %s2993_s11  }
  0x4a   : > { %176 = sbr.rel (%p3080_p13) target bundleno = 790 (0x316), region = 32 }
  0x51   : > { %p5603_p11 = scmp.eq.s32.totalorder %s3041_s16, 0 }
  0x53   : > { %2958 = dma.done.wait (%p5603_p11), [#allocation5], 16   ;;  %p5604_p1 = pmov %p5603_p11 }
  0x55   : > { %2960 = vsyncadd (%p5604_p1), [#allocation5], 4294967280  ;;  %p5605_p4 = pmov %p5604_p1 }
  0x56   : > { %p5606_p5 = pmov %p5604_p1 }
  0x57   : > { %2962 = dma.done.wait (%p5605_p4), [#allocation6], 16  }
  0x58   : > { %2964 = vsyncadd (%p5606_p5), [#allocation6], 4294967280  ;;  %s3169_s19 = sand.u32 1, %s2979_s13   ;;  %p5607_p13 = scmp.ne.s32.totalorder %s5596_s23, 0 }
  0x59   : > { %s2772_s26 = smul.u32 48, %s3169_s19  ;;  %s187_s4 = scalar_lea.sflag [#allocation3], %s3169_s19 }
  0x5b   : > { %s3175_s10 = scalar_lea.vmem [#allocation8], %s2772_s26 }
  0x5c   : > { %2966 = dma.done.wait (%p5607_p13), %s187_s4, 768  }
  0x5d   : > { %2968 = vsyncadd (%p5607_p13), %s187_s4, 4294966528 }
  0x5e   : > { %195 = sfence }
  0x5f   : > { %s2673_s17 = sld [smem:[#allocation2 + $0x1]]  ;;  %s2674_s30 = sld [smem:[#allocation2 + $0x1c]]  ;;  %v3182_v0 = vld [vmem:[%s3175_s10 + $0x8] sm:$0xff]  ;;  %v3185_v2 = vld [vmem:[%s3175_s10] sm:$0xff]  ;;  %vm393_vm0 = vcmask 1046528   ;;  %vm652_vm1 = vcmask 1045504  }
  0x60   : > { %s2675_s29 = sld [smem:[#allocation2 + $0x37]]  ;;  %s2994_s20 = smov 127   ;;  %vm320_vm2 = vcmask 1031168   ;;  %vm2413_vm3 = vcmask 7168  }
  0x61   : > { %s2676_s23 = sld [smem:[#allocation2 + $0x2]]  ;;  %s2677_s22 = sld [smem:[#allocation2 + $0x1d]] }
  0x62   : > { %s2678_s27 = sld [smem:[#allocation2 + $0x38]]  ;;  %s2682_s28 = sld [smem:[#allocation2 + $0x4]] }
  0x63   : > { %s2995_s5 = smov 126   ;;  %s2683_s6 = sld [smem:[#allocation2 + $0x1f]] }
  0x64   : > { %s2684_s7 = sld [smem:[#allocation2 + $0x3a]]  ;;  %s2685_s8 = sld [smem:[#allocation2 + $0x5]] }
  0x65   : > { %v241_v1 = vstv %s2673_s17  ;;  %v263_v5 = vstv %s2674_s30  ;;  %s2686_s9 = sld [smem:[#allocation2 + $0x20]]  ;;  %s2687_s11 = sld [smem:[#allocation2 + $0x3b]] }
  0x66   : > { %v242_v3 = vmul.f32 0.0, %v241_v1  ;;  %v244_v4 = vmul.f32 %v241_v1, %v3182_v0  ;;  %v264_v6 = vmul.f32 0.0, %v263_v5  ;;  %v243_v7 = vmul.f32 %v241_v1, %v3185_v2  ;;  %s2691_s4 = sld [smem:[#allocation2 + $0x7]]  ;;  %s2692_s17 = sld [smem:[#allocation2 + $0x22]] }
  0x67   : > { %v266_v8 = vmul.f32 %v263_v5, %v3182_v0  ;;  %v265_v9 = vmul.f32 %v263_v5, %v3185_v2  ;;  %v285_v10 = vstv %s2675_s29  ;;  %v307_v13 = vstv %s2676_s23  ;;  %s2693_s30 = sld [smem:[#allocation2 + $0x3d]]  ;;  %s2694_s29 = sld [smem:[#allocation2 + $0x8]] }
  0x68   : > { %248 = vrot.lane.b32.xlu0 %v242_v3, %s2994_s20  ;;  %252 = vrot.lane.b32.xlu1 %v244_v4, %s2994_s20  ;;  %v287_v11 = vmul.f32 %v285_v10, %v3185_v2  ;;  %v286_v12 = vmul.f32 0.0, %v285_v10  ;;  %v308_v14 = vmul.f32 0.0, %v307_v13  ;;  %v288_v15 = vmul.f32 %v285_v10, %v3182_v0  ;;  %s2695_s23 = sld [smem:[#allocation2 + $0x23]]  ;;  %p5964_p0 = scmp.ne.s32.totalorder %s5597_s24, 0 }
  0x69   : > { %v310_v16 = vmul.f32 %v307_v13, %v3182_v0  ;;  %v309_v17 = vmul.f32 %v307_v13, %v3185_v2  ;;  %v334_v18 = vstv %s2677_s22  ;;  %v360_v21 = vstv %s2678_s27  ;;  %s2696_s22 = sld [smem:[#allocation2 + $0x3e]]  ;;  %s2702_s27 = sld [smem:[#allocation2 + $0xa]] }
  0x6a   : > { %v336_v19 = vmul.f32 %v334_v18, %v3185_v2  ;;  %v335_v20 = vmul.f32 0.0, %v334_v18  ;;  %v459_v22 = vstv %s2682_s28  ;;  %v361_v23 = vmul.f32 0.0, %v360_v21  ;;  %s2703_s28 = sld [smem:[#allocation2 + $0x25]] }
  0x6b   : > { %v337_v24 = vmul.f32 %v334_v18, %v3182_v0  ;;  %v460_v25 = vmul.f32 %v459_v22, %v3185_v2  ;;  %v461_v26 = vmul.f32 %v459_v22, %v3182_v0  ;;  %v363_v27 = vmul.f32 %v360_v21, %v3182_v0 }
  0x6c   : > { %270 = vrot.lane.b32.xlu1 %v264_v6, %s2994_s20  ;;  %250 = vrot.lane.b32.xlu0 %v243_v7, %s2994_s20  ;;  %v362_v28 = vmul.f32 %v360_v21, %v3185_v2  ;;  %v483_v31 = vstv %s2683_s6  ;;  %v507_v35 = vstv %s2684_s7  ;;  %s2704_s6 = sld [smem:[#allocation2 + $0x40]]  ;;  %s2705_s7 = sld [smem:[#allocation2 + $0xb]] }
  0x6d   : > { %v464_v29 = vrot.slane %v460_v25, 1  ;;  %v465_v30 = vrot.slane %v461_v26, 1  ;;  %v484_v32 = vmul.f32 %v483_v31, %v3185_v2  ;;  %v485_v34 = vmul.f32 %v483_v31, %v3182_v0 }
  0x6e   : > { %v508_v38 = vmul.f32 %v507_v35, %v3185_v2  ;;  %v509_v39 = vmul.f32 %v507_v35, %v3182_v0  ;;  %v531_v43 = vstv %s2685_s8  ;;  %v569_v52 = vstv %s2686_s9  ;;  %s2706_s8 = sld [smem:[#allocation2 + $0x26]]  ;;  %s2707_s9 = sld [smem:[#allocation2 + $0x41]] }
  0x6f   : > { %v466_v33 = vsel %vm393_vm0, %v464_v29, %v465_v30  ;;  %v488_v36 = vrot.slane %v484_v32, 1  ;;  %v489_v37 = vrot.slane %v485_v34, 1  ;;  %v532_v44 = vmul.f32 %v531_v43, %v3185_v2 }
  0x70   : > { %274 = vrot.lane.b32.xlu1 %v266_v8, %s2994_s20  ;;  %272 = vrot.lane.b32.xlu0 %v265_v9, %s2994_s20  ;;  %v512_v41 = vrot.slane %v508_v38, 1  ;;  %v513_v42 = vrot.slane %v509_v39, 1  ;;  %v534_v46 = vmul.f32 %v531_v43, %v3182_v0  ;;  %v533_v48 = vmul.f32 0.0, %v531_v43 }
  0x71   : > { %v490_v40 = vsel %vm393_vm0, %v488_v36, %v489_v37  ;;  %v538_v47 = vrot.slane %v532_v44, 1  ;;  %v571_v53 = vmul.f32 0.0, %v569_v52  ;;  %v570_v54 = vmul.f32 %v569_v52, %v3185_v2 }
  0x72   : > { %v514_v45 = vsel %vm393_vm0, %v512_v41, %v513_v42  ;;  %v540_v49 = vrot.slane %v534_v46, 1  ;;  %v539_v50 = vrot.slane %v533_v48, 1  ;;  %v572_v55 = vmul.f32 %v569_v52, %v3182_v0 }
  0x73   : > { %v577_v56 = vrot.slane %v571_v53, 1  ;;  %v576_v57 = vrot.slane %v570_v54, 1  ;;  %v607_v59 = vstv %s2687_s11  ;;  %v721_v4 = vstv %s2691_s4  ;;  %s2711_s11 = sld [smem:[#allocation2 + $0xd]]  ;;  %s2712_s4 = sld [smem:[#allocation2 + $0x28]] }
  0x74   : > { %294 = vrot.lane.b32.xlu1 %v287_v11, %s2994_s20  ;;  %292 = vrot.lane.b32.xlu0 %v286_v12, %s2994_s20  ;;  %v541_v51 = vsel %vm393_vm0, %v538_v47, %v540_v49  ;;  %v578_v58 = vrot.slane %v572_v55, 1  ;;  %v608_v60 = vmul.f32 %v607_v59, %v3185_v2  ;;  %v610_v62 = vmul.f32 %v607_v59, %v3182_v0 }
  0x75   : > { %v609_v1 = vmul.f32 0.0, %v607_v59  ;;  %v722_v7 = vmul.f32 %v721_v4, %v3185_v2  ;;  %v723_v8 = vmul.f32 %v721_v4, %v3182_v0  ;;  %v749_v11 = vstv %s2692_s17  ;;  %s2713_s17 = sld [smem:[#allocation2 + $0x43]] }
  0x76   : > { %v579_v61 = vsel %vm393_vm0, %v576_v57, %v578_v58  ;;  %v614_v63 = vrot.slane %v608_v60, 1  ;;  %v616_v3 = vrot.slane %v610_v62, 1  ;;  %v724_v12 = vmul.f32 0.0, %v721_v4  ;;  %v3318_v4 = vld [vmem:[%s3175_s10 + $0x10] sm:$0xff] }
  0x77   : > { %v615_v5 = vrot.slane %v609_v1, 1  ;;  %v728_v9 = vrot.slane %v722_v7, 2  ;;  %v729_v10 = vrot.slane %v723_v8, 2  ;;  %v750_v13 = vmul.f32 %v749_v11, %v3185_v2 }
  0x78   : > { %314 = vrot.lane.b32.xlu1 %v308_v14, %s2995_s5  ;;  %296 = vrot.lane.b32.xlu0 %v288_v15, %s2994_s20  ;;  %v617_v6 = vsel %vm393_vm0, %v614_v63, %v616_v3  ;;  %v751_v14 = vmul.f32 %v749_v11, %v3182_v0  ;;  %v777_v18 = vstv %s2693_s30  ;;  %v805_v25 = vstv %s2694_s29  ;;  %s2714_s30 = sld [smem:[#allocation2 + $0xe]]  ;;  %s2715_s29 = sld [smem:[#allocation2 + $0x29]] }
  0x79   : > { %v730_v15 = vsel %vm652_vm1, %v728_v9, %v729_v10  ;;  %v780_v26 = vmul.f32 0.0, %v777_v18  ;;  %v806_v31 = vmul.f32 %v805_v25, %v3185_v2  ;;  %v808_v34 = vmul.f32 %v805_v25, %v3182_v0 }
  0x7b   : > { %v812_v35 = vrot.slane %v806_v31, 2  ;;  %v814_v38 = vrot.slane %v808_v34, 2  ;;  %v1054_v34 = vstv %s2706_s8  ;;  %s2671_s8 = sld [smem:[#allocation2 + $0x1b]] }
  0x7c   : > { %318 = vrot.lane.b32.xlu1 %v310_v16, %s2995_s5  ;;  %316 = vrot.lane.b32.xlu0 %v309_v17, %s2995_s5  ;;  %v731_v16 = vrot.slane %v724_v12, 2  ;;  %v752_v17 = vmul.f32 0.0, %v749_v11  ;;  %v3328_v11 = vld [vmem:[%s3175_s10 + $0x18] sm:$0xff] }
  0x7e   : > { %v732_v21 = vsel %vm652_vm1, %v729_v10, %v731_v16  ;;  %v759_v22 = vrot.slane %v752_v17, 2  ;;  %v981_v10 = vstv %s2703_s28  ;;  %s2722_s28 = sld [smem:[#allocation2 + $0x46]] }
  0x80   : > { %343 = vrot.lane.b32.xlu1 %v336_v19, %s2995_s5  ;;  %341 = vrot.lane.b32.xlu0 %v335_v20, %s2995_s5  ;;  %v756_v19 = vrot.slane %v750_v13, 2  ;;  %v757_v20 = vrot.slane %v751_v14, 2  ;;  %v982_v14 = vmul.f32 0.0, %v981_v10 }
  0x84   : > { %367 = vrot.lane.b32.xlu1 %v361_v23, %s2995_s5  ;;  %345 = vrot.lane.b32.xlu0 %v337_v24, %s2995_s5  ;;  %v778_v23 = vmul.f32 %v777_v18, %v3185_v2  ;;  %v779_v24 = vmul.f32 %v777_v18, %v3182_v0  ;;  %v984_v18 = vmul.f32 %v3328_v11, %v981_v10 }
  0x88   : > { %371 = vrot.lane.b32.xlu1 %v363_v27, %s2995_s5  ;;  %369 = vrot.lane.b32.xlu0 %v362_v28, %s2995_s5  ;;  %v760_v27 = vsel %vm652_vm1, %v757_v20, %v759_v22  ;;  %v758_v28 = vsel %vm652_vm1, %v756_v19, %v757_v20  ;;  %v1004_v20 = vstv %s2704_s6  ;;  %s2723_s6 = sld [smem:[#allocation2 + $0x11]] }
  0x8c   : > { %469 = vrot.lane.b32.xlu1 %v466_v33, %s2994_s20  ;;  %467 = vrot.lane.b32.xlu0 %v464_v29, %s2994_s20  ;;  %v784_v29 = vrot.slane %v778_v23, 2  ;;  %v787_v33 = vrot.slane %v780_v26, 2  ;;  %v1006_v23 = vmul.f32 %v3318_v4, %v1004_v20 }
  0x90   : > { %491 = vrot.lane.b32.xlu1 %v488_v36, %s2994_s20  ;;  %471 = vrot.lane.b32.xlu0 %v465_v30, %s2994_s20  ;;  %v785_v30 = vrot.slane %v779_v24, 2  ;;  %v807_v36 = vmul.f32 0.0, %v805_v25  ;;  %v1005_v24 = vmul.f32 0.0, %v1004_v20  ;;  %v1027_v25 = vstv %s2705_s7  ;;  %s216_s7 = sld [smem:[#allocation2]] }
  0x92   : > { %v786_v32 = vsel %vm652_vm1, %v784_v29, %v785_v30  ;;  %v813_v39 = vrot.slane %v807_v36, 2 }
  0x94   : > { %495 = vrot.lane.b32.xlu1 %v489_v37, %s2994_s20  ;;  %493 = vrot.lane.b32.xlu0 %v490_v40, %s2994_s20  ;;  %v788_v37 = vsel %vm652_vm1, %v785_v30, %v787_v33  ;;  %v815_v40 = vsel %vm652_vm1, %v812_v35, %v814_v38  ;;  %v817_v44 = vsel %vm652_vm1, %v814_v38, %v813_v39  ;;  %v1055_v38 = vmul.f32 0.0, %v1054_v34 }
  0x95   : > { %v1029_v33 = vmul.f32 %v3318_v4, %v1027_v25 }
  0x98   : > { %517 = vrot.lane.b32.xlu1 %v514_v45, %s2994_s20  ;;  %515 = vrot.lane.b32.xlu0 %v512_v41, %s2994_s20  ;;  %v844_v41 = vstv %s2695_s23  ;;  %s2716_s23 = sld [smem:[#allocation2 + $0x44]] }
  0x99   : > { %v845_v43 = vmul.f32 %v844_v41, %v3185_v2  ;;  %v847_v45 = vmul.f32 %v844_v41, %v3182_v0 }
  0x9b   : > { %v853_v48 = vrot.slane %v847_v45, 2 }
  0x9c   : > { %543 = vrot.lane.b32.xlu1 %v538_v47, %s2995_s5  ;;  %519 = vrot.lane.b32.xlu0 %v513_v42, %s2994_s20  ;;  %v846_v42 = vmul.f32 0.0, %v844_v41  ;;  %v851_v47 = vrot.slane %v845_v43, 2 }
  0x9e   : > { %v852_v46 = vrot.slane %v846_v42, 2  ;;  %v1180_v42 = vstv %s2711_s11  ;;  %s2680_s11 = sld [smem:[#allocation2 + $0x1e]] }
  0x9f   : > { %v1181_v45 = vmul.f32 %v3318_v4, %v1180_v42 }
  0xa0   : > { %547 = vrot.lane.b32.xlu1 %v541_v51, %s2995_s5  ;;  %545 = vrot.lane.b32.xlu0 %v539_v50, %s2995_s5  ;;  %v854_v51 = vsel %vm652_vm1, %v851_v47, %v853_v48 }
  0xa4   : > { %551 = vrot.lane.b32.xlu1 %v540_v49, %s2995_s5  ;;  %549 = vrot.lane.b32.xlu0 %v539_v50, %s2995_s5  ;;  %v883_v49 = vstv %s2696_s22  ;;  %s2720_s22 = sld [smem:[#allocation2 + $0x10]] }
  0xa5   : > { %v884_v50 = vmul.f32 %v883_v49, %v3185_v2  ;;  %v886_v52 = vmul.f32 %v883_v49, %v3182_v0 }
  0xa7   : > { %v890_v55 = vrot.slane %v884_v50, 2 }
  0xa8   : > { %583 = vrot.lane.b32.xlu1 %v577_v56, %s2995_s5  ;;  %581 = vrot.lane.b32.xlu0 %v576_v57, %s2995_s5  ;;  %v856_v57 = vsel %vm652_vm1, %v853_v48, %v852_v46 }
  0xac   : > { %587 = vrot.lane.b32.xlu1 %v577_v56, %s2995_s5  ;;  %585 = vrot.lane.b32.xlu0 %v579_v61, %s2995_s5  ;;  %v885_v56 = vmul.f32 0.0, %v883_v49 }
  0xae   : > { %v891_v61 = vrot.slane %v885_v56, 2 }
  0xb0   : > { %619 = vrot.lane.b32.xlu1 %v614_v63, %s2995_s5  ;;  %589 = vrot.lane.b32.xlu0 %v578_v58, %s2995_s5  ;;  %v892_v58 = vrot.slane %v886_v52, 2 }
  0xb2   : > { %v893_v62 = vsel %vm652_vm1, %v890_v55, %v892_v58 }
  0xb4   : > { %623 = vrot.lane.b32.xlu1 %v617_v6, %s2995_s5  ;;  %621 = vrot.lane.b32.xlu0 %v615_v5, %s2995_s5 }
  0xb8   : > { %627 = vrot.lane.b32.xlu1 %v616_v3, %s2995_s5  ;;  %625 = vrot.lane.b32.xlu0 %v615_v5, %s2995_s5  ;;  %v895_v3 = vsel %vm652_vm1, %v892_v58, %v891_v61  ;;  %v958_v5 = vstv %s2702_s27  ;;  %s2721_s27 = sld [smem:[#allocation2 + $0x2b]] }
  0xb9   : > { %v960_v8 = vmul.f32 %v3318_v4, %v958_v5 }
  0xbc   : > { %735 = vrot.lane.b32.xlu1 %v730_v15, %s2994_s20  ;;  %733 = vrot.lane.b32.xlu0 %v728_v9, %s2994_s20  ;;  %v959_v9 = vmul.f32 0.0, %v958_v5  ;;  %v961_v15 = vmul.f32 %v3328_v11, %v958_v5 }
  0xc0   : > { %761 = vrot.lane.b32.xlu1 %v756_v19, %s2994_s20  ;;  %737 = vrot.lane.b32.xlu0 %v732_v21, %s2994_s20  ;;  %v983_v19 = vmul.f32 %v3318_v4, %v981_v10 }
  0xc4   : > { %765 = vrot.lane.b32.xlu1 %v760_v27, %s2994_s20  ;;  %763 = vrot.lane.b32.xlu0 %v758_v28, %s2994_s20  ;;  %v1028_v28 = vmul.f32 0.0, %v1027_v25 }
  0xc8   : > { %791 = vrot.lane.b32.xlu1 %v786_v32, %s2994_s20  ;;  %789 = vrot.lane.b32.xlu0 %v784_v29, %s2994_s20  ;;  %v1007_v29 = vmul.f32 %v3328_v11, %v1004_v20  ;;  %v1030_v32 = vmul.f32 %v3328_v11, %v1027_v25  ;;  %v1252_v25 = vstv %s2714_s30  ;;  %s3523_s30 = sld [smem:[#allocation2 + $0x39]] }
  0xcc   : > { %818 = vrot.lane.b32.xlu1 %v812_v35, %s2995_s5  ;;  %793 = vrot.lane.b32.xlu0 %v788_v37, %s2994_s20  ;;  %v1056_v37 = vmul.f32 %v3318_v4, %v1054_v34 }
  0xd0   : > { %822 = vrot.lane.b32.xlu1 %v815_v40, %s2995_s5  ;;  %820 = vrot.lane.b32.xlu0 %v813_v39, %s2995_s5 }
  0xd4   : > { %826 = vrot.lane.b32.xlu1 %v817_v44, %s2995_s5  ;;  %824 = vrot.lane.b32.xlu0 %v813_v39, %s2995_s5  ;;  %v1081_v39 = vstv %s2707_s9  ;;  %v1057_v44 = vmul.f32 %v3328_v11, %v1054_v34  ;;  %v1255_v34 = vmul.f32 %v3328_v11, %v1252_v25  ;;  %s2679_s9 = sld [smem:[#allocation2 + $0x3]] }
  0xd5   : > { %v1082_v43 = vmul.f32 0.0, %v1081_v39  ;;  %v1084_v49 = vmul.f32 %v3328_v11, %v1081_v39  ;;  %v1083_v50 = vmul.f32 %v3318_v4, %v1081_v39 }
  0xd8   : > { %859 = vrot.lane.b32.xlu1 %v852_v46, %s2995_s5  ;;  %857 = vrot.lane.b32.xlu0 %v851_v47, %s2995_s5 }
  0xda   : > { %v3296_v53 = vpop.permute.xlu0 %248  ;;  %v3298_v54 = vpop.permute.xlu1 %252 }
  0xdc   : > { %863 = vrot.lane.b32.xlu1 %v852_v46, %s2995_s5  ;;  %861 = vrot.lane.b32.xlu0 %v854_v51, %s2995_s5  ;;  %v1182_v46 = vmul.f32 %v3328_v11, %v1180_v42  ;;  %v1185_v51 = vrot.slane %v1181_v45, 1  ;;  %v1254_v42 = vmul.f32 0.0, %v1252_v25 }
  0xde   : > { %v3303_v59 = vpop.permute.xlu1 %270  ;;  %v3305_v60 = vpop.permute.xlu0 %250  ;;  %v1186_v52 = vrot.slane %v1182_v46, 1  ;;  %v1260_v46 = vrot.slane %v1254_v42, 1 }
  0xe0   : > { %896 = vrot.lane.b32.xlu1 %v890_v55, %s2995_s5  ;;  %865 = vrot.lane.b32.xlu0 %v856_v57, %s2995_s5  ;;  %v1204_v55 = vstv %s2712_s4  ;;  %s2724_s4 = sld [smem:[#allocation2 + $0x2c]] }
  0xe1   : > { %v1205_v58 = vmul.f32 %v3318_v4, %v1204_v55 }
  0xe2   : > { %v3310_v63 = vpop.permute.xlu1 %274  ;;  %v3312_v1 = vpop.permute.xlu0 %272 }
  0xe4   : > { %900 = vrot.lane.b32.xlu1 %v893_v62, %s2995_s5  ;;  %898 = vrot.lane.b32.xlu0 %v891_v61, %s2995_s5  ;;  %v1206_v62 = vmul.f32 %v3328_v11, %v1204_v55 }
  0xe6   : > { %v3320_v6 = vpop.permute.xlu1 %294  ;;  %v3322_v7 = vpop.permute.xlu0 %292  ;;  %v1210_v10 = vrot.slane %v1206_v62, 1 }
  0xe8   : > { %904 = vrot.lane.b32.xlu1 %v895_v3, %s2995_s5  ;;  %902 = vrot.lane.b32.xlu0 %v891_v61, %s2995_s5  ;;  %v1187_v61 = vsel %vm393_vm0, %v1185_v51, %v1186_v52 }
  0xea   : > { %v3330_v12 = vpop.permute.xlu1 %314  ;;  %v3332_v13 = vpop.permute.xlu0 %296 }
  0xec   : > { %967 = vrot.lane.b32.xlu1 %v960_v8, %s2994_s20  ;;  %965 = vrot.lane.b32.xlu0 %v959_v9, %s2994_s20  ;;  %v1228_v8 = vstv %s2713_s17  ;;  %v1209_v9 = vrot.slane %v1205_v58, 1  ;;  %s2672_s17 = sld [smem:[#allocation2 + $0x36]] }
  0xee   : > { %v3337_v16 = vpop.permute.xlu1 %318  ;;  %v3339_v17 = vpop.permute.xlu0 %316  ;;  %v1211_v20 = vsel %vm393_vm0, %v1209_v9, %v1210_v10 }
  0xf0   : > { %988 = vrot.lane.b32.xlu1 %v982_v14, %s2994_s20  ;;  %969 = vrot.lane.b32.xlu0 %v961_v15, %s2994_s20  ;;  %v1229_v14 = vmul.f32 %v3318_v4, %v1228_v8  ;;  %v1230_v15 = vmul.f32 %v3328_v11, %v1228_v8 }
  0xf2   : > { %v3345_v21 = vpop.permute.xlu1 %343  ;;  %v3347_v22 = vpop.permute.xlu0 %341 }
  0xf4   : > { %992 = vrot.lane.b32.xlu1 %v984_v18, %s2994_s20  ;;  %990 = vrot.lane.b32.xlu0 %v983_v19, %s2994_s20 }
  0xf6   : > { %v3352_v26 = vpop.permute.xlu1 %367  ;;  %v3354_v27 = vpop.permute.xlu0 %345 }
  0xf8   : > { %1013 = vrot.lane.b32.xlu1 %v1006_v23, %s2994_s20  ;;  %1011 = vrot.lane.b32.xlu0 %v1005_v24, %s2994_s20  ;;  %v1233_v23 = vrot.slane %v1229_v14, 1  ;;  %v1234_v24 = vrot.slane %v1230_v15, 1  ;;  %v1328_v15 = vstv %s2716_s23  ;;  %s3538_s23 = sld [smem:[#allocation2 + $0x21]] }
  0xf9   : > { %v1330_v42 = vmul.f32 0.0, %v1328_v15 }
  0xfa   : > { %v3359_v30 = vpop.permute.xlu1 %371  ;;  %v3361_v31 = vpop.permute.xlu0 %369 }
  0xfc   : > { %1034 = vrot.lane.b32.xlu1 %v1028_v28, %s2995_s5  ;;  %1015 = vrot.lane.b32.xlu0 %v1007_v29, %s2994_s20 }
  0xfe   : > { %v3367_v35 = vpop.permute.xlu1 %469  ;;  %v3369_v36 = vpop.permute.xlu0 %467 }
  0xff   : > { %5608 = vst [vmem:[#allocation14_spill] sm:$0xff] %v3367_v35  ;;  %5609 = vst [vmem:[#allocation15_spill] sm:$0xff] %v3369_v36 }
 0x100   : > { %1038 = vrot.lane.b32.xlu1 %v1030_v32, %s2995_s5  ;;  %1036 = vrot.lane.b32.xlu0 %v1029_v33, %s2995_s5  ;;  %v1253_v32 = vmul.f32 %v3318_v4, %v1252_v25  ;;  %v1235_v33 = vsel %vm393_vm0, %v1233_v23, %v1234_v24 }
 0x102   : > { %v3374_v40 = vpop.permute.xlu1 %491  ;;  %v3376_v41 = vpop.permute.xlu0 %471  ;;  %v1259_v39 = vrot.slane %v1253_v32, 1  ;;  %v1331_v32 = vmul.f32 %v3328_v11, %v1328_v15 }
 0x103   : > { %5610 = vst [vmem:[#allocation16_spill] sm:$0xff] %v3374_v40  ;;  %5611 = vst [vmem:[#allocation17_spill] sm:$0xff] %v3376_v41 }
 0x104   : > { %1063 = vrot.lane.b32.xlu1 %v1056_v37, %s2995_s5  ;;  %1061 = vrot.lane.b32.xlu0 %v1055_v38, %s2995_s5 }
 0x106   : > { %v3383_v47 = vpop.permute.xlu1 %495  ;;  %v3385_v48 = vpop.permute.xlu0 %493 }
 0x107   : > { %5612 = vst [vmem:[#allocation18_spill] sm:$0xff] %v3383_v47  ;;  %5613 = vst [vmem:[#allocation19_spill] sm:$0xff] %v3385_v48 }
 0x108   : > { %1088 = vrot.lane.b32.xlu1 %v1082_v43, %s2995_s5  ;;  %1065 = vrot.lane.b32.xlu0 %v1057_v44, %s2995_s5  ;;  %v1261_v43 = vrot.slane %v1255_v34, 1 }
 0x10a   : > { %v3391_v56 = vpop.permute.xlu1 %517  ;;  %v3393_v57 = vpop.permute.xlu0 %515 }
 0x10b   : > { %5614 = vst [vmem:[#allocation20_spill] sm:$0xff] %v3391_v56  ;;  %5615 = vst [vmem:[#allocation21_spill] sm:$0xff] %v3393_v57 }
 0x10c   : > { %1092 = vrot.lane.b32.xlu1 %v1084_v49, %s2995_s5  ;;  %1090 = vrot.lane.b32.xlu0 %v1083_v50, %s2995_s5  ;;  %v1262_v49 = vsel %vm393_vm0, %v1259_v39, %v1261_v43  ;;  %v1290_v50 = vstv %s2715_s29  ;;  %s3529_s29 = sld [smem:[#allocation2 + $0x6]] }
 0x10d   : > { %v1292_v55 = vmul.f32 0.0, %v1290_v50  ;;  %v1291_v58 = vmul.f32 %v3318_v4, %v1290_v50 }
 0x10e   : > { %v3400_v3 = vpop.permute.xlu1 %543  ;;  %v3402_v5 = vpop.permute.xlu0 %519 }
 0x10f   : > { %5616 = vst [vmem:[#allocation22_spill] sm:$0xff] %v3400_v3  ;;  %5617 = vst [vmem:[#allocation23_spill] sm:$0xff] %v3402_v5 }
 0x110   : > { %1190 = vrot.lane.b32.xlu1 %v1187_v61, %s2994_s20  ;;  %1188 = vrot.lane.b32.xlu0 %v1185_v51, %s2994_s20  ;;  %v1293_v61 = vmul.f32 %v3328_v11, %v1290_v50  ;;  %v1441_v50 = vstv %s2720_s22  ;;  %s3541_s22 = sld [smem:[#allocation2 + $0x47]] }
 0x112   : > { %v3408_v18 = vpop.permute.xlu1 %547  ;;  %v3410_v19 = vpop.permute.xlu0 %545  ;;  %v1299_v14 = vrot.slane %v1293_v61, 1  ;;  %v1442_v61 = vmul.f32 %v3318_v4, %v1441_v50 }
 0x113   : > { %5618 = vst [vmem:[#allocation24_spill] sm:$0xff] %v3408_v18  ;;  %5619 = vst [vmem:[#allocation25_spill] sm:$0xff] %v3410_v19 }
 0x114   : > { %1212 = vrot.lane.b32.xlu1 %v1209_v9, %s2994_s20  ;;  %1192 = vrot.lane.b32.xlu0 %v1186_v52, %s2994_s20  ;;  %v1298_v9 = vrot.slane %v1292_v55, 1  ;;  %v1336_v55 = vrot.slane %v1330_v42, 1 }
 0x116   : > { %v3415_v28 = vpop.permute.xlu1 %551  ;;  %v3417_v29 = vpop.permute.xlu0 %549 }
 0x117   : > { %5620 = vst [vmem:[#allocation26_spill] sm:$0xff] %v3415_v28  ;;  %5621 = vst [vmem:[#allocation27_spill] sm:$0xff] %v3417_v29  ;;  %v645_v28 = vstv %s3529_s29  ;;  %s3858_s29 = sld [smem:[#allocation2 + $0x14]] }
 0x118   : > { %1216 = vrot.lane.b32.xlu1 %v1210_v10, %s2994_s20  ;;  %1214 = vrot.lane.b32.xlu0 %v1211_v20, %s2994_s20  ;;  %v1297_v10 = vrot.slane %v1291_v58, 1  ;;  %v3627_v5 = vmul.f32 %v645_v28, %v3185_v2  ;;  %v646_v3 = vmul.f32 0.0, %v645_v28 }
 0x11a   : > { %v3424_v37 = vpop.permute.xlu1 %583  ;;  %v3426_v38 = vpop.permute.xlu0 %581  ;;  %v1300_v25 = vsel %vm393_vm0, %v1297_v10, %v1299_v14  ;;  %v5516_v35 = vrot.slane %v3627_v5, 2 }
 0x11b   : > { %5622 = vst [vmem:[#allocation28_spill] sm:$0xff] %v3424_v37  ;;  %5623 = vst [vmem:[#allocation29_spill] sm:$0xff] %v3426_v38 }
 0x11c   : > { %1238 = vrot.lane.b32.xlu1 %v1235_v33, %s2994_s20  ;;  %1236 = vrot.lane.b32.xlu0 %v1233_v23, %s2994_s20 }
 0x11e   : > { %v3430_v44 = vpop.permute.xlu1 %587  ;;  %v3432_v45 = vpop.permute.xlu0 %585 }
 0x11f   : > { %5624 = vst [vmem:[#allocation30_spill] sm:$0xff] %v3430_v44  ;;  %5625 = vst [vmem:[#allocation31_spill] sm:$0xff] %v3432_v45  ;;  %v435_v44 = vstv %s3523_s30  ;;  %s3840_s30 = sld [smem:[#allocation2 + $0x42]] }
 0x120   : > { %1264 = vrot.lane.b32.xlu1 %v1259_v39, %s2995_s5  ;;  %1240 = vrot.lane.b32.xlu0 %v1234_v24, %s2994_s20  ;;  %v1329_v24 = vmul.f32 %v3318_v4, %v1328_v15  ;;  %v436_v18 = vmul.f32 0.0, %v435_v44 }
 0x122   : > { %v3437_v51 = vpop.permute.xlu1 %619  ;;  %v3439_v52 = vpop.permute.xlu0 %589  ;;  %v1335_v39 = vrot.slane %v1329_v24, 1  ;;  %v1448_v24 = vrot.slane %v1442_v61, 2 }
 0x123   : > { %5626 = vst [vmem:[#allocation32_spill] sm:$0xff] %v3437_v51  ;;  %5627 = vst [vmem:[#allocation33_spill] sm:$0xff] %v3439_v52 }
 0x124   : > { %1268 = vrot.lane.b32.xlu1 %v1262_v49, %s2995_s5  ;;  %1266 = vrot.lane.b32.xlu0 %v1260_v46, %s2995_s5 }
 0x126   : > { %v3445_v62 = vpop.permute.xlu1 %623  ;;  %v3447_v8 = vpop.permute.xlu0 %621 }
 0x127   : > { %5628 = vst [vmem:[#allocation34_spill] sm:$0xff] %v3445_v62  ;;  %5629 = vst [vmem:[#allocation35_spill] sm:$0xff] %v3447_v8 }
 0x128   : > { %1272 = vrot.lane.b32.xlu1 %v1261_v43, %s2995_s5  ;;  %1270 = vrot.lane.b32.xlu0 %v1260_v46, %s2995_s5  ;;  %v1337_v43 = vrot.slane %v1331_v32, 1  ;;  %v1469_v32 = vstv %s2721_s27  ;;  %s3561_s27 = sld [smem:[#allocation2 + $0x3c]] }
 0x12a   : > { %v3451_v20 = vpop.permute.xlu1 %627  ;;  %v3453_v23 = vpop.permute.xlu0 %625  ;;  %v1338_v58 = vsel %vm393_vm0, %v1335_v39, %v1337_v43 }
 0x12b   : > { %5630 = vst [vmem:[#allocation36_spill] sm:$0xff] %v3451_v20  ;;  %5631 = vst [vmem:[#allocation37_spill] sm:$0xff] %v3453_v23 }
 0x12c   : > { %1304 = vrot.lane.b32.xlu1 %v1298_v9, %s2995_s5  ;;  %1302 = vrot.lane.b32.xlu0 %v1297_v10, %s2995_s5 }
 0x12e   : > { %v3460_v33 = vpop.permute.xlu1 %735  ;;  %v3462_v34 = vpop.permute.xlu0 %733  ;;  %v696_v19 = vstv %s3561_s27  ;;  %s3955_s27 = sld [smem:[#allocation2 + $0xf]] }
 0x12f   : > { %5632 = vst [vmem:[#allocation38_spill] sm:$0xff] %v3460_v33  ;;  %5633 = vst [vmem:[#allocation39_spill] sm:$0xff] %v3462_v34  ;;  %v697_v40 = vmul.f32 0.0, %v696_v19 }
 0x130   : > { %1308 = vrot.lane.b32.xlu1 %v1298_v9, %s2995_s5  ;;  %1306 = vrot.lane.b32.xlu0 %v1300_v25, %s2995_s5  ;;  %v1443_v9 = vmul.f32 %v3328_v11, %v1441_v50 }
 0x132   : > { %v3466_v46 = vpop.permute.xlu1 %761  ;;  %v3468_v49 = vpop.permute.xlu0 %737  ;;  %v1449_v25 = vrot.slane %v1443_v9, 2  ;;  %v1497_v9 = vstv %s2722_s28  ;;  %s3604_s28 = sld [smem:[#allocation2 + $0x9]] }
 0x133   : > { %5634 = vst [vmem:[#allocation40_spill] sm:$0xff] %v3466_v46  ;;  %5635 = vst [vmem:[#allocation41_spill] sm:$0xff] %v3468_v49  ;;  %v1472_v49 = vmul.f32 0.0, %v1469_v32  ;;  %v1499_v34 = vmul.f32 %v3328_v11, %v1497_v9 }
 0x134   : > { %1340 = vrot.lane.b32.xlu1 %v1335_v39, %s2995_s5  ;;  %1310 = vrot.lane.b32.xlu0 %v1299_v14, %s2995_s5  ;;  %v1444_v14 = vmul.f32 0.0, %v1441_v50 }
 0x136   : > { %v3475_v10 = vpop.permute.xlu1 %765  ;;  %v3477_v15 = vpop.permute.xlu0 %763  ;;  %v1451_v46 = vrot.slane %v1444_v14, 2 }
 0x137   : > { %5636 = vst [vmem:[#allocation42_spill] sm:$0xff] %v3475_v10  ;;  %5637 = vst [vmem:[#allocation43_spill] sm:$0xff] %v3477_v15  ;;  %v1470_v10 = vmul.f32 %v3318_v4, %v1469_v32  ;;  %v1471_v15 = vmul.f32 %v3328_v11, %v1469_v32  ;;  %v1498_v32 = vmul.f32 %v3318_v4, %v1497_v9 }
 0x138   : > { %1344 = vrot.lane.b32.xlu1 %v1338_v58, %s2995_s5  ;;  %1342 = vrot.lane.b32.xlu0 %v1336_v55, %s2995_s5  ;;  %v1450_v58 = vsel %vm652_vm1, %v1448_v24, %v1449_v25 }
 0x13a   : > { %v3481_v42 = vpop.permute.xlu1 %791  ;;  %v3483_v39 = vpop.permute.xlu0 %789 }
 0x13b   : > { %5638 = vst [vmem:[#allocation44_spill] sm:$0xff] %v3481_v42  ;;  %5639 = vst [vmem:[#allocation45_spill] sm:$0xff] %v3483_v39  ;;  %v1479_v39 = vrot.slane %v1472_v49, 2  ;;  %v1452_v42 = vsel %vm652_vm1, %v1449_v25, %v1451_v46  ;;  %v1505_v49 = vrot.slane %v1499_v34, 2  ;;  %v1500_v46 = vmul.f32 0.0, %v1497_v9 }
 0x13c   : > { %1348 = vrot.lane.b32.xlu1 %v1337_v43, %s2995_s5  ;;  %1346 = vrot.lane.b32.xlu0 %v1336_v55, %s2995_s5  ;;  %v1476_v43 = vrot.slane %v1470_v10, 2  ;;  %v1477_v55 = vrot.slane %v1471_v15, 2  ;;  %v1504_v15 = vrot.slane %v1498_v32, 2 }
 0x13e   : > { %v3490_v61 = vpop.permute.xlu1 %818  ;;  %v3492_v50 = vpop.permute.xlu0 %793  ;;  %v1478_v10 = vsel %vm652_vm1, %v1476_v43, %v1477_v55 }
 0x13f   : > { %5640 = vst [vmem:[#allocation46_spill] sm:$0xff] %v3490_v61  ;;  %5641 = vst [vmem:[#allocation47_spill] sm:$0xff] %v3492_v50  ;;  %v411_v61 = vstv %s2680_s11  ;;  %s3732_s11 = sld [smem:[#allocation2 + $0x2e]] }
 0x140   : > { %1455 = vrot.lane.b32.xlu1 %v1450_v58, %s2994_s20  ;;  %1453 = vrot.lane.b32.xlu0 %v1448_v24, %s2994_s20  ;;  %v1480_v58 = vsel %vm652_vm1, %v1477_v55, %v1479_v39  ;;  %v1525_v24 = vstv %s2723_s6  ;;  %v1506_v39 = vsel %vm652_vm1, %v1504_v15, %v1505_v49  ;;  %v3559_v23 = vmul.f32 %v411_v61, %v3185_v2  ;;  %s3631_s6 = sld [smem:[#allocation2 + $0x24]] }
 0x141   : > { %v1528_v34 = vmul.f32 %v3328_v11, %v1525_v24  ;;  %v3567_v20 = vmul.f32 %v411_v61, %v3182_v0 }
 0x142   : > { %v3499_v14 = vpop.permute.xlu1 %822  ;;  %v3501_v33 = vpop.permute.xlu0 %820 }
 0x143   : > { %5642 = vst [vmem:[#allocation48_spill] sm:$0xff] %v3499_v14  ;;  %5643 = vst [vmem:[#allocation49_spill] sm:$0xff] %v3501_v33  ;;  %v217_v14 = vstv %s216_s7  ;;  %v225_v33 = vstv %s2671_s8  ;;  %s3649_s7 = sld [smem:[#allocation2 + $0x3f]]  ;;  %s3674_s8 = sld [smem:[#allocation2 + $0x13]] }
 0x144   : > { %1481 = vrot.lane.b32.xlu1 %v1476_v43, %s2994_s20  ;;  %1457 = vrot.lane.b32.xlu0 %v1452_v42, %s2994_s20  ;;  %v1526_v42 = vmul.f32 %v3318_v4, %v1525_v24  ;;  %v1507_v43 = vrot.slane %v1500_v46, 2  ;;  %5652 = vst [vmem:[#allocation58_spill] sm:$0xff] %v3567_v20 }
 0x146   : > { %v3507_v25 = vpop.permute.xlu1 %826  ;;  %v3509_v50 = vpop.permute.xlu0 %824  ;;  %v1532_v32 = vrot.slane %v1526_v42, 2 }
 0x147   : > { %5644 = vst [vmem:[#allocation50_spill] sm:$0xff] %v3507_v25  ;;  %5645 = vst [vmem:[#allocation51_spill] sm:$0xff] %v3509_v50  ;;  %v1534_v25 = vrot.slane %v1528_v34, 2  ;;  %v3546_v34 = vmul.f32 %v217_v14, %v3185_v2 }
 0x148   : > { %1485 = vrot.lane.b32.xlu1 %v1480_v58, %s2994_s20  ;;  %1483 = vrot.lane.b32.xlu0 %v1478_v10, %s2994_s20  ;;  %v1527_v58 = vmul.f32 0.0, %v1525_v24  ;;  %v1508_v10 = vsel %vm652_vm1, %v1505_v49, %v1507_v43  ;;  %v3533_v24 = vmul.f32 0.0, %v217_v14  ;;  %v3536_v49 = vmul.f32 %v217_v14, %v3182_v0 }
 0x149   : > { %v1535_v42 = vsel %vm652_vm1, %v1532_v32, %v1534_v25  ;;  %v3543_v43 = vmul.f32 0.0, %v225_v33  ;;  %v3564_v14 = vmul.f32 %v225_v33, %v3182_v0 }
 0x14a   : > { %v3516_v9 = vpop.permute.xlu1 %859  ;;  %v3518_v55 = vpop.permute.xlu0 %857 }
 0x14b   : > { %5646 = vst [vmem:[#allocation52_spill] sm:$0xff] %v3516_v9  ;;  %5647 = vst [vmem:[#allocation53_spill] sm:$0xff] %v3518_v55  ;;  %v386_v9 = vstv %s2679_s9  ;;  %s3695_s9 = sld [smem:[#allocation2 + $0xc]] }
 0x14c   : > { %1511 = vrot.lane.b32.xlu1 %v1506_v39, %s2994_s20  ;;  %1509 = vrot.lane.b32.xlu0 %v1504_v15, %s2994_s20  ;;  %v1533_v15 = vrot.slane %v1527_v58, 2  ;;  %v1564_v39 = vstv %s2724_s4  ;;  %v3549_v58 = vmul.f32 %v386_v9, %v3182_v0  ;;  %v387_v55 = vmul.f32 0.0, %v386_v9  ;;  %s3794_s4 = sld [smem:[#allocation2 + $0x27]] }
 0x14d   : > { %v3556_v62 = vmul.f32 %v386_v9, %v3185_v2  ;;  %v1565_v9 = vmul.f32 %v3318_v4, %v1564_v39  ;;  %v3579_v52 = vmul.f32 %v3328_v11, %v1564_v39 }
 0x14e   : > { %v3525_v46 = vpop.permute.xlu1 %863  ;;  %v3527_v50 = vpop.permute.xlu0 %861  ;;  %v1537_v51 = vsel %vm652_vm1, %v1534_v25, %v1533_v15  ;;  %v3593_v37 = vrot.slane %v387_v55, 1  ;;  %v5655_v25 = vrot.slane %v3549_v58, 1 }
 0x14f   : > { %5648 = vst [vmem:[#allocation54_spill] sm:$0xff] %v3525_v46  ;;  %5649 = vst [vmem:[#allocation55_spill] sm:$0xff] %v3527_v50  ;;  %v233_v50 = vstv %s2672_s17  ;;  %v1573_v55 = vrot.slane %v3579_v52, 2  ;;  %v5656_v29 = vrot.slane %v3556_v62, 1  ;;  %s3821_s17 = sld [smem:[#allocation2 + $0x49]] }
 0x150   : > { %1538 = vrot.lane.b32.xlu1 %v1532_v32, %s2995_s5  ;;  %1513 = vrot.lane.b32.xlu0 %v1508_v10, %s2994_s20  ;;  %v412_v32 = vmul.f32 0.0, %v411_v61  ;;  %v3575_v8 = vmul.f32 0.0, %v233_v50  ;;  %v3582_v61 = vmul.f32 %v233_v50, %v3185_v2 }
 0x152   : > { %v3551_v10 = vpop.permute.xlu1 %896  ;;  %v3553_v46 = vpop.permute.xlu0 %865 }
 0x153   : > { %5650 = vst [vmem:[#allocation56_spill] sm:$0xff] %v3551_v10  ;;  %5651 = vst [vmem:[#allocation57_spill] sm:$0xff] %v3553_v46  ;;  %v1566_v10 = vmul.f32 0.0, %v1564_v39  ;;  %v3573_v46 = vmul.f32 %v225_v33, %v3185_v2  ;;  %v3596_v39 = vrot.slane %v412_v32, 1  ;;  %v1603_v32 = vstv %s3541_s22  ;;  %s3926_s22 = sld [smem:[#allocation2 + $0x16]] }
 0x154   : > { %1542 = vrot.lane.b32.xlu1 %v1535_v42, %s2995_s5  ;;  %1540 = vrot.lane.b32.xlu0 %v1533_v15, %s2995_s5  ;;  %v3585_v42 = vmul.f32 %v233_v50, %v3182_v0  ;;  %v3613_v50 = vsel %vm393_vm0, %v5656_v29, %v5655_v25  ;;  %v5659_v25 = vrot.slane %v3567_v20, 1  ;;  %v3664_v20 = vrot.slane %v646_v3, 2 }
 0x155   : > { %v1572_v45 = vrot.slane %v1566_v10, 2  ;;  %v648_v10 = vmul.f32 %v645_v28, %v3182_v0  ;;  %v3644_v28 = vrot.slane %v436_v18, 1 }
 0x156   : > { %v3589_v38 = vpop.permute.xlu1 %900  ;;  %v3591_v33 = vpop.permute.xlu0 %898 }
 0x157   : > { %5653 = vst [vmem:[#allocation59_spill] sm:$0xff] %v3589_v38  ;;  %5654 = vst [vmem:[#allocation60_spill] sm:$0xff] %v3591_v33  ;;  %v1571_v38 = vrot.slane %v1565_v9, 2  ;;  %v671_v33 = vstv %s3538_s23  ;;  %s3914_s23 = sld [smem:[#allocation2 + $0x2f]] }
 0x158   : > { %1546 = vrot.lane.b32.xlu1 %v1537_v51, %s2995_s5  ;;  %1544 = vrot.lane.b32.xlu0 %v1533_v15, %s2995_s5  ;;  %v3616_v51 = vmul.f32 %v435_v44, %v3185_v2  ;;  %v3619_v15 = vmul.f32 %v435_v44, %v3182_v0  ;;  %v674_v29 = vmul.f32 %v671_v33, %v3182_v0  ;;  %v5660_v44 = vrot.slane %v3559_v23, 1 }
 0x159   : > { %v672_v56 = vmul.f32 0.0, %v671_v33  ;;  %v1604_v2 = vmul.f32 %v3318_v4, %v1603_v32  ;;  %5662 = vst [vmem:[#allocation64_spill] sm:$0xff] %v3644_v28  ;;  %v1574_v47 = vsel %vm652_vm1, %v1571_v38, %v1573_v55 }
 0x15a   : > { %v3622_v9 = vpop.permute.xlu1 %904  ;;  %v3624_v52 = vpop.permute.xlu0 %902  ;;  %v3638_v57 = vsel %vm393_vm0, %v5660_v44, %v5659_v25  ;;  %v3653_v25 = vmul.f32 %v3328_v11, %v1603_v32  ;;  %v656_v44 = vrot.slane %v648_v10, 2  ;;  %v1605_v10 = vmul.f32 0.0, %v1603_v32 }
 0x15b   : > { %5657 = vst [vmem:[#allocation61_spill] sm:$0xff] %v3622_v9  ;;  %5658 = vst [vmem:[#allocation62_spill] sm:$0xff] %v3624_v52  ;;  %v699_v9 = vmul.f32 %v696_v19, %v3182_v0  ;;  %v2848_v52 = vld [vmem:[%s3175_s10] sm:$0xff]  ;;  %v925_v0 = vstv %s3604_s28  ;;  %s3962_s28 = sld [smem:[#allocation2 + $0x4a]] }
 0x15c   : > { %5661 = vst [vmem:[#allocation63_spill] sm:$0xff] %v3638_v57  ;;  %1579 = vrot.lane.b32.xlu1 %v1572_v45, %s2995_s5  ;;  %1577 = vrot.lane.b32.xlu0 %v1571_v38, %s2995_s5  ;;  %v3647_v48 = vmul.f32 %v2848_v52, %v671_v33  ;;  %v3656_v41 = vmul.f32 %v2848_v52, %v696_v19  ;;  %v681_v38 = vrot.slane %v674_v29, 2  ;;  %v3666_v57 = vrot.slane %v672_v56, 2 }
 0x15d   : > { %v706_v28 = vrot.slane %v699_v9, 2  ;;  %v1610_v19 = vrot.slane %v1604_v2, 2  ;;  %v1576_v33 = vsel %vm652_vm1, %v1573_v55, %v1572_v45  ;;  %v1612_v3 = vrot.slane %v3653_v25, 2 }
 0x15e   : > { %v3658_v36 = vpop.permute.xlu1 %967  ;;  %v3660_v18 = vpop.permute.xlu0 %965  ;;  %v5520_v52 = vrot.slane %v3647_v48, 2  ;;  %v5665_v9 = vrot.slane %v3619_v15, 1  ;;  %v5666_v56 = vrot.slane %v3616_v51, 1  ;;  %v5521_v32 = vrot.slane %v3656_v41, 2 }
 0x15f   : > { %5663 = vst [vmem:[#allocation65_spill] sm:$0xff] %v3658_v36  ;;  %5664 = vst [vmem:[#allocation66_spill] sm:$0xff] %v3660_v18  ;;  %v3699_v25 = vsel %vm652_vm1, %v656_v44, %v3664_v20  ;;  %v947_v18 = vstv %s3649_s7  ;;  %s4018_s7 = sld [smem:[#allocation2 + $0x4c]] }
 0x160   : > { %1583 = vrot.lane.b32.xlu1 %v1572_v45, %s2995_s5  ;;  %1581 = vrot.lane.b32.xlu0 %v1574_v47, %s2995_s5  ;;  %v3681_v29 = vsel %vm393_vm0, %v5666_v56, %v5665_v9  ;;  %v3686_v47 = vsel %vm652_vm1, %v5516_v35, %v656_v44  ;;  %v3689_v45 = vrot.slane %v697_v40, 2  ;;  %v3703_v9 = vsel %vm652_vm1, %v681_v38, %v3666_v57 }
 0x161   : > { %v3708_v56 = vsel %vm652_vm1, %v5520_v52, %v681_v38  ;;  %v936_v40 = vstv %s3631_s6  ;;  %v3714_v35 = vsel %vm652_vm1, %v5521_v32, %v706_v28  ;;  %v3720_v44 = vmul.f32 0.0, %v925_v0  ;;  %s3988_s6 = sld [smem:[#allocation2 + $0x31]] }
 0x162   : > { %v3691_v55 = vpop.permute.xlu1 %988  ;;  %v3693_v2 = vpop.permute.xlu0 %969  ;;  %5669 = vst [vmem:[#allocation69_spill] sm:$0xff] %v3714_v35  ;;  %v3726_v38 = vmul.f32 %v3318_v4, %v925_v0  ;;  %v3729_v52 = vmul.f32 %v3328_v11, %v925_v0  ;;  %v1613_v32 = vsel %vm652_vm1, %v1610_v19, %v1612_v3  ;;  %v3736_v36 = vmul.f32 0.0, %v936_v40 }
 0x163   : > { %5667 = vst [vmem:[#allocation67_spill] sm:$0xff] %v3691_v55  ;;  %5668 = vst [vmem:[#allocation68_spill] sm:$0xff] %v3693_v2  ;;  %v3718_v2 = vsel %vm652_vm1, %v706_v28, %v3689_v45  ;;  %v1611_v55 = vrot.slane %v1605_v10, 2  ;;  %v257_v28 = vadd.f32 %v3296_v53, %v3533_v24  ;;  %v3744_v10 = vmul.f32 %v3318_v4, %v936_v40 }
 0x164   : > { %5670 = vst [vmem:[#allocation70_spill] sm:$0xff] %v3718_v2  ;;  %5671 = vst [vmem:[#allocation71_spill] sm:$0xff] %v3720_v44  ;;  %1616 = vrot.lane.b32.xlu1 %v1610_v19, %s2995_s5  ;;  %1585 = vrot.lane.b32.xlu0 %v1576_v33, %s2995_s5  ;;  %v3739_v44 = vmul.f32 %v3328_v11, %v936_v40  ;;  %v260_v19 = vadd.f32 %v3298_v54, %v3533_v24 }
 0x165   : > { %5672 = vst [vmem:[#allocation72_spill] sm:$0xff] %v3726_v38  ;;  %5673 = vst [vmem:[#allocation73_spill] sm:$0xff] %v3729_v52  ;;  %v261_v53 = vadd.f32 %v3298_v54, %v3536_v49  ;;  %v258_v40 = vadd.f32 %v3305_v60, %v3533_v24  ;;  %v3770_v54 = vadd.f32 %v3310_v63, %v3543_v43  ;;  %v3778_v24 = vld [vmem:[%s3175_s10 + $0x20] sm:$0xff]  ;;  %v1701_v52 = vstv %s3732_s11  ;;  %v3819_v38 = vld [vmem:[%s3175_s10 + $0x28] sm:$0xff]  ;;  %s4148_s11 = sld [smem:[#allocation2 + $0x45]] }
 0x166   : > { %5674 = vst [vmem:[#allocation74_spill] sm:$0xff] %v3736_v36  ;;  %5675 = vst [vmem:[#allocation75_spill] sm:$0xff] %v3739_v44  ;;  %v3741_v33 = vpop.permute.xlu1 %992  ;;  %v3746_v0 = vpop.permute.xlu0 %990  ;;  %v3753_v36 = vmul.f32 %v3318_v4, %v947_v18  ;;  %v3756_v44 = vmul.f32 %v3328_v11, %v947_v18  ;;  %v1615_v49 = vsel %vm652_vm1, %v1612_v3, %v1611_v55 }
 0x167   : > { %5676 = vst [vmem:[#allocation76_spill] sm:$0xff] %v3741_v33  ;;  %5677 = vst [vmem:[#allocation77_spill] sm:$0xff] %v3744_v10  ;;  %v279_v33 = vadd.f32 %v3303_v59, %v3543_v43  ;;  %v3764_v10 = vmul.f32 0.0, %v947_v18  ;;  %v3774_v59 = vadd.f32 %v3310_v63, %v3564_v14  ;;  %v3787_v18 = vadd.f32 %v3320_v6, %v3575_v8 }
 0x168   : > { %5678 = vst [vmem:[#allocation78_spill] sm:$0xff] %v3746_v0  ;;  %5679 = vst [vmem:[#allocation79_spill] sm:$0xff] %v3753_v36  ;;  %v259_v0 = vadd.f32 %v3305_v60, %v3546_v34  ;;  %1620 = vrot.lane.b32.xlu1 %v1613_v32, %s2995_s5  ;;  %1618 = vrot.lane.b32.xlu0 %v1611_v55, %s2995_s5  ;;  %v280_v60 = vadd.f32 %v3312_v1, %v3543_v43  ;;  %v1108_v14 = vstv %s3695_s9  ;;  %s4075_s9 = sld [smem:[#allocation2 + $0x17]] }
 0x169   : > { %5680 = vst [vmem:[#allocation80_spill] sm:$0xff] %v3756_v44  ;;  %5681 = vst [vmem:[#allocation81_spill] sm:$0xff] %v3764_v10  ;;  %v1678_v44 = vstv %s3674_s8  ;;  %v281_v34 = vadd.f32 %v3312_v1, %v3573_v46  ;;  %v3798_v3 = vadd.f32 %v3320_v6, %v3582_v61  ;;  %v322_v1 = vsel %vm320_vm2, %v3337_v16, %v3330_v12  ;;  %s4058_s8 = sld [smem:[#allocation2 + $0x2a]] }
 0x16a   : > { %v3789_v32 = vpop.permute.xlu1 %1013  ;;  %v3791_v63 = vpop.permute.xlu0 %1011  ;;  %v321_v46 = vsel %vm320_vm2, %v3339_v17, %v3330_v12  ;;  %v3807_v43 = vmul.f32 %v3328_v11, %v1108_v14  ;;  %v1680_v6 = vmul.f32 %v3778_v24, %v1678_v44  ;;  %v1679_v61 = vmul.f32 0.0, %v1678_v44 }
 0x16b   : > { %5682 = vst [vmem:[#allocation82_spill] sm:$0xff] %v3789_v32  ;;  %5683 = vst [vmem:[#allocation83_spill] sm:$0xff] %v3791_v63  ;;  %v301_v63 = vadd.f32 %v3322_v7, %v3575_v8  ;;  %v328_v32 = vadd.f32 %v3330_v12, %v257_v28  ;;  %v331_v36 = vadd.f32 %v3337_v16, %v260_v19 }
 0x16c   : > { %5684 = vst [vmem:[#allocation84_spill] sm:$0xff] %v3807_v43  ;;  %1624 = vrot.lane.b32.xlu1 %v1615_v49, %s2995_s5  ;;  %1622 = vrot.lane.b32.xlu0 %v1611_v55, %s2995_s5  ;;  %v329_v10 = vadd.f32 %v3339_v17, %v258_v40  ;;  %v3824_v7 = vmul.f32 %v3318_v4, %v1108_v14  ;;  %v5530_v35 = vrot.slane %v3807_v43, 1  ;;  %v1747_v43 = vstv %s3858_s29  ;;  %s4340_s29 = sld [smem:[#allocation2 + $0x34]] }
 0x16d   : > { %v304_v12 = vadd.f32 %v3332_v13, %v3575_v8  ;;  %v305_v55 = vadd.f32 %v3332_v13, %v3585_v42  ;;  %v332_v28 = vadd.f32 %v322_v1, %v261_v53  ;;  %v330_v49 = vadd.f32 %v321_v46, %v259_v0 }
 0x16e   : > { %5685 = vst [vmem:[#allocation85_spill] sm:$0xff] %v3824_v7  ;;  %v3830_v2 = vpop.permute.xlu1 %1034  ;;  %v3832_v16 = vpop.permute.xlu0 %1015  ;;  %v355_v17 = vadd.f32 %v3345_v21, %v280_v60  ;;  %v347_v19 = vsel %vm320_vm2, %v3345_v21, %v3347_v22  ;;  %v354_v40 = vadd.f32 %v3347_v22, %v279_v33  ;;  %v3843_v13 = vadd.f32 %v3593_v37, %v328_v32 }
 0x16f   : > { %v1702_v8 = vmul.f32 0.0, %v1701_v52  ;;  %v1681_v42 = vmul.f32 %v3819_v38, %v1678_v44  ;;  %v1109_v0 = vmul.f32 0.0, %v1108_v14  ;;  %v3849_v21 = vadd.f32 %v3593_v37, %v329_v10 }
 0x170   : > { %1687 = vrot.lane.b32.xlu1 %v1680_v6, %s2994_s20  ;;  %1685 = vrot.lane.b32.xlu0 %v1679_v61, %s2994_s20  ;;  %v5686_v33 = vrot.slane %v3556_v62, 1  ;;  %v3856_v60 = vadd.f32 %v3593_v37, %v331_v36  ;;  %v5531_v1 = vrot.slane %v3824_v7, 1  ;;  %v356_v46 = vadd.f32 %v347_v19, %v281_v34 }
 0x171   : > { %v407_v6 = vadd.f32 %v3613_v50, %v330_v49  ;;  %v5687_v44 = vrot.slane %v3549_v58, 1  ;;  %v3872_v36 = vadd.f32 %v3596_v39, %v354_v40  ;;  %v5688_v37 = vrot.slane %v3559_v23, 1 }
 0x172   : > { %v3853_v53 = vadd.f32 %v5686_v33, %v328_v32  ;;  %v3866_v10 = vpop.permute.xlu1 %1038  ;;  %v3868_v62 = vpop.permute.xlu0 %1036  ;;  %v1132_v32 = vstv %s3794_s4  ;;  %v3879_v34 = vadd.f32 %v3596_v39, %v355_v17  ;;  %v3886_v58 = vsel %vm393_vm0, %v5531_v1, %v5530_v35  ;;  %s4167_s4 = sld [smem:[#allocation2 + $0x32]] }
 0x173   : > { %v3864_v14 = vadd.f32 %v5687_v44, %v332_v28  ;;  %v3876_v61 = vadd.f32 %v5688_v37, %v354_v40  ;;  %5689 = vst [vmem:[#allocation86_spill] sm:$0xff] %v3886_v58  ;;  %v348_v50 = vsel %vm320_vm2, %v3354_v27, %v3347_v22  ;;  %v1704_v23 = vmul.f32 %v3819_v38, %v1701_v52  ;;  %v5728_v58 = vld [vmem:[#allocation26_spill] sm:$0xff] }
 0x174   : > { %1708 = vrot.lane.b32.xlu1 %v1702_v8, %s2994_s20  ;;  %1689 = vrot.lane.b32.xlu0 %v1681_v42, %s2994_s20  ;;  %v1703_v28 = vmul.f32 %v3778_v24, %v1701_v52  ;;  %v3895_v49 = vrot.slane %v1109_v0, 1  ;;  %v380_v17 = vadd.f32 %v3352_v26, %v301_v63  ;;  %v373_v19 = vsel %vm320_vm2, %v3361_v31, %v3352_v26 }
 0x175   : > { %v1724_v40 = vstv %s3821_s17  ;;  %v1133_v33 = vmul.f32 0.0, %v1132_v32  ;;  %v357_v22 = vadd.f32 %v3354_v27, %v3770_v54  ;;  %v374_v8 = vsel %vm320_vm2, %v3359_v30, %v3352_v26  ;;  %v5694_v54 = vld [vmem:[#allocation63_spill] sm:$0xff]  ;;  %s4249_s17 = sld [smem:[#allocation2 + $0x4d]] }
 0x176   : > { %v3907_v42 = vpop.permute.xlu1 %1063  ;;  %v3909_v52 = vpop.permute.xlu0 %1061  ;;  %v3912_v63 = vmul.f32 %v3318_v4, %v1132_v32  ;;  %v3917_v0 = vmul.f32 %v3328_v11, %v1132_v32  ;;  %v358_v44 = vadd.f32 %v348_v50, %v3774_v59  ;;  %v381_v27 = vadd.f32 %v3361_v31, %v3787_v18 }
 0x177   : > { %5690 = vst [vmem:[#allocation87_spill] sm:$0xff] %v3907_v42  ;;  %5691 = vst [vmem:[#allocation88_spill] sm:$0xff] %v3909_v52  ;;  %v3923_v26 = vadd.f32 %v5694_v54, %v356_v46  ;;  %v1156_v37 = vstv %s3840_s30  ;;  %v383_v35 = vadd.f32 %v3359_v30, %v304_v12  ;;  %v382_v1 = vadd.f32 %v373_v19, %v3798_v3  ;;  %v5697_v54 = vld [vmem:[#allocation64_spill] sm:$0xff]  ;;  %v5700_v19 = vld [vmem:[#allocation58_spill] sm:$0xff]  ;;  %s4269_s30 = sld [smem:[#allocation2 + $0x19]] }
 0x178   : > { %5692 = vst [vmem:[#allocation89_spill] sm:$0xff] %v3912_v63  ;;  %5693 = vst [vmem:[#allocation90_spill] sm:$0xff] %v3917_v0  ;;  %1712 = vrot.lane.b32.xlu1 %v1704_v23, %s2994_s20  ;;  %1710 = vrot.lane.b32.xlu0 %v1703_v28, %s2994_s20  ;;  %v1726_v32 = vmul.f32 %v3778_v24, %v1724_v40  ;;  %v1725_v59 = vmul.f32 0.0, %v1724_v40  ;;  %v384_v50 = vadd.f32 %v374_v8, %v305_v55  ;;  %v5737_v42 = vld [vmem:[#allocation29_spill] sm:$0xff] }
 0x179   : > { %v3934_v31 = vrot.slane %v1133_v33, 1  ;;  %v3937_v18 = vmul.f32 %v3328_v11, %v1156_v37  ;;  %v432_v46 = vadd.f32 %v3596_v39, %v357_v22  ;;  %v452_v30 = vadd.f32 %v5697_v54, %v380_v17 }
 0x17a   : > { %v3941_v12 = vpop.permute.xlu1 %1088  ;;  %v3943_v3 = vpop.permute.xlu0 %1065  ;;  %v5534_v28 = vrot.slane %v3917_v0, 1  ;;  %v5701_v55 = vrot.slane %v5700_v19, 1  ;;  %v454_v33 = vadd.f32 %v5697_v54, %v381_v27  ;;  %v5702_v11 = vrot.slane %v3616_v51, 1 }
 0x17b   : > { %5695 = vst [vmem:[#allocation63_spill] sm:$0xff] %v3934_v31  ;;  %5696 = vst [vmem:[#allocation91_spill] sm:$0xff] %v3937_v18  ;;  %v3953_v39 = vmul.f32 %v3318_v4, %v1156_v37  ;;  %v455_v22 = vadd.f32 %v3681_v29, %v382_v1  ;;  %v456_v23 = vadd.f32 %v5697_v54, %v383_v35  ;;  %v5704_v4 = vld [vmem:[#allocation14_spill] sm:$0xff]  ;;  %v5705_v29 = vrot.slane %v3619_v15, 1 }
 0x17c   : > { %5698 = vst [vmem:[#allocation64_spill] sm:$0xff] %v3941_v12  ;;  %5699 = vst [vmem:[#allocation92_spill] sm:$0xff] %v3943_v3  ;;  %v433_v8 = vadd.f32 %v5701_v55, %v358_v44  ;;  %v453_v31 = vadd.f32 %v5702_v11, %v380_v17  ;;  %1733 = vrot.lane.b32.xlu1 %v1726_v32, %s2994_s20  ;;  %1731 = vrot.lane.b32.xlu0 %v1725_v59, %s2994_s20  ;;  %v1748_v44 = vmul.f32 0.0, %v1747_v43  ;;  %v5706_v32 = vld [vmem:[#allocation15_spill] sm:$0xff]  ;;  %v5711_v11 = vld [vmem:[#allocation16_spill] sm:$0xff] }
 0x17d   : > { %5703 = vst [vmem:[#allocation58_spill] sm:$0xff] %v3953_v39  ;;  %v1727_v27 = vmul.f32 %v3819_v38, %v1724_v40  ;;  %v478_v51 = vadd.f32 %v5704_v4, %v3849_v21  ;;  %v3967_v17 = vadd.f32 %v5704_v4, %v407_v6  ;;  %v457_v1 = vadd.f32 %v5705_v29, %v384_v50  ;;  %v4119_v12 = vld [vmem:[%s3175_s10 + $0x18] sm:$0xff] }
 0x17e   : > { %v5536_v35 = vrot.slane %v3937_v18, 1  ;;  %v476_v59 = vadd.f32 %v5706_v32, %v3843_v13  ;;  %v477_v40 = vadd.f32 %v5706_v32, %v3853_v53  ;;  %v3976_v54 = vpop.permute.xlu1 %1092  ;;  %v3978_v19 = vpop.permute.xlu0 %1090  ;;  %v1774_v55 = vstv %s3914_s23  ;;  %v5712_v32 = vld [vmem:[#allocation17_spill] sm:$0xff]  ;;  %s4383_s23 = sld [smem:[#allocation2 + $0x4f]] }
 0x17f   : > { %5707 = vst [vmem:[#allocation14_spill] sm:$0xff] %v3976_v54  ;;  %5708 = vst [vmem:[#allocation15_spill] sm:$0xff] %v3978_v19  ;;  %v5709_v21 = vrot.slane %v3912_v63, 1  ;;  %v1750_v6 = vmul.f32 %v3819_v38, %v1747_v43  ;;  %v1749_v13 = vmul.f32 %v3778_v24, %v1747_v43  ;;  %v1900_v50 = vstv %s3926_s22  ;;  %v5727_v63 = vld [vmem:[#allocation24_spill] sm:$0xff]  ;;  %v5729_v19 = vld [vmem:[#allocation27_spill] sm:$0xff]  ;;  %s4399_s22 = sld [smem:[#allocation2 + $0x12]] }
 0x180   : > { %v3996_v4 = vadd.f32 %v5711_v11, %v3872_v36  ;;  %v4000_v29 = vadd.f32 %v5711_v11, %v3876_v61  ;;  %1754 = vrot.lane.b32.xlu1 %v1748_v44, %s2995_s5  ;;  %1735 = vrot.lane.b32.xlu0 %v1727_v27, %s2994_s20  ;;  %v4006_v43 = vmul.f32 0.0, %v1156_v37  ;;  %v1776_v36 = vmul.f32 %v3778_v24, %v1774_v55 }
 0x181   : > { %v3986_v15 = vsel %vm393_vm0, %v5709_v21, %v5534_v28  ;;  %v480_v21 = vadd.f32 %v5712_v32, %v3856_v60  ;;  %v481_v28 = vadd.f32 %v5712_v32, %v3864_v14  ;;  %v1775_v53 = vmul.f32 0.0, %v1774_v55  ;;  %v5716_v60 = vld [vmem:[#allocation18_spill] sm:$0xff] }
 0x182   : > { %5710 = vst [vmem:[#allocation93_spill] sm:$0xff] %v3986_v15  ;;  %5713 = vst [vmem:[#allocation16_spill] sm:$0xff] %v4006_v43  ;;  %v5714_v61 = vrot.slane %v3953_v39, 1  ;;  %v4021_v44 = vadd.f32 %v5716_v60, %v432_v46  ;;  %v4024_v37 = vadd.f32 %v5716_v60, %v433_v8  ;;  %v4026_v14 = vpop.permute.xlu1 %1190  ;;  %v4028_v27 = vpop.permute.xlu0 %1188  ;;  %v4031_v32 = vmul.f32 %v3778_v24, %v1900_v50 }
 0x183   : > { %5717 = vst [vmem:[#allocation18_spill] sm:$0xff] %v4026_v14  ;;  %5718 = vst [vmem:[#allocation94_spill] sm:$0xff] %v4028_v27  ;;  %v4034_v18 = vmul.f32 %v3819_v38, %v1900_v50  ;;  %v1777_v8 = vmul.f32 %v3819_v38, %v1774_v55  ;;  %v1366_v60 = vstv %s3955_s27  ;;  %v5721_v50 = vld [vmem:[#allocation21_spill] sm:$0xff]  ;;  %v5722_v55 = vld [vmem:[#allocation22_spill] sm:$0xff]  ;;  %v1924_v15 = vstv %s3988_s6  ;;  %s4444_s27 = sld [smem:[#allocation2 + $0x1a]]  ;;  %s4548_s6 = sld [smem:[#allocation2 + $0x35]] }
 0x184   : > { %v4016_v11 = vsel %vm393_vm0, %v5714_v61, %v5536_v35  ;;  %v5719_v61 = vld [vmem:[#allocation19_spill] sm:$0xff]  ;;  %v4053_v39 = vadd.f32 %v5721_v50, %v452_v30  ;;  %1758 = vrot.lane.b32.xlu1 %v1750_v6, %s2995_s5  ;;  %1756 = vrot.lane.b32.xlu0 %v1749_v13, %s2995_s5  ;;  %v554_v54 = vsel %vm320_vm2, %v5727_v63, %v5729_v19 }
 0x185   : > { %5715 = vst [vmem:[#allocation17_spill] sm:$0xff] %v4016_v11  ;;  %v4038_v35 = vadd.f32 %v5719_v61, %v3879_v34  ;;  %v4042_v46 = vadd.f32 %v5719_v61, %v3923_v26  ;;  %v5720_v11 = vld [vmem:[#allocation20_spill] sm:$0xff]  ;;  %v1801_v34 = vstv %s3962_s28  ;;  %v4061_v26 = vadd.f32 %v5721_v50, %v453_v31  ;;  %s4500_s28 = sld [smem:[#allocation2 + $0x2d]] }
 0x186   : > { %v4047_v27 = vadd.f32 %v5720_v11, %v454_v33  ;;  %v4050_v14 = vadd.f32 %v5720_v11, %v455_v22  ;;  %v562_v61 = vadd.f32 %v5722_v55, %v476_v59  ;;  %v5723_v33 = vld [vmem:[#allocation25_spill] sm:$0xff]  ;;  %v1804_v11 = vmul.f32 %v3819_v38, %v1801_v34  ;;  %v4068_v30 = vpop.permute.xlu1 %1212  ;;  %v4070_v0 = vpop.permute.xlu0 %1192  ;;  %v5726_v59 = vld [vmem:[#allocation23_spill] sm:$0xff] }
 0x187   : > { %v553_v22 = vsel %vm320_vm2, %v5722_v55, %v5723_v33  ;;  %5724 = vst [vmem:[#allocation19_spill] sm:$0xff] %v4068_v30  ;;  %5725 = vst [vmem:[#allocation20_spill] sm:$0xff] %v4070_v0  ;;  %v1367_v31 = vmul.f32 0.0, %v1366_v60  ;;  %v4078_v50 = vadd.f32 %v5726_v59, %v456_v23  ;;  %v4081_v55 = vadd.f32 %v5726_v59, %v457_v1 }
 0x188   : > { %v564_v30 = vadd.f32 %v5727_v63, %v478_v51  ;;  %v1803_v0 = vmul.f32 %v3778_v24, %v1801_v34  ;;  %v563_v6 = vadd.f32 %v553_v22, %v477_v40  ;;  %v555_v13 = vsel %vm320_vm2, %v5728_v58, %v5723_v33  ;;  %1783 = vrot.lane.b32.xlu1 %v1776_v36, %s2995_s5  ;;  %v4097_v51 = vld [vmem:[%s3175_s10 + $0x10] sm:$0xff] }
 0x189   : > { %1781 = vrot.lane.b32.xlu0 %v1775_v53, %s2995_s5  ;;  %v1802_v23 = vmul.f32 0.0, %v1801_v34  ;;  %v4094_v1 = vmul.f32 %v3778_v24, %v1924_v15  ;;  %v4100_v40 = vmul.f32 %v4097_v51, %v1366_v60  ;;  %v4103_v22 = vmul.f32 %v3819_v38, %v1924_v15 }
 0x18a   : > { %v1948_v33 = vstv %s4018_s7  ;;  %v4107_v59 = vadd.f32 %v3664_v20, %v562_v61  ;;  %v4109_v63 = vpop.permute.xlu1 %1216  ;;  %v4111_v19 = vpop.permute.xlu0 %1214  ;;  %v5733_v53 = vrot.slane %v4034_v18, 1  ;;  %v5734_v36 = vrot.slane %v4031_v32, 1  ;;  %s4573_s7 = sld [smem:[#allocation2 + $0x48]] }
 0x18b   : > { %5730 = vst [vmem:[#allocation21_spill] sm:$0xff] %v4100_v40  ;;  %5731 = vst [vmem:[#allocation22_spill] sm:$0xff] %v4109_v63  ;;  %v1369_v15 = vmul.f32 %v4119_v12, %v1366_v60  ;;  %v4122_v3 = vrot.slane %v1367_v31, 2  ;;  %v566_v61 = vadd.f32 %v5728_v58, %v480_v21  ;;  %v567_v7 = vadd.f32 %v555_v13, %v481_v28  ;;  %v5739_v31 = vld [vmem:[#allocation30_spill] sm:$0xff] }
 0x18c   : > { %5732 = vst [vmem:[#allocation25_spill] sm:$0xff] %v4111_v19  ;;  %v1907_v34 = vsel %vm393_vm0, %v5734_v36, %v5733_v53  ;;  %v565_v43 = vadd.f32 %v554_v54, %v3967_v17  ;;  %v4127_v63 = vadd.f32 %v3664_v20, %v564_v30  ;;  %v5736_v19 = vld [vmem:[#allocation28_spill] sm:$0xff]  ;;  %1808 = vrot.lane.b32.xlu1 %v1802_v23, %s2995_s5  ;;  %v1391_v28 = vstv %s4058_s8  ;;  %v5740_v23 = vld [vmem:[#allocation31_spill] sm:$0xff]  ;;  %s4598_s8 = sld [smem:[#allocation2 + $0x50]] }
 0x18d   : > { %5735 = vst [vmem:[#allocation23_spill] sm:$0xff] %v4122_v3  ;;  %v591_v52 = vsel %vm320_vm2, %v5737_v42, %v5736_v19  ;;  %1785 = vrot.lane.b32.xlu0 %v1777_v8, %s2995_s5  ;;  %v4135_v60 = vmul.f32 %v3778_v24, %v1948_v33  ;;  %v4138_v58 = vmul.f32 %v3819_v38, %v1948_v33  ;;  %v5738_v17 = vrot.slane %v3627_v5, 2 }
 0x18e   : > { %v1929_v21 = vrot.slane %v4094_v1, 1  ;;  %v5553_v13 = vrot.slane %v4103_v22, 1  ;;  %v600_v8 = vadd.f32 %v5737_v42, %v3996_v4  ;;  %v592_v33 = vsel %vm320_vm2, %v5740_v23, %v5739_v31  ;;  %v4155_v53 = vpop.permute.xlu1 %1238  ;;  %v4157_v5 = vpop.permute.xlu0 %1236 }
 0x18f   : > { %v4143_v54 = vadd.f32 %v5738_v17, %v563_v6  ;;  %5741 = vst [vmem:[#allocation24_spill] sm:$0xff] %v4155_v53  ;;  %5742 = vst [vmem:[#allocation26_spill] sm:$0xff] %v4157_v5  ;;  %v1376_v6 = vrot.slane %v1369_v15, 2  ;;  %v1972_v36 = vstv %s4075_s9  ;;  %v4161_v1 = vadd.f32 %v3686_v47, %v565_v43  ;;  %v5751_v47 = vld [vmem:[#allocation32_spill] sm:$0xff]  ;;  %s5066_s9 = sld [smem:[#allocation2 + $0x15]] }
 0x190   : > { %v601_v17 = vadd.f32 %v591_v52, %v4000_v29  ;;  %v4165_v30 = vadd.f32 %v3664_v20, %v566_v61  ;;  %v1392_v42 = vmul.f32 0.0, %v1391_v28  ;;  %v4170_v4 = vadd.f32 %v3699_v25, %v567_v7  ;;  %1812 = vrot.lane.b32.xlu1 %v1804_v11, %s2995_s5 }
 0x191   : > { %1810 = vrot.lane.b32.xlu0 %v1803_v0, %s2995_s5  ;;  %v4177_v43 = vmul.f32 %v4097_v51, %v1391_v28  ;;  %v602_v20 = vadd.f32 %v5740_v23, %v4038_v35  ;;  %v603_v52 = vadd.f32 %v592_v33, %v4042_v46  ;;  %v1931_v25 = vsel %vm393_vm0, %v1929_v21, %v5553_v13  ;;  %v5748_v23 = vld [vmem:[#allocation33_spill] sm:$0xff] }
 0x192   : > { %v4186_v7 = vmul.f32 %v3778_v24, %v1972_v36  ;;  %v4189_v0 = vadd.f32 %v3666_v57, %v600_v8  ;;  %v4191_v29 = vpop.permute.xlu1 %1264  ;;  %v4193_v11 = vpop.permute.xlu0 %1240  ;;  %v5745_v61 = vrot.slane %v4100_v40, 2  ;;  %v4202_v46 = vsel %vm652_vm1, %v1376_v6, %v4122_v3 }
 0x193   : > { %5743 = vst [vmem:[#allocation27_spill] sm:$0xff] %v4177_v43  ;;  %5744 = vst [vmem:[#allocation28_spill] sm:$0xff] %v4193_v11  ;;  %v1394_v31 = vmul.f32 %v4119_v12, %v1391_v28  ;;  %v593_v8 = vsel %vm320_vm2, %v5748_v23, %v5736_v19  ;;  %v5749_v33 = vrot.slane %v3647_v48, 2  ;;  %v4213_v15 = vmul.f32 %v3819_v38, %v1972_v36 }
 0x194   : > { %v4198_v35 = vsel %vm652_vm1, %v5745_v61, %v1376_v6  ;;  %5747 = vst [vmem:[#allocation30_spill] sm:$0xff] %v4202_v46  ;;  %v4215_v61 = vrot.slane %v1392_v42, 2  ;;  %v604_v6 = vadd.f32 %v5748_v23, %v4021_v44  ;;  %1910 = vrot.lane.b32.xlu1 %v1907_v34, %s2994_s20  ;;  %v5752_v19 = vrot.slane %v4031_v32, 1  ;;  %v5757_v42 = vld [vmem:[#allocation37_spill] sm:$0xff]  ;;  %v5758_v34 = vld [vmem:[#allocation34_spill] sm:$0xff] }
 0x195   : > { %5746 = vst [vmem:[#allocation29_spill] sm:$0xff] %v4198_v35  ;;  %v4210_v13 = vadd.f32 %v5749_v33, %v601_v17  ;;  %v638_v35 = vadd.f32 %v5751_v47, %v4053_v39  ;;  %v5753_v48 = vrot.slane %v4138_v58, 1  ;;  %v5754_v28 = vrot.slane %v4135_v60, 1  ;;  %v5755_v33 = vld [vmem:[#allocation35_spill] sm:$0xff] }
 0x196   : > { %5750 = vst [vmem:[#allocation31_spill] sm:$0xff] %v4215_v61  ;;  %1908 = vrot.lane.b32.xlu0 %v5752_v19, %s2994_s20  ;;  %v4232_v39 = vadd.f32 %v3666_v57, %v602_v20  ;;  %v4235_v44 = vadd.f32 %v3708_v56, %v603_v52  ;;  %v1416_v23 = vstv %s4148_s11  ;;  %v605_v32 = vadd.f32 %v593_v8, %v4024_v37  ;;  %v4243_v46 = vpop.permute.xlu1 %1268  ;;  %v5756_v56 = vld [vmem:[#allocation36_spill] sm:$0xff]  ;;  %s5096_s11 = sld [smem:[#allocation2 + $0x30]] }
 0x197   : > { %v1955_v17 = vsel %vm393_vm0, %v5754_v28, %v5753_v48  ;;  %v629_v19 = vsel %vm320_vm2, %v5751_v47, %v5755_v33  ;;  %v4245_v48 = vpop.permute.xlu0 %1266  ;;  %v4247_v28 = vmul.f32 0.0, %v1972_v36  ;;  %v1401_v20 = vrot.slane %v1394_v31, 2 }
 0x198   : > { %v631_v52 = vsel %vm320_vm2, %v5756_v56, %v5755_v33  ;;  %v630_v37 = vsel %vm320_vm2, %v5758_v34, %v5757_v42  ;;  %v2010_v47 = vstv %s4167_s4  ;;  %v640_v40 = vadd.f32 %v5758_v34, %v4047_v27  ;;  %1932 = vrot.lane.b32.xlu1 %v1929_v21, %s2994_s20  ;;  %s2361_s4 = sld [smem:[#allocation7]] }
 0x199   : > { %v693_v36 = vadd.f32 %v3666_v57, %v604_v6  ;;  %v4263_v3 = vadd.f32 %v3689_v45, %v638_v35  ;;  %v5759_v31 = vrot.slane %v4034_v18, 1  ;;  %v1417_v33 = vmul.f32 0.0, %v1416_v23 }
 0x19a   : > { %v639_v42 = vadd.f32 %v629_v19, %v4061_v26  ;;  %v642_v8 = vadd.f32 %v5756_v56, %v4078_v50  ;;  %v4275_v27 = vmul.f32 %v4097_v51, %v1416_v23  ;;  %v1419_v57 = vmul.f32 %v4119_v12, %v1416_v23  ;;  %v4281_v6 = vpop.permute.xlu1 %1272 }
 0x19b   : > { %1912 = vrot.lane.b32.xlu0 %v5759_v31, %s2994_s20  ;;  %v643_v35 = vadd.f32 %v631_v52, %v4081_v55  ;;  %v641_v21 = vadd.f32 %v630_v37, %v4050_v14  ;;  %v694_v18 = vadd.f32 %v3703_v9, %v605_v32  ;;  %5761 = vst [vmem:[#allocation32_spill] sm:$0xff] %v4281_v6  ;;  %v4283_v34 = vpop.permute.xlu0 %1270  ;;  %v4285_v31 = vmul.f32 0.0, %v2010_v47 }
 0x19c   : > { %5760 = vst [vmem:[#allocation33_spill] sm:$0xff] %v4275_v27  ;;  %5762 = vst [vmem:[#allocation35_spill] sm:$0xff] %v4283_v34  ;;  %v5763_v26 = vrot.slane %v4213_v15, 1  ;;  %v5764_v50 = vrot.slane %v4186_v7, 1  ;;  %v4296_v55 = vmul.f32 %v3819_v38, %v2010_v47  ;;  %v5765_v9 = vrot.slane %v4177_v43, 2 }
 0x19d   : > { %v716_v23 = vadd.f32 %v3689_v45, %v640_v40  ;;  %v5767_v32 = vrot.slane %v4103_v22, 1  ;;  %v4309_v19 = vmul.f32 %v3778_v24, %v2010_v47  ;;  %v4313_v56 = vsel %vm652_vm1, %v1401_v20, %v4215_v61  ;;  %v5801_v61 = vld [vmem:[#allocation47_spill] sm:$0xff] }
 0x19e   : > { %v4292_v51 = vsel %vm393_vm0, %v5764_v50, %v5763_v26  ;;  %v4301_v14 = vsel %vm652_vm1, %v5765_v9, %v1401_v20  ;;  %5768 = vst [vmem:[#allocation37_spill] sm:$0xff] %v4313_v56  ;;  %v4315_v52 = vrot.slane %v1417_v33, 2  ;;  %v5770_v37 = vrot.slane %v3656_v41, 2  ;;  %v5771_v9 = vld [vmem:[#allocation69_spill] sm:$0xff]  ;;  %v4325_v12 = vpop.permute.xlu1 %1304  ;;  %v5775_v41 = vld [vmem:[#allocation38_spill] sm:$0xff] }
 0x19f   : > { %5766 = vst [vmem:[#allocation36_spill] sm:$0xff] %v4301_v14  ;;  %1936 = vrot.lane.b32.xlu1 %v5767_v32, %s2994_s20  ;;  %1934 = vrot.lane.b32.xlu0 %v1931_v25, %s2994_s20  ;;  %v4320_v40 = vadd.f32 %v3689_v45, %v642_v8  ;;  %v5557_v22 = vrot.slane %v4275_v27, 2  ;;  %v1426_v50 = vrot.slane %v1419_v57, 2  ;;  %v717_v25 = vadd.f32 %v5771_v9, %v641_v21  ;;  %v5772_v32 = vld [vmem:[#allocation70_spill] sm:$0xff]  ;;  %v4327_v20 = vpop.permute.xlu0 %1302  ;;  %v5776_v8 = vld [vmem:[#allocation39_spill] sm:$0xff] }
 0x1a0   : > { %5769 = vst [vmem:[#allocation34_spill] sm:$0xff] %v4315_v52  ;;  %v715_v26 = vadd.f32 %v5770_v37, %v639_v42  ;;  %v719_v47 = vadd.f32 %v5772_v32, %v643_v35  ;;  %5773 = vst [vmem:[#allocation69_spill] sm:$0xff] %v4325_v12  ;;  %v2048_v56 = vstv %s4249_s17  ;;  %v744_v42 = vadd.f32 %v5775_v41, %v4127_v63  ;;  %s2748_s17 = sld [smem:[#allocation2 + $0x4e]] }
 0x1a1   : > { %5774 = vst [vmem:[#allocation70_spill] sm:$0xff] %v4327_v20  ;;  %v4335_v45 = vadd.f32 %v5775_v41, %v4161_v1  ;;  %v742_v57 = vadd.f32 %v5776_v8, %v4107_v59  ;;  %v743_v35 = vadd.f32 %v5776_v8, %v4143_v54  ;;  %v5777_v37 = vrot.slane %v4135_v60, 1 }
 0x1a2   : > { %v4350_v1 = vmul.f32 %v3819_v38, %v2048_v56  ;;  %v2161_v9 = vstv %s4269_s30  ;;  %v4356_v59 = vsel %vm652_vm1, %v5557_v22, %v1426_v50  ;;  %v4359_v32 = vmul.f32 %v3778_v24, %v2048_v56  ;;  %s5295_s30 = sld [smem:[#allocation7 + $0x1]] }
 0x1a3   : > { %1958 = vrot.lane.b32.xlu1 %v1955_v17, %s2994_s20  ;;  %1956 = vrot.lane.b32.xlu0 %v5777_v37, %s2994_s20  ;;  %5778 = vst [vmem:[#allocation38_spill] sm:$0xff] %v4356_v59  ;;  %v4361_v54 = vmul.f32 0.0, %v2048_v56  ;;  %v4365_v60 = vsel %vm652_vm1, %v1426_v50, %v4315_v52  ;;  %v5780_v17 = vld [vmem:[#allocation40_spill] sm:$0xff]  ;;  %v5781_v37 = vld [vmem:[#allocation41_spill] sm:$0xff]  ;;  %v4379_v56 = vpop.permute.xlu1 %1308  ;;  %v4381_v63 = vpop.permute.xlu0 %1306  ;;  %v5784_v50 = vld [vmem:[#allocation42_spill] sm:$0xff]  ;;  %v2164_v14 = vmul.f32 0.0, %v2161_v9  ;;  %v2189_v43 = vstv %s4340_s29 }
 0x1a4   : > { %5779 = vst [vmem:[#allocation39_spill] sm:$0xff] %v4365_v60  ;;  %v4369_v41 = vadd.f32 %v5780_v17, %v4189_v0  ;;  %v4373_v8 = vadd.f32 %v5780_v17, %v4210_v13  ;;  %v746_v22 = vadd.f32 %v5781_v37, %v4165_v30  ;;  %v747_v33 = vadd.f32 %v5781_v37, %v4170_v4  ;;  %s2996_s29 = smov 1  }
 0x1a5   : > { %5782 = vst [vmem:[#allocation40_spill] sm:$0xff] %v4379_v56  ;;  %5783 = vst [vmem:[#allocation41_spill] sm:$0xff] %v4381_v63  ;;  %v4386_v21 = vadd.f32 %v5784_v50, %v693_v36  ;;  %v5785_v0 = vrot.slane %v4296_v55, 1  ;;  %v5786_v13 = vrot.slane %v4309_v19, 1  ;;  %v4396_v30 = vmul.f32 %v3778_v24, %v2161_v9  ;;  %v5787_v36 = vld [vmem:[#allocation43_spill] sm:$0xff] }
 0x1a6   : > { %v2163_v4 = vmul.f32 %v3819_v38, %v2161_v9  ;;  %v4402_v37 = vadd.f32 %v5784_v50, %v694_v18  ;;  %v4406_v60 = vadd.f32 %v5787_v36, %v4232_v39  ;;  %v4410_v27 = vadd.f32 %v5787_v36, %v4235_v44  ;;  %v5790_v50 = vld [vmem:[#allocation44_spill] sm:$0xff] }
 0x1a7   : > { %v4393_v17 = vsel %vm393_vm0, %v5786_v13, %v5785_v0  ;;  %v5788_v0 = vrot.slane %v4186_v7, 1  ;;  %v5789_v13 = vrot.slane %v4138_v58, 1  ;;  %v4420_v59 = vadd.f32 %v5790_v50, %v716_v23  ;;  %v5791_v7 = vld [vmem:[#allocation45_spill] sm:$0xff]  ;;  %v4435_v18 = vpop.permute.xlu1 %1340  ;;  %v4437_v23 = vpop.permute.xlu0 %1310 }
 0x1a8   : > { %v4423_v39 = vadd.f32 %v5790_v50, %v717_v25  ;;  %v4432_v58 = vadd.f32 %v5791_v7, %v715_v26  ;;  %5793 = vst [vmem:[#allocation42_spill] sm:$0xff] %v4435_v18  ;;  %5794 = vst [vmem:[#allocation43_spill] sm:$0xff] %v4437_v23  ;;  %v5795_v25 = vld [vmem:[#allocation49_spill] sm:$0xff]  ;;  %v2169_v44 = vrot.slane %v2163_v4, 2  ;;  %v5797_v26 = vld [vmem:[#allocation48_spill] sm:$0xff]  ;;  %v5798_v9 = vrot.slane %v4247_v28, 1 }
 0x1a9   : > { %1984 = vrot.lane.b32.xlu1 %v5788_v0, %s2995_s5  ;;  %1960 = vrot.lane.b32.xlu0 %v5789_v13, %s2994_s20  ;;  %v4429_v0 = vadd.f32 %v5791_v7, %v4263_v3  ;;  %v5792_v13 = vld [vmem:[#allocation46_spill] sm:$0xff]  ;;  %v5796_v3 = vld [vmem:[#allocation51_spill] sm:$0xff]  ;;  %v5799_v7 = vrot.slane %v4350_v1, 1  ;;  %v2192_v36 = vmul.f32 0.0, %v2189_v43  ;;  %v4464_v18 = vadd.f32 %v5801_v61, %v4320_v40 }
 0x1aa   : > { %v837_v52 = vadd.f32 %v5792_v13, %v742_v57  ;;  %v828_v50 = vsel %vm320_vm2, %v5792_v13, %v5795_v25  ;;  %v829_v57 = vsel %vm320_vm2, %v5797_v26, %v5796_v3  ;;  %v5800_v13 = vrot.slane %v4359_v32, 1  ;;  %v5802_v23 = vld [vmem:[#allocation50_spill] sm:$0xff] }
 0x1ab   : > { %v2191_v25 = vmul.f32 %v3819_v38, %v2189_v43  ;;  %v830_v63 = vsel %vm320_vm2, %v5802_v23, %v5796_v3  ;;  %v838_v56 = vadd.f32 %v828_v50, %v743_v35  ;;  %v4476_v20 = vpop.permute.xlu1 %1344  ;;  %v4478_v12 = vpop.permute.xlu0 %1342  ;;  %v2171_v11 = vrot.slane %v2164_v14, 2  ;;  %v5810_v50 = vld [vmem:[#allocation52_spill] sm:$0xff] }
 0x1ac   : > { %v4459_v4 = vsel %vm393_vm0, %v5800_v13, %v5799_v7  ;;  %v5803_v7 = vld [vmem:[#allocation71_spill] sm:$0xff]  ;;  %5804 = vst [vmem:[#allocation44_spill] sm:$0xff] %v4476_v20  ;;  %5805 = vst [vmem:[#allocation45_spill] sm:$0xff] %v4478_v12  ;;  %v2217_v40 = vstv %s4383_s23  ;;  %v841_v34 = vadd.f32 %v5802_v23, %v746_v22  ;;  %v4489_v3 = vstv %s4399_s22  ;;  %s5332_s23 = sld [smem:[#allocation7 + $0x2]]  ;;  %s5395_s22 = scalar_lea.vmem [#allocation9], %s2772_s26 }
 0x1ad   : > { %1988 = vrot.lane.b32.xlu1 %v4292_v51, %s2995_s5  ;;  %1986 = vrot.lane.b32.xlu0 %v5798_v9, %s2995_s5  ;;  %v4467_v51 = vadd.f32 %v5801_v61, %v719_v47  ;;  %v839_v9 = vadd.f32 %v5797_v26, %v744_v42  ;;  %v4474_v13 = vadd.f32 %v5803_v7, %v837_v52  ;;  %v5806_v47 = vrot.slane %v4396_v30, 2  ;;  %v5811_v26 = vld [vmem:[#allocation53_spill] sm:$0xff]  ;;  %s2773_s26 = smul.u32 768, %s3041_s16  ;;  %s2552_s16 = scalar_lea.sflag [#allocation4], %s3169_s19 }
 0x1ae   : > { %v840_v61 = vadd.f32 %v829_v57, %v4335_v45  ;;  %5807 = vst [vmem:[#allocation46_spill] sm:$0xff] %v4489_v3  ;;  %v842_v35 = vadd.f32 %v830_v63, %v747_v33  ;;  %v5808_v52 = vrot.slane %v4213_v15, 1  ;;  %v5809_v14 = vrot.slane %v4247_v28, 1  ;;  %v5812_v57 = vld [vmem:[#allocation54_spill] sm:$0xff] }
 0x1af   : > { %v4486_v42 = vsel %vm652_vm1, %v5806_v47, %v2169_v44  ;;  %v4498_v22 = vmul.f32 %v3778_v24, %v2189_v43  ;;  %v2197_v45 = vrot.slane %v2191_v25, 2  ;;  %v2199_v23 = vrot.slane %v2192_v36, 2  ;;  %v5813_v25 = vld [vmem:[#allocation55_spill] sm:$0xff] }
 0x1b0   : > { %v867_v33 = vsel %vm320_vm2, %v5811_v26, %v5810_v50  ;;  %v4506_v63 = vadd.f32 %v5803_v7, %v839_v9  ;;  %v4509_v15 = vmul.f32 %v3778_v24, %v2217_v40  ;;  %v2219_v28 = vmul.f32 %v3819_v38, %v2217_v40  ;;  %v5816_v50 = vld [vmem:[#allocation72_spill] sm:$0xff] }
 0x1b1   : > { %1992 = vrot.lane.b32.xlu1 %v5808_v52, %s2995_s5  ;;  %1990 = vrot.lane.b32.xlu0 %v5809_v14, %s2995_s5  ;;  %v4513_v43 = vadd.f32 %v5803_v7, %v838_v56  ;;  %v876_v36 = vadd.f32 %v5811_v26, %v4369_v41  ;;  %v868_v47 = vsel %vm320_vm2, %v5813_v25, %v5812_v57  ;;  %v4520_v52 = vpop.permute.xlu1 %1348  ;;  %v4522_v14 = vpop.permute.xlu0 %1346  ;;  %v2245_v12 = vstv %s4444_s27  ;;  %v5817_v26 = vld [vmem:[#allocation73_spill] sm:$0xff]  ;;  %s2565_s27 = sshll.u32 %s5395_s22, 4  ;;  %s5419_s27 = int_to_ptr.vmem [resolvable:$true] %s2565_s27 }
 0x1b2   : > { %5814 = vst [vmem:[#allocation49_spill] sm:$0xff] %v4520_v52  ;;  %5815 = vst [vmem:[#allocation51_spill] sm:$0xff] %v4522_v14  ;;  %v4525_v9 = vsel %vm652_vm1, %v2169_v44, %v2171_v11  ;;  %v4528_v20 = vadd.f32 %v5816_v50, %v840_v61  ;;  %v4531_v56 = vadd.f32 %v5803_v7, %v841_v34  ;;  %v2220_v6 = vmul.f32 0.0, %v2217_v40  ;;  %v5825_v50 = vld [vmem:[#allocation56_spill] sm:$0xff] }
 0x1b3   : > { %v877_v41 = vadd.f32 %v867_v33, %v4373_v8  ;;  %v4536_v5 = vadd.f32 %v5817_v26, %v842_v35  ;;  %v5818_v52 = vrot.slane %v4285_v31, 1  ;;  %v5819_v11 = vrot.slane %v4309_v19, 1  ;;  %v5820_v35 = vld [vmem:[#allocation74_spill] sm:$0xff] }
 0x1b4   : > { %v5575_v44 = vrot.slane %v4498_v22, 2  ;;  %v4546_v34 = vsel %vm652_vm1, %v2197_v45, %v2199_v23  ;;  %v878_v8 = vadd.f32 %v5813_v25, %v4406_v60  ;;  %v879_v7 = vadd.f32 %v868_v47, %v4410_v27 }
 0x1b5   : > { %2024 = vrot.lane.b32.xlu1 %v5818_v52, %s2995_s5  ;;  %2022 = vrot.lane.b32.xlu0 %v5819_v11, %s2995_s5  ;;  %v5578_v40 = vrot.slane %v4509_v15, 2  ;;  %v2225_v61 = vrot.slane %v2219_v28, 2  ;;  %v4555_v33 = vadd.f32 %v5820_v35, %v876_v36  ;;  %v4557_v19 = vpop.permute.xlu1 %1455  ;;  %v4559_v52 = vpop.permute.xlu0 %1453  ;;  %v4567_v60 = vmul.f32 %v3778_v24, %v2245_v12  ;;  %v5824_v28 = vld [vmem:[#allocation57_spill] sm:$0xff] }
 0x1b6   : > { %5821 = vst [vmem:[#allocation48_spill] sm:$0xff] %v4557_v19  ;;  %5822 = vst [vmem:[#allocation47_spill] sm:$0xff] %v4559_v52  ;;  %v4564_v23 = vsel %vm652_vm1, %v5575_v44, %v2197_v45  ;;  %v4571_v27 = vmul.f32 %v3778_v24, %v4489_v3  ;;  %v869_v36 = vsel %vm320_vm2, %v5824_v28, %v5812_v57  ;;  %v2227_v47 = vrot.slane %v2220_v6, 2 }
 0x1b7   : > { %v880_v25 = vadd.f32 %v5824_v28, %v4386_v21  ;;  %v2248_v45 = vmul.f32 %v3819_v38, %v2245_v12  ;;  %v915_v26 = vadd.f32 %v5825_v50, %v4429_v0  ;;  %v4584_v11 = vadd.f32 %v5820_v35, %v877_v41  ;;  %v5829_v21 = vld [vmem:[#allocation60_spill] sm:$0xff] }
 0x1b8   : > { %5823 = vst [vmem:[#allocation50_spill] sm:$0xff] %v4571_v27  ;;  %v5826_v44 = vrot.slane %v4285_v31, 1  ;;  %v4592_v57 = vstv %s4500_s28  ;;  %v4596_v6 = vmul.f32 %v3819_v38, %v4489_v3  ;;  %v906_v0 = vsel %vm320_vm2, %v5825_v50, %v5829_v21  ;;  %v5830_v31 = vld [vmem:[#allocation77_spill] sm:$0xff]  ;;  %v5832_v27 = vld [vmem:[#allocation59_spill] sm:$0xff] }
 0x1b9   : > { %2026 = vrot.lane.b32.xlu0 %v4393_v17, %s2995_s5  ;;  %5827 = vst [vmem:[#allocation71_spill] sm:$0xff] %v4592_v57  ;;  %v4604_v41 = vadd.f32 %v5820_v35, %v878_v8  ;;  %v4612_v17 = vsel %vm652_vm1, %v5578_v40, %v2225_v61  ;;  %v881_v28 = vadd.f32 %v869_v36, %v4402_v37  ;;  %v5833_v50 = vld [vmem:[#allocation61_spill] sm:$0xff]  ;;  %v4621_v21 = vpop.permute.xlu1 %1481  ;;  %v5581_v40 = vrot.slane %v4567_v60, 2 }
 0x1ba   : > { %2028 = vrot.lane.b32.xlu1 %v5826_v44, %s2995_s5  ;;  %5828 = vst [vmem:[#allocation52_spill] sm:$0xff] %v4596_v6  ;;  %v4607_v44 = vadd.f32 %v5830_v31, %v879_v7  ;;  %v5831_v6 = vld [vmem:[#allocation62_spill] sm:$0xff]  ;;  %v4623_v7 = vpop.permute.xlu0 %1457  ;;  %v2247_v31 = vmul.f32 0.0, %v2245_v12  ;;  %v944_v52 = vadd.f32 %v5820_v35, %v880_v25  ;;  %v4628_v19 = vsel %vm652_vm1, %v2225_v61, %v2227_v47 }
 0x1bb   : > { %v907_v3 = vsel %vm320_vm2, %v5832_v27, %v5831_v6  ;;  %v908_v8 = vsel %vm320_vm2, %v5833_v50, %v5831_v6  ;;  %v2254_v37 = vrot.slane %v2248_v45, 2  ;;  %v917_v36 = vadd.f32 %v5832_v27, %v4420_v59  ;;  %v5834_v6 = vld [vmem:[#allocation81_spill] sm:$0xff]  ;;  %v5837_v27 = vld [vmem:[#allocation75_spill] sm:$0xff] }
 0x1bc   : > { %v916_v14 = vadd.f32 %v906_v0, %v4432_v58  ;;  %v4634_v53 = vadd.f32 %v5834_v6, %v915_v26  ;;  %v5835_v12 = vrot.slane %v4359_v32, 1  ;;  %v5836_v35 = vrot.slane %v4296_v55, 1 }
 0x1bd   : > { %v2284_v61 = vstv %s4548_s6  ;;  %v919_v25 = vadd.f32 %v5833_v50, %v4464_v18  ;;  %v918_v47 = vadd.f32 %v907_v3, %v4423_v39  ;;  %v920_v59 = vadd.f32 %v908_v8, %v4467_v51  ;;  %v4649_v26 = vpop.permute.xlu1 %1485 }
 0x1be   : > { %2060 = vrot.lane.b32.xlu1 %v5835_v12, %s2995_s5  ;;  %2030 = vrot.lane.b32.xlu0 %v5836_v35, %s2995_s5  ;;  %v2287_v58 = vmul.f32 %v3819_v38, %v2284_v61  ;;  %v945_v45 = vadd.f32 %v5837_v27, %v881_v28  ;;  %5838 = vst [vmem:[#allocation53_spill] sm:$0xff] %v4649_v26  ;;  %v4651_v32 = vpop.permute.xlu0 %1483  ;;  %v4653_v0 = vrot.slane %v2247_v31, 2  ;;  %v4660_v18 = vstv %s4573_s7  ;;  %s5417_s7 = scalar_lea.hbm %s5468_s3, %s2773_s26 }
 0x1bf   : > { %5839 = vst [vmem:[#allocation54_spill] sm:$0xff] %v4651_v32  ;;  %v4657_v55 = vmul.f32 %v3778_v24, %v4592_v57  ;;  %v4665_v39 = vsel %vm652_vm1, %v5581_v40, %v2254_v37  ;;  %v2286_v51 = vmul.f32 0.0, %v2284_v61  ;;  %v4668_v3 = vmul.f32 %v3778_v24, %v2284_v61  ;;  %v5843_v61 = vld [vmem:[#allocation79_spill] sm:$0xff] }
 0x1c0   : > { %v4672_v28 = vmul.f32 %v3819_v38, %v4592_v57  ;;  %v952_v50 = vadd.f32 %v5834_v6, %v916_v14  ;;  %v953_v8 = vadd.f32 %v5834_v6, %v917_v36  ;;  %v5842_v31 = vrot.slane %v4361_v54, 1  ;;  %v5845_v36 = vld [vmem:[#allocation65_spill] sm:$0xff] }
 0x1c1   : > { %5840 = vst [vmem:[#allocation55_spill] sm:$0xff] %v4657_v55  ;;  %v4683_v12 = vsel %vm652_vm1, %v2254_v37, %v4653_v0  ;;  %v2323_v35 = vstv %s4598_s8  ;;  %v954_v27 = vadd.f32 %v5843_v61, %v918_v47  ;;  %v955_v40 = vadd.f32 %v5834_v6, %v919_v25  ;;  %v4697_v26 = vpop.permute.xlu1 %1511  ;;  %s2913_s8 = scalar_lea.vmem %s5419_s27, 768 }
 0x1c2   : > { %5841 = vst [vmem:[#allocation72_spill] sm:$0xff] %v4672_v28  ;;  %2064 = vrot.lane.b32.xlu1 %v4459_v4, %s2995_s5  ;;  %2062 = vrot.lane.b32.xlu0 %v5842_v31, %s2995_s5  ;;  %v5844_v28 = vld [vmem:[#allocation80_spill] sm:$0xff]  ;;  %v2293_v55 = vrot.slane %v2287_v58, 2  ;;  %v976_v57 = vadd.f32 %v5845_v36, %v4506_v63  ;;  %v977_v4 = vadd.f32 %v5845_v36, %v4528_v20  ;;  %v5846_v31 = vld [vmem:[#allocation66_spill] sm:$0xff]  ;;  %v4699_v47 = vpop.permute.xlu0 %1509  ;;  %v4701_v6 = vrot.slane %v2286_v51, 2  ;;  %v5847_v20 = vld [vmem:[#allocation67_spill] sm:$0xff]  ;;  %p2914_p3 = scmp.ne.s32.totalorder %s5419_s27, %s2913_s8 }
 0x1c3   : > { %v956_v14 = vadd.f32 %v5844_v28, %v920_v59  ;;  %v974_v32 = vadd.f32 %v5846_v31, %v4474_v13  ;;  %v975_v37 = vadd.f32 %v5846_v31, %v4513_v43  ;;  %v5585_v25 = vrot.slane %v4668_v3, 2  ;;  %v5852_v36 = vld [vmem:[#allocation68_spill] sm:$0xff] }
 0x1c4   : > { %v4705_v59 = vmul.f32 %v3778_v24, %v2323_v35  ;;  %v2326_v63 = vmul.f32 %v3819_v38, %v2323_v35  ;;  %v997_v58 = vadd.f32 %v5847_v20, %v4555_v33  ;;  %v5848_v13 = vrot.slane %v4350_v1, 1  ;;  %p2915_p8 = pnand %p2914_p3, %p5964_p0 }
 0x1c5   : > { %v5849_v43 = vrot.slane %v4361_v54, 1  ;;  %v2325_v51 = vmul.f32 0.0, %v2323_v35  ;;  %v4718_v28 = vmul.f32 %v3778_v24, %v4660_v18  ;;  %v4722_v61 = vmul.f32 %v3819_v38, %v4660_v18  ;;  %v5853_v24 = vld [vmem:[#allocation76_spill] sm:$0xff]  ;;  %v5854_v38 = vld [vmem:[#allocation78_spill] sm:$0xff] }
 0x1c6   : > { %2068 = vrot.lane.b32.xlu1 %v5848_v13, %s2995_s5  ;;  %v998_v33 = vadd.f32 %v5847_v20, %v4584_v11  ;;  %v978_v1 = vadd.f32 %v5852_v36, %v4531_v56  ;;  %v979_v31 = vadd.f32 %v5852_v36, %v4536_v5  ;;  %v4733_v54 = vsel %vm652_vm1, %v5585_v25, %v2293_v55  ;;  %v4741_v56 = vpop.permute.xlu1 %1538  ;;  %v4743_v5 = vpop.permute.xlu0 %1513  ;;  %v5855_v20 = vld [vmem:[#allocation82_spill] sm:$0xff]  ;;  %p2916_p10 = pneg %p2915_p8 }
 0x1c7   : > { %2066 = vrot.lane.b32.xlu0 %v5849_v43, %s2995_s5  ;;  %5850 = vst [vmem:[#allocation73_spill] sm:$0xff] %v4718_v28  ;;  %5851 = vst [vmem:[#allocation74_spill] sm:$0xff] %v4722_v61  ;;  %v1001_v35 = vadd.f32 %v5853_v24, %v944_v52  ;;  %v1002_v13 = vadd.f32 %v5853_v24, %v945_v45  ;;  %v999_v43 = vadd.f32 %v5854_v38, %v4604_v41 }
 0x1c8   : > { %v1000_v11 = vadd.f32 %v5854_v38, %v4607_v44  ;;  %v1022_v36 = vadd.f32 %v5855_v20, %v953_v8  ;;  %v4749_v52 = vsel %vm652_vm1, %v2293_v55, %v4701_v6  ;;  %v2332_v45 = vrot.slane %v2326_v63, 2 }
 0x1c9   : > { %v1023_v41 = vadd.f32 %v5855_v20, %v954_v27  ;;  %v1047_v24 = vadd.f32 %v3830_v2, %v974_v32  ;;  %v1048_v44 = vadd.f32 %v3830_v2, %v975_v37  ;;  %v5856_v38 = vrot.slane %v4396_v30, 2  ;;  %v4766_v27 = vld [vmem:[%s3175_s10] sm:$0xff]  ;;  %v4770_v37 = vld [vmem:[%s3175_s10 + $0x8] sm:$0xff] }
 0x1ca   : > { %2175 = vrot.lane.b32.xlu1 %v4486_v42, %s2994_s20  ;;  %v4759_v8 = vrot.slane %v2325_v51, 2  ;;  %v1040_v55 = vsel %vm320_vm2, %v3868_v62, %v3830_v2  ;;  %v1049_v63 = vadd.f32 %v3868_v62, %v976_v57  ;;  %5858 = vst [vmem:[#allocation56_spill] sm:$0xff] %v4766_v27  ;;  %5859 = vst [vmem:[#allocation60_spill] sm:$0xff] %v4770_v37  ;;  %v5860_v20 = vld [vmem:[#allocation83_spill] sm:$0xff]  ;;  %v4780_v62 = vpop.permute.xlu1 %1542  ;;  %v4782_v57 = vpop.permute.xlu0 %1540  ;;  %v5862_v61 = vrot.slane %v4705_v59, 2 }
 0x1cb   : > { %2173 = vrot.lane.b32.xlu0 %v5856_v38, %s2994_s20  ;;  %v1020_v30 = vadd.f32 %v5860_v20, %v4634_v53  ;;  %v1021_v51 = vadd.f32 %v5860_v20, %v952_v50  ;;  %v1041_v38 = vsel %vm320_vm2, %v3866_v10, %v3830_v2  ;;  %v1051_v25 = vadd.f32 %v3866_v10, %v978_v1  ;;  %v5865_v1 = vld [vmem:[#allocation88_spill] sm:$0xff]  ;;  %v5866_v20 = vld [vmem:[#allocation87_spill] sm:$0xff] }
 0x1cc   : > { %5857 = vst [vmem:[#allocation57_spill] sm:$0xff] %v4759_v8  ;;  %5861 = vst [vmem:[#allocation77_spill] sm:$0xff] %v4780_v62  ;;  %v1024_v32 = vadd.f32 %v3832_v16, %v955_v40  ;;  %v1025_v42 = vadd.f32 %v3832_v16, %v956_v14  ;;  %v4789_v53 = vsel %vm652_vm1, %v5862_v61, %v2332_v45  ;;  %v5867_v62 = vld [vmem:[#allocation16_spill] sm:$0xff]  ;;  %v5868_v16 = vrot.slane %v4498_v22, 2 }
 0x1cd   : > { %5863 = vst [vmem:[#allocation62_spill] sm:$0xff] %v4789_v53  ;;  %v4793_v50 = vsel %vm652_vm1, %v2332_v45, %v4759_v8  ;;  %v1050_v2 = vadd.f32 %v1040_v55, %v977_v4  ;;  %v1125_v10 = vadd.f32 %v3895_v49, %v1047_v24  ;;  %v1067_v28 = vsel %vm320_vm2, %v5866_v20, %v5865_v1  ;;  %v5869_v4 = vld [vmem:[#allocation85_spill] sm:$0xff] }
 0x1ce   : > { %5864 = vst [vmem:[#allocation59_spill] sm:$0xff] %v4793_v50  ;;  %v1163_v40 = vrot.slane %v5867_v62, 1  ;;  %2201 = vrot.lane.b32.xlu1 %v5868_v16, %s2994_s20  ;;  %v1052_v14 = vadd.f32 %v1041_v38, %v979_v31  ;;  %v1127_v61 = vadd.f32 %v3895_v49, %v1049_v63  ;;  %v5870_v45 = vrot.slane %v5869_v4, 1  ;;  %v4816_v8 = vld [vmem:[%s3175_s10 + $0x18] sm:$0xff]  ;;  %v4826_v16 = vpop.permute.xlu0 %1544  ;;  %v5878_v4 = vld [vmem:[#allocation64_spill] sm:$0xff] }
 0x1cf   : > { %2177 = vrot.lane.b32.xlu0 %v4525_v9, %s2994_s20  ;;  %v5871_v55 = vrot.slane %v4770_v37, 1  ;;  %v5872_v50 = vrot.slane %v4766_v27, 1  ;;  %5874 = vst [vmem:[#allocation81_spill] sm:$0xff] %v4816_v8  ;;  %v1076_v22 = vadd.f32 %v5866_v20, %v999_v43  ;;  %v5875_v9 = vld [vmem:[#allocation92_spill] sm:$0xff]  ;;  %v1074_v63 = vadd.f32 %v5865_v1, %v997_v58  ;;  %5877 = vst [vmem:[#allocation79_spill] sm:$0xff] %v4826_v16  ;;  %v5884_v16 = vld [vmem:[#allocation63_spill] sm:$0xff] }
 0x1d0   : > { %v1126_v24 = vadd.f32 %v5870_v45, %v1048_v44  ;;  %v1068_v31 = vsel %vm320_vm2, %v5875_v9, %v5865_v1  ;;  %v1129_v38 = vadd.f32 %v3895_v49, %v1051_v25  ;;  %v4824_v44 = vpop.permute.xlu1 %1546  ;;  %v5879_v45 = vld [vmem:[#allocation14_spill] sm:$0xff]  ;;  %v1075_v20 = vadd.f32 %v5865_v1, %v998_v33 }
 0x1d1   : > { %v4813_v62 = vsel %vm393_vm0, %v5872_v50, %v5871_v55  ;;  %5876 = vst [vmem:[#allocation75_spill] sm:$0xff] %v4824_v44  ;;  %v1095_v50 = vsel %vm320_vm2, %v5879_v45, %v5878_v4  ;;  %v5880_v55 = vld [vmem:[#allocation15_spill] sm:$0xff]  ;;  %v1077_v37 = vadd.f32 %v1067_v28, %v1000_v11  ;;  %v4836_v27 = vld [vmem:[%s3175_s10 + $0x10] sm:$0xff]  ;;  %v1078_v58 = vadd.f32 %v5875_v9, %v1001_v35 }
 0x1d2   : > { %5873 = vst [vmem:[#allocation61_spill] sm:$0xff] %v4813_v62  ;;  %v1094_v43 = vsel %vm320_vm2, %v5880_v55, %v5878_v4  ;;  %v5881_v49 = vld [vmem:[#allocation86_spill] sm:$0xff]  ;;  %v1101_v62 = vadd.f32 %v5878_v4, %v1020_v30  ;;  %2205 = vrot.lane.b32.xlu1 %v4546_v34, %s2994_s20  ;;  %v1079_v44 = vadd.f32 %v1068_v31, %v1002_v13  ;;  %v4853_v34 = vpop.permute.xlu0 %1577  ;;  %v5885_v13 = vld [vmem:[#allocation89_spill] sm:$0xff] }
 0x1d3   : > { %v1128_v25 = vadd.f32 %v5881_v49, %v1050_v2  ;;  %2203 = vrot.lane.b32.xlu0 %v4564_v23, %s2994_s20  ;;  %v1105_v33 = vadd.f32 %v5879_v45, %v1024_v32  ;;  %v1103_v28 = vadd.f32 %v5880_v55, %v1022_v36  ;;  %v1102_v11 = vadd.f32 %v5878_v4, %v1021_v51  ;;  %v5882_v2 = vld [vmem:[#allocation84_spill] sm:$0xff]  ;;  %v5887_v45 = vld [vmem:[#allocation93_spill] sm:$0xff] }
 0x1d4   : > { %v1106_v35 = vadd.f32 %v1095_v50, %v1025_v42  ;;  %v1104_v1 = vadd.f32 %v1094_v43, %v1023_v41  ;;  %v5883_v9 = vrot.slane %v5882_v2, 1  ;;  %v4851_v49 = vpop.permute.xlu1 %1579  ;;  %v5593_v23 = vrot.slane %v4836_v27, 1  ;;  %v5896_v2 = vld [vmem:[#allocation17_spill] sm:$0xff] }
 0x1d5   : > { %v1149_v53 = vadd.f32 %v5884_v16, %v1074_v63  ;;  %v5886_v31 = vrot.slane %v5885_v13, 1  ;;  %v1151_v36 = vadd.f32 %v5884_v16, %v1076_v22  ;;  %v1152_v51 = vadd.f32 %v5887_v45, %v1077_v37  ;;  %v5891_v22 = vld [vmem:[#allocation90_spill] sm:$0xff] }
 0x1d6   : > { %v1130_v30 = vadd.f32 %v5883_v9, %v1052_v14  ;;  %v1153_v41 = vadd.f32 %v5884_v16, %v1078_v58  ;;  %v1173_v42 = vadd.f32 %v1163_v40, %v1101_v62  ;;  %2231 = vrot.lane.b32.xlu1 %v4612_v17, %s2994_s20  ;;  %v5888_v14 = vrot.slane %v4509_v15, 2  ;;  %v5893_v16 = vld [vmem:[#allocation58_spill] sm:$0xff]  ;;  %v5897_v9 = vld [vmem:[#allocation91_spill] sm:$0xff] }
 0x1d7   : > { %v1150_v32 = vadd.f32 %v5886_v31, %v1075_v20  ;;  %v5889_v4 = vrot.slane %v4816_v8, 1  ;;  %v5892_v50 = vrot.slane %v5891_v22, 1  ;;  %v1175_v55 = vadd.f32 %v1163_v40, %v1103_v28  ;;  %v5895_v17 = vld [vmem:[#allocation18_spill] sm:$0xff]  ;;  %v5901_v22 = vld [vmem:[#allocation20_spill] sm:$0xff] }
 0x1d8   : > { %2229 = vrot.lane.b32.xlu0 %v5888_v14, %s2994_s20  ;;  %v5894_v62 = vrot.slane %v5893_v16, 1  ;;  %v1177_v20 = vadd.f32 %v1163_v40, %v1105_v33  ;;  %v1199_v58 = vadd.f32 %v5895_v17, %v1127_v61  ;;  %v1176_v15 = vadd.f32 %v5896_v2, %v1104_v1  ;;  %v4885_v14 = vpop.permute.xlu1 %1583  ;;  %v5899_v28 = vld [vmem:[#allocation94_spill] sm:$0xff]  ;;  %v5900_v61 = vld [vmem:[#allocation19_spill] sm:$0xff]  ;;  %v5905_v2 = vld [vmem:[#allocation24_spill] sm:$0xff] }
 0x1d9   : > { %v4872_v63 = vsel %vm393_vm0, %v5593_v23, %v5889_v4  ;;  %v1154_v37 = vadd.f32 %v5892_v50, %v1079_v44  ;;  %v5898_v13 = vrot.slane %v5897_v9, 1  ;;  %v1274_v45 = vsel %vm320_vm2, %v4191_v29, %v4245_v48  ;;  %v4887_v4 = vpop.permute.xlu0 %1581  ;;  %v5918_v23 = vld [vmem:[#allocation45_spill] sm:$0xff] }
 0x1da   : > { %5890 = vst [vmem:[#allocation80_spill] sm:$0xff] %v4872_v63  ;;  %v1174_v43 = vadd.f32 %v5894_v62, %v1102_v11  ;;  %v1200_v44 = vadd.f32 %v5895_v17, %v1128_v25  ;;  %v1197_v11 = vadd.f32 %v5899_v28, %v1125_v10  ;;  %v1198_v40 = vadd.f32 %v5899_v28, %v1126_v24  ;;  %v5903_v25 = vld [vmem:[#allocation22_spill] sm:$0xff]  ;;  %v5904_v17 = vld [vmem:[#allocation25_spill] sm:$0xff] }
 0x1db   : > { %v1178_v31 = vadd.f32 %v5898_v13, %v1106_v35  ;;  %v1221_v33 = vadd.f32 %v5900_v61, %v1149_v53  ;;  %v1222_v1 = vadd.f32 %v5900_v61, %v1150_v32  ;;  %v1201_v35 = vadd.f32 %v5901_v22, %v1129_v38 }
 0x1dc   : > { %v1202_v50 = vadd.f32 %v5901_v22, %v1130_v30  ;;  %v5902_v16 = vrot.slane %v4567_v60, 2  ;;  %2233 = vrot.lane.b32.xlu0 %v4628_v19, %s2994_s20  ;;  %v1225_v62 = vadd.f32 %v5903_v25, %v1153_v41  ;;  %v1283_v10 = vadd.f32 %v4191_v29, %v1197_v11  ;;  %v4908_v60 = vpop.permute.xlu1 %1616  ;;  %v5906_v41 = vld [vmem:[#allocation26_spill] sm:$0xff]  ;;  %v5907_v29 = vld [vmem:[#allocation32_spill] sm:$0xff]  ;;  %v5913_v22 = vld [vmem:[#allocation21_spill] sm:$0xff] }
 0x1dd   : > { %v1285_v24 = vadd.f32 %v4243_v46, %v1199_v58  ;;  %v1284_v53 = vadd.f32 %v1274_v45, %v1198_v40  ;;  %v1226_v32 = vadd.f32 %v5903_v25, %v1154_v37  ;;  %v1223_v38 = vadd.f32 %v5904_v17, %v1151_v36  ;;  %v4910_v13 = vpop.permute.xlu0 %1585  ;;  %v5908_v45 = vld [vmem:[#allocation35_spill] sm:$0xff]  ;;  %v5909_v37 = vld [vmem:[#allocation28_spill] sm:$0xff] }
 0x1de   : > { %2258 = vrot.lane.b32.xlu1 %v5902_v16, %s2995_s5  ;;  %v1224_v30 = vadd.f32 %v5904_v17, %v1152_v51  ;;  %v1247_v9 = vadd.f32 %v5905_v2, %v1175_v55  ;;  %v1248_v19 = vadd.f32 %v5905_v2, %v1176_v15  ;;  %v1245_v28 = vadd.f32 %v5906_v41, %v1173_v42  ;;  %v5910_v42 = vld [vmem:[#allocation69_spill] sm:$0xff]  ;;  %v5911_v15 = vld [vmem:[#allocation70_spill] sm:$0xff]  ;;  %v5912_v40 = vld [vmem:[#allocation23_spill] sm:$0xff] }
 0x1df   : > { %v1276_v58 = vsel %vm320_vm2, %v5907_v29, %v4245_v48  ;;  %v1275_v36 = vsel %vm320_vm2, %v4243_v46, %v5908_v45  ;;  %v1246_v51 = vadd.f32 %v5906_v41, %v1174_v43  ;;  %v1249_v55 = vadd.f32 %v5909_v37, %v1177_v20  ;;  %v5915_v17 = vld [vmem:[#allocation40_spill] sm:$0xff] }
 0x1e0   : > { %v1250_v11 = vadd.f32 %v5909_v37, %v1178_v31  ;;  %2260 = vrot.lane.b32.xlu0 %v4653_v0, %s2995_s5  ;;  %v1312_v48 = vsel %vm320_vm2, %v5911_v15, %v5910_v42  ;;  %v1386_v61 = vadd.f32 %v5912_v40, %v1285_v24  ;;  %v1384_v46 = vadd.f32 %v5912_v40, %v1283_v10  ;;  %v4938_v41 = vpop.permute.xlu1 %1620  ;;  %v5917_v24 = vld [vmem:[#allocation43_spill] sm:$0xff] }
 0x1e1   : > { %v5914_v43 = vrot.slane %v5913_v22, 2  ;;  %v1287_v20 = vadd.f32 %v5907_v29, %v1201_v35  ;;  %v1288_v31 = vadd.f32 %v1276_v58, %v1202_v50  ;;  %v1286_v25 = vadd.f32 %v1275_v36, %v1200_v44  ;;  %v1619_v45 = vpop.permute.xlu0 %1618  ;;  %v5919_v22 = vld [vmem:[#allocation42_spill] sm:$0xff]  ;;  %v5920_v50 = vld [vmem:[#allocation49_spill] sm:$0xff]  ;;  %v5921_v58 = vld [vmem:[#allocation51_spill] sm:$0xff] }
 0x1e2   : > { %2262 = vrot.lane.b32.xlu1 %v4665_v39, %s2995_s5  ;;  %v5916_v39 = vld [vmem:[#allocation41_spill] sm:$0xff]  ;;  %v1321_v37 = vadd.f32 %v5911_v15, %v1221_v33  ;;  %v1314_v10 = vsel %vm320_vm2, %v5917_v24, %v5910_v42  ;;  %v4949_v44 = vsel %vm320_vm2, %v4908_v60, %v1619_v45  ;;  %v1322_v35 = vadd.f32 %v1312_v48, %v1222_v1  ;;  %v5922_v36 = vld [vmem:[#allocation44_spill] sm:$0xff] }
 0x1e3   : > { %v1385_v16 = vadd.f32 %v5914_v43, %v1284_v53  ;;  %v1313_v2 = vsel %vm320_vm2, %v5916_v39, %v5915_v17  ;;  %v1350_v53 = vsel %vm320_vm2, %v5919_v22, %v5918_v23  ;;  %v1352_v29 = vsel %vm320_vm2, %v5920_v50, %v5918_v23 }
 0x1e4   : > { %v1351_v33 = vsel %vm320_vm2, %v5922_v36, %v5921_v58  ;;  %2264 = vrot.lane.b32.xlu0 %v4653_v0, %s2995_s5  ;;  %v1323_v42 = vadd.f32 %v5916_v39, %v1223_v38  ;;  %v1324_v15 = vadd.f32 %v1313_v2, %v1224_v30  ;;  %v1359_v43 = vadd.f32 %v5919_v22, %v1245_v28  ;;  %v4966_v58 = vpop.permute.xlu1 %1624  ;;  %v5923_v30 = vld [vmem:[#allocation29_spill] sm:$0xff] }
 0x1e5   : > { %v1325_v1 = vadd.f32 %v5917_v24, %v1225_v62  ;;  %v1326_v48 = vadd.f32 %v1314_v10, %v1226_v32  ;;  %v1361_v23 = vadd.f32 %v5922_v36, %v1247_v9  ;;  %v1360_v17 = vadd.f32 %v1350_v53, %v1246_v51  ;;  %v1623_v63 = vpop.permute.xlu0 %1622  ;;  %v5924_v9 = vld [vmem:[#allocation30_spill] sm:$0xff]  ;;  %v5929_v24 = vld [vmem:[#allocation36_spill] sm:$0xff]  ;;  %v5933_v36 = vld [vmem:[#allocation33_spill] sm:$0xff] }
 0x1e6   : > { %2266 = vrot.lane.b32.xlu1 %v4683_v12, %s2995_s5  ;;  %v1363_v45 = vadd.f32 %v5920_v50, %v1249_v55  ;;  %v1364_v12 = vadd.f32 %v1352_v29, %v1250_v11  ;;  %v1362_v8 = vadd.f32 %v1351_v33, %v1248_v19  ;;  %v1627_v0 = vsel %vm320_vm2, %v4938_v41, %v1623_v63  ;;  %v5926_v19 = vld [vmem:[#allocation31_spill] sm:$0xff]  ;;  %v5931_v10 = vld [vmem:[#allocation34_spill] sm:$0xff] }
 0x1e7   : > { %v4972_v38 = vsel %vm320_vm2, %v4966_v58, %v1623_v63  ;;  %v1387_v62 = vadd.f32 %v5923_v30, %v1286_v25  ;;  %v1388_v32 = vadd.f32 %v5912_v40, %v1287_v20  ;;  %v1389_v28 = vadd.f32 %v5924_v9, %v1288_v31  ;;  %v5927_v11 = vld [vmem:[#allocation27_spill] sm:$0xff]  ;;  %v5930_v20 = vld [vmem:[#allocation37_spill] sm:$0xff] }
 0x1e8   : > { %v5925_v51 = vrot.slane %v4668_v3, 2  ;;  %v1409_v55 = vadd.f32 %v5926_v19, %v1321_v37  ;;  %v5928_v39 = vrot.slane %v5927_v11, 2  ;;  %v1411_v63 = vadd.f32 %v5926_v19, %v1323_v42  ;;  %v4991_v50 = vpop.permute.xlu1 %1687  ;;  %v5932_v37 = vld [vmem:[#allocation38_spill] sm:$0xff] }
 0x1e9   : > { %v1412_v25 = vadd.f32 %v5929_v24, %v1324_v15  ;;  %v1413_v40 = vadd.f32 %v5926_v19, %v1325_v1  ;;  %v1414_v31 = vadd.f32 %v5930_v20, %v1326_v48  ;;  %v1436_v22 = vadd.f32 %v5931_v10, %v1361_v23  ;;  %v4993_v3 = vpop.permute.xlu0 %1685  ;;  %v5935_v15 = vld [vmem:[#allocation39_spill] sm:$0xff]  ;;  %v5936_v1 = vld [vmem:[#allocation48_spill] sm:$0xff]  ;;  %v5938_v23 = vld [vmem:[#allocation46_spill] sm:$0xff] }
 0x1ea   : > { %2299 = vrot.lane.b32.xlu1 %v4701_v6, %s2995_s5  ;;  %2297 = vrot.lane.b32.xlu0 %v5925_v51, %s2995_s5  ;;  %v1410_v2 = vadd.f32 %v5928_v39, %v1322_v35  ;;  %v1434_v53 = vadd.f32 %v5931_v10, %v1359_v43  ;;  %v1437_v29 = vadd.f32 %v5932_v37, %v1362_v8  ;;  %v5934_v35 = vrot.slane %v5933_v36, 2  ;;  %v5937_v48 = vld [vmem:[#allocation47_spill] sm:$0xff]  ;;  %v5945_v37 = vld [vmem:[#allocation62_spill] sm:$0xff] }
 0x1eb   : > { %v1438_v42 = vadd.f32 %v5931_v10, %v1363_v45  ;;  %v1439_v30 = vadd.f32 %v5935_v15, %v1364_v12  ;;  %v1464_v9 = vadd.f32 %v5936_v1, %v1386_v61  ;;  %v1462_v51 = vadd.f32 %v5937_v48, %v1384_v46  ;;  %v5947_v15 = vld [vmem:[#allocation73_spill] sm:$0xff] }
 0x1ec   : > { %v1435_v33 = vadd.f32 %v5934_v35, %v1360_v17  ;;  %v1548_v43 = vsel %vm320_vm2, %v4741_v56, %v4782_v57  ;;  %v5006_v19 = vmul.f32 0.0, %v5938_v23  ;;  %v1465_v8 = vadd.f32 %v5936_v1, %v1387_v62 }
 0x1ed   : > { %v1463_v17 = vadd.f32 %v5937_v48, %v1385_v16  ;;  %v1490_v61 = vadd.f32 %v4621_v21, %v1409_v55  ;;  %v1491_v46 = vadd.f32 %v4621_v21, %v1410_v2  ;;  %v1466_v45 = vadd.f32 %v4623_v7, %v1388_v32  ;;  %v5022_v39 = vpop.permute.xlu0 %1689  ;;  %v5939_v21 = vld [vmem:[#allocation53_spill] sm:$0xff] }
 0x1ee   : > { %2303 = vrot.lane.b32.xlu1 %v4701_v6, %s2995_s5  ;;  %2301 = vrot.lane.b32.xlu0 %v4733_v54, %s2995_s5  ;;  %v1520_v57 = vadd.f32 %v4697_v26, %v1436_v22  ;;  %v1518_v12 = vadd.f32 %v4699_v47, %v1434_v53  ;;  %v1557_v11 = vadd.f32 %v4741_v56, %v1462_v51  ;;  %v5020_v6 = vpop.permute.xlu1 %1708  ;;  %v5940_v56 = vrot.slane %v4705_v59, 2  ;;  %v5943_v53 = vld [vmem:[#allocation79_spill] sm:$0xff] }
 0x1ef   : > { %v1467_v54 = vadd.f32 %v4623_v7, %v1389_v28  ;;  %v1521_v16 = vadd.f32 %v4697_v26, %v1437_v29  ;;  %v1519_v62 = vadd.f32 %v4699_v47, %v1435_v33  ;;  %v1558_v55 = vadd.f32 %v1548_v43, %v1463_v17  ;;  %v5941_v47 = vld [vmem:[#allocation54_spill] sm:$0xff]  ;;  %v5946_v29 = vld [vmem:[#allocation57_spill] sm:$0xff] }
 0x1f0   : > { %v5028_v2 = vadd.f32 %v5939_v21, %v1413_v40  ;;  %v1635_v32 = vadd.f32 %v4908_v60, %v1518_v12  ;;  %v1637_v24 = vadd.f32 %v4938_v41, %v1520_v57  ;;  %v1668_v7 = vmul.f32 0.0, %v4660_v18  ;;  %v5942_v18 = vld [vmem:[#allocation77_spill] sm:$0xff] }
 0x1f1   : > { %v5039_v26 = vadd.f32 %v5939_v21, %v1414_v31  ;;  %v1492_v28 = vadd.f32 %v5941_v47, %v1411_v63  ;;  %v1636_v40 = vadd.f32 %v4949_v44, %v1519_v62  ;;  %v1638_v20 = vadd.f32 %v1627_v0, %v1521_v16  ;;  %v5944_v44 = vld [vmem:[#allocation75_spill] sm:$0xff] }
 0x1f2   : > { %2336 = vrot.lane.b32.xlu1 %v5940_v56, %s2995_s5  ;;  %2305 = vrot.lane.b32.xlu0 %v4749_v52, %s2995_s5  ;;  %v1493_v60 = vadd.f32 %v5941_v47, %v1412_v25  ;;  %v1522_v41 = vadd.f32 %v4743_v5, %v1438_v42  ;;  %v1523_v59 = vadd.f32 %v4743_v5, %v1439_v30  ;;  %v5047_v22 = vpop.permute.xlu1 %1712  ;;  %v5049_v52 = vpop.permute.xlu0 %1710  ;;  %v5949_v16 = vld [vmem:[#allocation59_spill] sm:$0xff] }
 0x1f3   : > { %v1649_v10 = vadd.f32 %v5006_v19, %v1557_v11  ;;  %v1559_v31 = vadd.f32 %v5942_v18, %v1464_v9  ;;  %v1549_v63 = vsel %vm320_vm2, %v5942_v18, %v5943_v53  ;;  %v1550_v0 = vsel %vm320_vm2, %v5944_v44, %v5943_v53  ;;  %v5954_v18 = vld [vmem:[#allocation56_spill] sm:$0xff] }
 0x1f4   : > { %v1650_v25 = vadd.f32 %v5006_v19, %v1558_v55  ;;  %v1587_v5 = vsel %vm320_vm2, %v4853_v34, %v4851_v49  ;;  %v1673_v36 = vadd.f32 %v1668_v7, %v1637_v24  ;;  %v1671_v35 = vadd.f32 %v1668_v7, %v1635_v32  ;;  %v5950_v32 = vld [vmem:[#allocation74_spill] sm:$0xff] }
 0x1f5   : > { %v1639_v33 = vadd.f32 %v4966_v58, %v1522_v41  ;;  %v1640_v42 = vadd.f32 %v4972_v38, %v1523_v59  ;;  %v1674_v30 = vadd.f32 %v5947_v15, %v1638_v20  ;;  %v1672_v1 = vadd.f32 %v1668_v7, %v1636_v40  ;;  %v5952_v59 = vld [vmem:[#allocation52_spill] sm:$0xff] }
 0x1f6   : > { %2340 = vrot.lane.b32.xlu1 %v5945_v37, %s2995_s5  ;;  %2338 = vrot.lane.b32.xlu0 %v5946_v29, %s2995_s5  ;;  %v1561_v9 = vadd.f32 %v5944_v44, %v1466_v45  ;;  %v1560_v49 = vadd.f32 %v1549_v63, %v1465_v8  ;;  %v1562_v48 = vadd.f32 %v1550_v0, %v1467_v54  ;;  %v1734_v43 = vpop.permute.xlu1 %1733  ;;  %v1732_v23 = vpop.permute.xlu0 %1731  ;;  %v5948_v45 = vld [vmem:[#allocation71_spill] sm:$0xff]  ;;  %v1828_v53 = vstv %s5066_s9  ;;  %s2997_s9 = smov [#allocation9]  }
 0x1f7   : > { %v1588_v51 = vsel %vm320_vm2, %v4887_v4, %v4885_v14  ;;  %v5075_v17 = vadd.f32 %v1734_v43, %v1673_v36  ;;  %v5077_v57 = vadd.f32 %v1734_v43, %v1674_v30  ;;  %v5079_v58 = vadd.f32 %v1732_v23, %v1671_v35  ;;  %v5956_v35 = vld [vmem:[#allocation55_spill] sm:$0xff] }
 0x1f8   : > { %v5081_v38 = vadd.f32 %v1732_v23, %v1672_v1  ;;  %v1596_v12 = vadd.f32 %v4853_v34, %v1490_v61  ;;  %v1597_v11 = vadd.f32 %v1587_v5, %v1491_v46  ;;  %v1598_v8 = vadd.f32 %v4887_v4, %v1492_v28  ;;  %v5951_v4 = vld [vmem:[#allocation50_spill] sm:$0xff]  ;;  %v2763_v30 = vld [vmem:[%s3175_s10 + $0x28] sm:$0xff] }
 0x1f9   : > { %v1657_v54 = vmul.f32 0.0, %v5948_v45  ;;  %v1694_v62 = vadd.f32 %v4993_v3, %v1649_v10  ;;  %v1695_v55 = vadd.f32 %v4993_v3, %v1650_v25  ;;  %v1675_v21 = vadd.f32 %v1668_v7, %v1639_v33  ;;  %v2762_v5 = vld [vmem:[%s3175_s10 + $0x20] sm:$0xff] }
 0x1fa   : > { %2344 = vrot.lane.b32.xlu1 %v5949_v16, %s2995_s5  ;;  %2342 = vrot.lane.b32.xlu0 %v5946_v29, %s2995_s5  ;;  %v1676_v24 = vadd.f32 %v5950_v32, %v1640_v42  ;;  %v1599_v56 = vadd.f32 %v1588_v51, %v1493_v60  ;;  %v1651_v34 = vadd.f32 %v5006_v19, %v1559_v31  ;;  %v1755_v47 = vpop.permute.xlu1 %1754  ;;  %v1736_v28 = vpop.permute.xlu0 %1735  ;;  %v5955_v31 = vrot.slane %v5954_v18, 1  ;;  %s5164_s5 = sld [smem:[#allocation2 + $0x4b]] }
 0x1fb   : > { %v1652_v61 = vadd.f32 %v5951_v4, %v1560_v49  ;;  %v1653_v46 = vadd.f32 %v5006_v19, %v1561_v9  ;;  %v5098_v40 = vadd.f32 %v1736_v28, %v1675_v21  ;;  %v5102_v3 = vadd.f32 %v1755_v47, %v1694_v62  ;;  %v5953_v19 = vld [vmem:[#allocation61_spill] sm:$0xff] }
 0x1fc   : > { %v5100_v20 = vadd.f32 %v1736_v28, %v1676_v24  ;;  %v5104_v7 = vadd.f32 %v1755_v47, %v1695_v55  ;;  %v1660_v60 = vadd.f32 %v1657_v54, %v1596_v12  ;;  %v1661_v41 = vadd.f32 %v1657_v54, %v1597_v11 }
 0x1fd   : > { %v1654_v10 = vadd.f32 %v5952_v59, %v1562_v48  ;;  %v1589_v63 = vsel %vm320_vm2, %v4910_v13, %v4885_v14  ;;  %v1696_v44 = vadd.f32 %v4991_v50, %v1651_v34  ;;  %v1698_v0 = vadd.f32 %v5022_v39, %v1653_v46  ;;  %v5960_v34 = vld [vmem:[#allocation72_spill] sm:$0xff] }
 0x1fe   : > { %2382 = vrot.lane.b32.xlu1 %v5953_v19, %s2994_s20  ;;  %2380 = vrot.lane.b32.xlu0 %v5955_v31, %s2994_s20  ;;  %v1662_v25 = vadd.f32 %v1657_v54, %v1598_v8  ;;  %v1600_v37 = vadd.f32 %v4910_v13, %v5028_v2  ;;  %v1697_v29 = vadd.f32 %v4991_v50, %v1652_v61  ;;  %v1759_v42 = vpop.permute.xlu1 %1758  ;;  %v1757_v15 = vpop.permute.xlu0 %1756  ;;  %v5958_v2 = vld [vmem:[#allocation60_spill] sm:$0xff]  ;;  %v2505_v43 = vrot.slane %v2762_v5, 1 }
 0x1ff   : > { %v1699_v36 = vadd.f32 %v5022_v39, %v1654_v10  ;;  %v1663_v33 = vadd.f32 %v5956_v35, %v1599_v56  ;;  %v1761_v14 = vsel %vm320_vm2, %v1759_v42, %v1755_v47  ;;  %v5126_v1 = vadd.f32 %v1759_v42, %v1698_v0  ;;  %v5159_v46 = vld [vmem:[%s3175_s10 + $0x20] sm:$0xff] }
 0x200   : > { %v1760_v9 = vsel %vm320_vm2, %v1757_v15, %v1755_v47  ;;  %v1769_v49 = vadd.f32 %v1757_v15, %v1696_v44  ;;  %v1601_v48 = vadd.f32 %v1589_v63, %v5039_v26  ;;  %v5957_v39 = vrot.slane %v4836_v27, 1  ;;  %v5143_v27 = vld [vmem:[%s3175_s10 + $0x28] sm:$0xff]  ;;  %s2746_s10 = sld [smem:[#allocation2 + $0x18]] }
 0x201   : > { %v5130_v13 = vadd.f32 %v1761_v14, %v1699_v36  ;;  %v1770_v50 = vadd.f32 %v1760_v9, %v1697_v29  ;;  %v5959_v51 = vrot.slane %v5958_v2, 1  ;;  %v1717_v23 = vadd.f32 %v5020_v6, %v1660_v60 }
 0x202   : > { %2444 = vrot.lane.b32.xlu1 %v5957_v39, %s2994_s20  ;;  %v1718_v12 = vadd.f32 %v5020_v6, %v1661_v41  ;;  %v1719_v11 = vadd.f32 %v5049_v52, %v1662_v25  ;;  %v2506_v26 = vrot.slane %v2763_v30, 1  ;;  %v1664_v8 = vadd.f32 %v1657_v54, %v1600_v37  ;;  %v1784_v16 = vpop.permute.xlu1 %1783  ;;  %v1782_v62 = vpop.permute.xlu0 %1781  ;;  %v5961_v54 = vld [vmem:[#allocation81_spill] sm:$0xff] }
 0x203   : > { %2384 = vrot.lane.b32.xlu0 %v5959_v51, %s2994_s20  ;;  %v1720_v45 = vadd.f32 %v5049_v52, %v1663_v33  ;;  %v5146_v55 = vmul.f32 %v5143_v27, %v1828_v53  ;;  %v1852_v21 = vstv %s5096_s11  ;;  %v1787_v24 = vsel %vm320_vm2, %v1784_v16, %v1782_v62  ;;  %v5963_v52 = vld [vmem:[#allocation80_spill] sm:$0xff]  ;;  %s2917_s11 = sshll.u32 %s2997_s9, 4  ;;  %s2918_s11 = int_to_ptr.vmem [resolvable:$false] %s2917_s11 }
 0x204   : > { %v5149_v32 = vadd.f32 %v1784_v16, %v1719_v11  ;;  %v1794_v6 = vadd.f32 %v1782_v62, %v1717_v23  ;;  %v1795_v56 = vadd.f32 %v1782_v62, %v1718_v12  ;;  %v1665_v4 = vadd.f32 %v5960_v34, %v1601_v48  ;;  %p2920_p6 = scmp.lt.s32.totalorder %s5419_s27, %s2918_s11 }
 0x205   : > { %v5962_v61 = vrot.slane %v5961_v54, 1  ;;  %v1830_v47 = vmul.f32 %v5159_v46, %v1828_v53  ;;  %v5162_v28 = vadd.f32 %v1787_v24, %v1720_v45  ;;  %v1721_v60 = vadd.f32 %v5047_v22, %v1664_v8 }
 0x206   : > { %v2507_v41 = vsel %vm393_vm0, %v2505_v43, %v2506_v26  ;;  %v1829_v59 = vmul.f32 0.0, %v1828_v53  ;;  %v1722_v10 = vadd.f32 %v5047_v22, %v1665_v4  ;;  %v1809_v19 = vpop.permute.xlu1 %1808  ;;  %v1786_v18 = vpop.permute.xlu0 %1785  ;;  %v1838_v31 = vrot.slane %v5146_v55, 1 }
 0x207   : > { %2448 = vrot.lane.b32.xlu1 %v5962_v61, %s2994_s20  ;;  %2446 = vrot.lane.b32.xlu0 %v5963_v52, %s2994_s20  ;;  %v1853_v63 = vmul.f32 0.0, %v1852_v21  ;;  %v1788_v44 = vsel %vm320_vm2, %v1786_v18, %v1782_v62  ;;  %v1798_v0 = vadd.f32 %v1786_v18, %v1721_v60  ;;  %v5172_v25 = vadd.f32 %v1809_v19, %v5079_v58 }
 0x208   : > { %v5175_v5 = vadd.f32 %v1809_v19, %v5081_v38  ;;  %v1799_v37 = vadd.f32 %v1788_v44, %v1722_v10  ;;  %v1836_v22 = vrot.slane %v1830_v47, 1  ;;  %v1854_v53 = vmul.f32 %v5159_v46, %v1852_v21 }
 0x209   : > { %v1835_v29 = vrot.slane %v1829_v59, 1  ;;  %v1859_v42 = vrot.slane %v1853_v63, 1  ;;  %v1855_v58 = vmul.f32 %v5143_v27, %v1852_v21  ;;  %v1876_v2 = vstv %s5164_s5  ;;  %s2919_s5 = scalar_lea.vmem %s2918_s11, 1536 }
 0x20a   : > { %v1813_v36 = vpop.permute.xlu1 %1812  ;;  %v1811_v35 = vpop.permute.xlu0 %1810  ;;  %v1839_v33 = vsel %vm393_vm0, %v1836_v22, %v1838_v31  ;;  %v1860_v39 = vrot.slane %v1854_v53, 1  ;;  %v1846_v12 = vadd.f32 %v1836_v22, %v5104_v7  ;;  %v1879_v45 = vmul.f32 %v5143_v27, %v1876_v2  ;;  %p2921_p12 = scmp.lt.s32.totalorder %s2919_s5, %s2913_s8 }
 0x20b   : > { %2510 = vrot.lane.b32.xlu1 %v2507_v41, %s2994_s20  ;;  %2508 = vrot.lane.b32.xlu0 %v2505_v43, %s2994_s20  ;;  %v1815_v38 = vsel %vm320_vm2, %v1813_v36, %v1809_v19  ;;  %v1825_v15 = vadd.f32 %v1813_v36, %v5098_v40  ;;  %v1814_v30 = vsel %vm320_vm2, %v1811_v35, %v1809_v19  ;;  %v1862_v8 = vrot.slane %v1855_v58, 1 }
 0x20c   : > { %v1823_v14 = vadd.f32 %v1811_v35, %v5075_v17  ;;  %v1826_v9 = vadd.f32 %v1815_v38, %v5100_v20  ;;  %v1824_v48 = vadd.f32 %v1814_v30, %v5077_v57  ;;  %v1847_v51 = vadd.f32 %v1835_v29, %v1769_v49  ;;  %p2922_p7 = por %p2921_p12, %p2920_p6 }
 0x20d   : > { %v1848_v43 = vadd.f32 %v1839_v33, %v1770_v50  ;;  %v1845_v23 = vadd.f32 %v1835_v29, %v5102_v3  ;;  %v1878_v62 = vmul.f32 %v5159_v46, %v1876_v2  ;;  %v1869_v49 = vadd.f32 %v1859_v42, %v1794_v6 }
 0x20e   : > { %v1911_v11 = vpop.permute.xlu1 %1910  ;;  %v1909_v40 = vpop.permute.xlu0 %1908  ;;  %v1870_v50 = vadd.f32 %v1860_v39, %v1795_v56  ;;  %v1849_v3 = vadd.f32 %v1835_v29, %v5126_v1  ;;  %v1850_v7 = vadd.f32 %v1838_v31, %v5130_v13  ;;  %v1863_v24 = vsel %vm393_vm0, %v1860_v39, %v1862_v8  ;;  %p2923_p9 = pnand %p2922_p7, %p2916_p10 }
 0x20f   : > { %2512 = vrot.lane.b32.xlu0 %v2506_v26, %s2994_s20  ;;  %v1919_v17 = vadd.f32 %v1911_v11, %v1847_v51  ;;  %v5193_v16 = vadd.f32 %v1911_v11, %v1848_v43  ;;  %v1917_v20 = vadd.f32 %v1909_v40, %v1845_v23  ;;  %v5195_v57 = vadd.f32 %v1909_v40, %v1846_v12  ;;  %s2747_s20 = sld [smem:[#allocation2 + $0x33]] }
 0x210   : > { %v1877_v26 = vmul.f32 0.0, %v1876_v2  ;;  %v1886_v34 = vrot.slane %v1879_v45, 1  ;;  %v1884_v60 = vrot.slane %v1878_v62, 1  ;;  %v1873_v41 = vadd.f32 %v1859_v42, %v1798_v0 }
 0x211   : > { %v1874_v59 = vadd.f32 %v1862_v8, %v1799_v37  ;;  %v1871_v6 = vadd.f32 %v1859_v42, %v5149_v32  ;;  %v1872_v56 = vadd.f32 %v1863_v24, %v5162_v28 }
 0x212   : > { %v1933_v55 = vpop.permute.xlu1 %1932  ;;  %v1913_v21 = vpop.permute.xlu0 %1912  ;;  %v1883_v47 = vrot.slane %v1877_v26, 1  ;;  %v1887_v13 = vsel %vm393_vm0, %v1884_v60, %v1886_v34  ;;  %v1894_v29 = vadd.f32 %v1884_v60, %v5175_v5  ;;  %v1898_v42 = vadd.f32 %v1886_v34, %v1826_v9 }
 0x213   : > { %v1941_v4 = vadd.f32 %v1933_v55, %v1869_v49  ;;  %v1942_v54 = vadd.f32 %v1933_v55, %v1870_v50  ;;  %v1921_v61 = vadd.f32 %v1913_v21, %v1849_v3  ;;  %v1922_v52 = vadd.f32 %v1913_v21, %v1850_v7 }
 0x214   : > { %v1895_v44 = vadd.f32 %v1883_v47, %v1823_v14  ;;  %v1896_v22 = vadd.f32 %v1887_v13, %v1824_v48  ;;  %v1893_v53 = vadd.f32 %v1883_v47, %v5172_v25  ;;  %v1897_v33 = vadd.f32 %v1883_v47, %v1825_v15 }
 0x216   : > { %v1937_v1 = vpop.permute.xlu1 %1936  ;;  %v1935_v10 = vpop.permute.xlu0 %1934 }
 0x217   : > { %v1945_v19 = vadd.f32 %v1937_v1, %v1873_v41  ;;  %v1946_v18 = vadd.f32 %v1937_v1, %v1874_v59  ;;  %v1943_v31 = vadd.f32 %v1935_v10, %v1871_v6  ;;  %v1944_v63 = vadd.f32 %v1935_v10, %v1872_v56 }
 0x21a   : > { %v1959_v0 = vpop.permute.xlu1 %1958  ;;  %v1957_v37 = vpop.permute.xlu0 %1956 }
 0x21b   : > { %v1967_v36 = vadd.f32 %v1959_v0, %v1895_v44  ;;  %v1968_v32 = vadd.f32 %v1959_v0, %v1896_v22  ;;  %v1965_v35 = vadd.f32 %v1957_v37, %v1893_v53  ;;  %v1966_v28 = vadd.f32 %v1957_v37, %v1894_v29 }
 0x21c   : > { %v2086_v37 = vstv %s2746_s10 }
 0x21e   : > { %v1985_v58 = vpop.permute.xlu1 %1984  ;;  %v1961_v38 = vpop.permute.xlu0 %1960 }
 0x21f   : > { %v5206_v30 = vadd.f32 %v1985_v58, %v1917_v20  ;;  %v1969_v39 = vadd.f32 %v1961_v38, %v1897_v33  ;;  %v1970_v2 = vadd.f32 %v1961_v38, %v1898_v42  ;;  %v2089_v42 = vmul.f32 %v5143_v27, %v2086_v37 }
 0x222   : > { %v5208_v14 = vpop.permute.xlu1 %1988  ;;  %v1987_v48 = vpop.permute.xlu0 %1986 }
 0x223   : > { %v5211_v25 = vadd.f32 %v5208_v14, %v1919_v17  ;;  %v1994_v33 = vsel %vm320_vm2, %v1985_v58, %v1987_v48 }
 0x226   : > { %v1993_v5 = vpop.permute.xlu1 %1992  ;;  %v1991_v51 = vpop.permute.xlu0 %1990 }
 0x227   : > { %v1996_v43 = vsel %vm320_vm2, %v1993_v5, %v1987_v48  ;;  %v5214_v23 = vadd.f32 %v1993_v5, %v1921_v61  ;;  %v2004_v5 = vadd.f32 %v1994_v33, %v5195_v57  ;;  %v2111_v48 = vstv %s2747_s20 }
 0x228   : > { %v5216_v15 = vadd.f32 %v1996_v43, %v1922_v52 }
 0x22a   : > { %v2025_v9 = vpop.permute.xlu1 %2024  ;;  %v2023_v12 = vpop.permute.xlu0 %2022 }
 0x22b   : > { %v2032_v11 = vsel %vm320_vm2, %v2023_v12, %v2025_v9  ;;  %v5219_v40 = vadd.f32 %v2023_v12, %v1941_v4  ;;  %v2096_v12 = vrot.slane %v2089_v42, 2 }
 0x22c   : > { %v5221_v8 = vadd.f32 %v2032_v11, %v1942_v54 }
 0x22e   : > { %v2029_v45 = vpop.permute.xlu1 %2028  ;;  %v2027_v20 = vpop.permute.xlu0 %2026 }
 0x22f   : > { %v2033_v17 = vsel %vm320_vm2, %v2027_v20, %v2029_v45  ;;  %v5224_v26 = vadd.f32 %v2027_v20, %v1943_v31 }
 0x230   : > { %v5226_v62 = vadd.f32 %v2033_v17, %v1944_v63 }
 0x232   : > { %v2061_v49 = vpop.permute.xlu1 %2060  ;;  %v2031_v50 = vpop.permute.xlu0 %2030 }
 0x233   : > { %v5228_v3 = vadd.f32 %v2061_v49, %v1965_v35  ;;  %v2034_v7 = vsel %vm320_vm2, %v2031_v50, %v2025_v9  ;;  %v5231_v55 = vadd.f32 %v2031_v50, %v1945_v19  ;;  %v2087_v35 = vmul.f32 0.0, %v2086_v37 }
 0x234   : > { %v5233_v21 = vadd.f32 %v2034_v7, %v1946_v18  ;;  %v1995_v9 = vsel %vm320_vm2, %v5208_v14, %v1991_v51  ;;  %v2114_v50 = vmul.f32 %v5143_v27, %v2111_v48 }
 0x235   : > { %v2006_v20 = vadd.f32 %v1995_v9, %v5193_v16 }
 0x236   : > { %v2065_v24 = vpop.permute.xlu1 %2064  ;;  %v2063_v34 = vpop.permute.xlu0 %2062 }
 0x237   : > { %v5235_v4 = vadd.f32 %v2065_v24, %v1967_v36  ;;  %v2070_v54 = vsel %vm320_vm2, %v2061_v49, %v2063_v34 }
 0x238   : > { %v5238_v61 = vadd.f32 %v2070_v54, %v1966_v28  ;;  %v2088_v28 = vmul.f32 %v5159_v46, %v2086_v37  ;;  %v2113_v54 = vmul.f32 %v5159_v46, %v2111_v48 }
 0x23a   : > { %v2069_v52 = vpop.permute.xlu1 %2068  ;;  %v2067_v47 = vpop.permute.xlu0 %2066  ;;  %v2094_v43 = vrot.slane %v2088_v28, 2 }
 0x23b   : > { %v2072_v60 = vsel %vm320_vm2, %v2069_v52, %v2063_v34  ;;  %v5241_v41 = vadd.f32 %v2069_v52, %v1969_v39  ;;  %v2071_v59 = vsel %vm320_vm2, %v2065_v24, %v2067_v47  ;;  %v2112_v34 = vmul.f32 0.0, %v2111_v48 }
 0x23c   : > { %v5244_v6 = vadd.f32 %v2072_v60, %v1970_v2  ;;  %v5246_v56 = vadd.f32 %v2071_v59, %v1968_v32  ;;  %v2093_v2 = vrot.slane %v2087_v35, 2  ;;  %v2105_v17 = vadd.f32 %v2094_v43, %v2004_v5 }
 0x23d   : > { %v2097_v49 = vsel %vm652_vm1, %v2094_v43, %v2096_v12  ;;  %v2362_v47 = vstv %s2361_s4  ;;  %v2121_v35 = vrot.slane %v2114_v50, 2  ;;  %v2118_v42 = vrot.slane %v2112_v34, 2 }
 0x23e   : > { %v2176_v1 = vpop.permute.xlu1 %2175  ;;  %v2174_v10 = vpop.permute.xlu0 %2173  ;;  %v2104_v58 = vadd.f32 %v2093_v2, %v5206_v30  ;;  %v2106_v30 = vadd.f32 %v2093_v2, %v5211_v25  ;;  %v2107_v16 = vadd.f32 %v2097_v49, %v2006_v20  ;;  %v2098_v37 = vsel %vm652_vm1, %v2096_v12, %v2093_v2 }
 0x23f   : > { %v2183_v24 = vadd.f32 %v2174_v10, %v2105_v17  ;;  %v2119_v25 = vrot.slane %v2113_v54, 2  ;;  %v2136_v5 = vstv %s2748_s17  ;;  %v2108_v9 = vadd.f32 %v2093_v2, %v5214_v23 }
 0x240   : > { %v2182_v57 = vadd.f32 %v2174_v10, %v2104_v58  ;;  %v2184_v59 = vadd.f32 %v2176_v1, %v2106_v30  ;;  %v2185_v10 = vadd.f32 %v2176_v1, %v2107_v16  ;;  %v2109_v58 = vadd.f32 %v2098_v37, %v5216_v15 }
 0x241   : > { %v2122_v20 = vsel %vm652_vm1, %v2119_v25, %v2121_v35  ;;  %v2137_v23 = vmul.f32 0.0, %v2136_v5  ;;  %v2129_v15 = vadd.f32 %v2118_v42, %v5219_v40  ;;  %v2130_v2 = vadd.f32 %v2119_v25, %v5221_v8 }
 0x242   : > { %v5248_v13 = vpop.permute.xlu1 %2201  ;;  %v5250_v19 = vpop.permute.xlu0 %2177  ;;  %v2138_v16 = vmul.f32 %v5159_v46, %v2136_v5 }
 0x243   : > { %v2187_v50 = vadd.f32 %v5250_v19, %v2109_v58  ;;  %v2211_v8 = vadd.f32 %v5248_v13, %v2130_v2 }
 0x246   : > { %v5252_v18 = vpop.permute.xlu1 %2205  ;;  %v5254_v31 = vpop.permute.xlu0 %2203 }
 0x24a   : > { %v5256_v63 = vpop.permute.xlu1 %2231  ;;  %v5258_v44 = vpop.permute.xlu0 %2229 }
 0x24e   : > { %v5260_v53 = vpop.permute.xlu0 %2233 }
 0x250   : > { %v2259_v22 = vpop.permute.xlu1 %2258 }
 0x251   : > { %v2277_v52 = vadd.f32 %v2259_v22, %v2182_v57  ;;  %v2186_v57 = vadd.f32 %v5250_v19, %v2108_v9  ;;  %v2139_v19 = vmul.f32 %v5143_v27, %v2136_v5 }
 0x252   : > { %v2261_v0 = vpop.permute.xlu0 %2260 }
 0x253   : > { %v2268_v7 = vsel %vm320_vm2, %v2259_v22, %v2261_v0  ;;  %v2363_v22 = vadd.f32 %v2362_v47, %v2277_v52  ;;  %v2210_v52 = vadd.f32 %v5248_v13, %v2129_v15  ;;  %v2146_v9 = vrot.slane %v2139_v19, 2 }
 0x254   : > { %v2263_v29 = vpop.permute.xlu1 %2262  ;;  %v2278_v60 = vadd.f32 %v2268_v7, %v2183_v24 }
 0x255   : > { %v2279_v43 = vadd.f32 %v2263_v29, %v2184_v59  ;;  %v2369_v24 = vmax.f32 %v2363_v22, 0.0  ;;  %v5320_v59 = vstv %s5295_s30 }
 0x256   : > { %v2265_v32 = vpop.permute.xlu0 %2264  ;;  %v2364_v48 = vadd.f32 %v2362_v47, %v2278_v60 }
 0x257   : > { %v2269_v0 = vsel %vm320_vm2, %v2263_v29, %v2265_v32  ;;  %v2123_v29 = vsel %vm652_vm1, %v2121_v35, %v2118_v42  ;;  %v2365_v7 = vadd.f32 %v2362_v47, %v2279_v43  ;;  %v2131_v35 = vadd.f32 %v2118_v42, %v5224_v26 }
 0x258   : > { %v5262_v36 = vpop.permute.xlu1 %2266  ;;  %v2280_v12 = vadd.f32 %v2269_v0, %v2185_v10  ;;  %v2370_v54 = vmax.f32 %v2364_v48, 0.0  ;;  %v2132_v0 = vadd.f32 %v2122_v20, %v5226_v62  ;;  %v2143_v43 = vrot.slane %v2137_v23, 2 }
 0x259   : > { %v2270_v17 = vsel %vm320_vm2, %v5262_v36, %v2265_v32  ;;  %v2281_v32 = vadd.f32 %v5262_v36, %v2186_v57  ;;  %v2371_v25 = vmax.f32 %v2365_v7, 0.0  ;;  %v2133_v48 = vadd.f32 %v2118_v42, %v5231_v55 }
 0x25a   : > { %v2282_v34 = vadd.f32 %v2270_v17, %v2187_v50  ;;  %v2366_v30 = vadd.f32 %v2362_v47, %v2280_v12  ;;  %v2213_v62 = vadd.f32 %v5254_v31, %v2132_v0  ;;  %v2134_v20 = vadd.f32 %v2123_v29, %v5233_v21 }
 0x25b   : > { %v2367_v27 = vadd.f32 %v2362_v47, %v2281_v32  ;;  %v2214_v21 = vadd.f32 %v5252_v18, %v2133_v48  ;;  %v2154_v7 = vadd.f32 %v2143_v43, %v5228_v3  ;;  %v2148_v3 = vsel %vm652_vm1, %v2146_v9, %v2143_v43 }
 0x25c   : > { %v5267_v38 = vpop.permute.xlu1 %2299  ;;  %v5269_v39 = vpop.permute.xlu0 %2297  ;;  %v2372_v22 = vmax.f32 %v2366_v30, 0.0  ;;  %v2368_v13 = vadd.f32 %v2362_v47, %v2282_v34 }
 0x25d   : > { %v2307_v60 = vsel %vm320_vm2, %v5269_v39, %v5267_v38  ;;  %v2316_v10 = vadd.f32 %v5269_v39, %v2210_v52  ;;  %v2212_v38 = vadd.f32 %v5254_v31, %v2131_v35  ;;  %v2144_v39 = vrot.slane %v2138_v16, 2 }
 0x25e   : > { %v2317_v5 = vadd.f32 %v2307_v60, %v2211_v8  ;;  %v2373_v15 = vmax.f32 %v2367_v27, 0.0  ;;  %v2374_v2 = vmax.f32 %v2368_v13, 0.0  ;;  %v2488_v60 = vstv %s5332_s23 }
 0x25f   : > { %v2425_v47 = vadd.f32 %v5320_v59, %v2316_v10  ;;  %v2147_v31 = vsel %vm652_vm1, %v2144_v39, %v2146_v9  ;;  %v2156_v8 = vadd.f32 %v2143_v43, %v5235_v4 }
 0x260   : > { %v5274_v11 = vpop.permute.xlu1 %2303  ;;  %v5276_v45 = vpop.permute.xlu0 %2301  ;;  %v2426_v23 = vadd.f32 %v5320_v59, %v2317_v5  ;;  %v2158_v5 = vadd.f32 %v2143_v43, %v5241_v41 }
 0x261   : > { %v2308_v26 = vsel %vm320_vm2, %v5276_v45, %v5274_v11  ;;  %v2318_v17 = vadd.f32 %v5276_v45, %v2212_v38  ;;  %v2215_v45 = vadd.f32 %v5252_v18, %v2134_v20  ;;  %v2431_v30 = vmax.f32 %v2425_v47, 0.0 }
 0x262   : > { %v2319_v50 = vadd.f32 %v2308_v26, %v2213_v62  ;;  %v2432_v16 = vmax.f32 %v2426_v23, 0.0  ;;  %v2238_v18 = vadd.f32 %v5258_v44, %v2154_v7  ;;  %v2242_v41 = vadd.f32 %v5260_v53, %v2158_v5 }
 0x263   : > { %v2427_v32 = vadd.f32 %v5320_v59, %v2318_v17 }
 0x264   : > { %v5283_v14 = vpop.permute.xlu1 %2336  ;;  %v5285_v51 = vpop.permute.xlu0 %2305 }
 0x265   : > { %v2309_v55 = vsel %vm320_vm2, %v5285_v51, %v5274_v11  ;;  %v2428_v11 = vadd.f32 %v5320_v59, %v2319_v50  ;;  %v2433_v35 = vmax.f32 %v2427_v32, 0.0 }
 0x266   : > { %v2321_v52 = vadd.f32 %v2309_v55, %v2215_v45 }
 0x267   : > { %v2434_v27 = vmax.f32 %v2428_v11, 0.0 }
 0x268   : > { %v5291_v28 = vpop.permute.xlu1 %2340  ;;  %v5293_v33 = vpop.permute.xlu0 %2338 }
 0x26c   : > { %v5302_v49 = vpop.permute.xlu1 %2344  ;;  %v5304_v1 = vpop.permute.xlu0 %2342 }
 0x26d   : > { %v2347_v4 = vsel %vm320_vm2, %v5291_v28, %v5304_v1  ;;  %v2359_v20 = vadd.f32 %v5302_v49, %v2242_v41 }
 0x270   : > { %v2381_v40 = vpop.permute.xlu0 %2380  ;;  %v2383_v46 = vpop.permute.xlu1 %2382 }
 0x271   : > { %v2389_v37 = vmul.f32 %v2381_v40, %v2369_v24  ;;  %v2390_v36 = vmul.f32 %v2381_v40, %v2370_v54  ;;  %v2391_v58 = vmul.f32 %v2383_v46, %v2371_v25  ;;  %v2392_v12 = vmul.f32 %v2383_v46, %v2372_v22 }
 0x272   : > { %v2155_v24 = vadd.f32 %v2144_v39, %v5238_v61  ;;  %v2320_v54 = vadd.f32 %v5285_v51, %v2214_v21  ;;  %v2346_v61 = vsel %vm320_vm2, %v5283_v14, %v5293_v33  ;;  %v2430_v25 = vadd.f32 %v5320_v59, %v2321_v52 }
 0x273   : > { %2403 = vrot.lane.b32.xlu0 %v2390_v36, %s2996_s29  ;;  %2401 = vrot.lane.b32.xlu1 %v2389_v37, %s2996_s29  ;;  %v2157_v37 = vadd.f32 %v2147_v31, %v5246_v56  ;;  %v2355_v36 = vadd.f32 %v5283_v14, %v2238_v18  ;;  %v2159_v22 = vadd.f32 %v2148_v3, %v5244_v6 }
 0x274   : > { %v2445_v34 = vpop.permute.xlu1 %2444  ;;  %v2239_v19 = vadd.f32 %v5258_v44, %v2155_v24  ;;  %v2429_v10 = vadd.f32 %v5320_v59, %v2320_v54  ;;  %v2240_v44 = vadd.f32 %v5256_v63, %v2156_v8  ;;  %v2436_v62 = vmax.f32 %v2430_v25, 0.0 }
 0x275   : > { %v2385_v57 = vpop.permute.xlu0 %2384  ;;  %v2453_v51 = vmul.f32 %v2445_v34, %v2431_v30  ;;  %v2454_v40 = vmul.f32 %v2445_v34, %v2432_v16  ;;  %v2241_v56 = vadd.f32 %v5256_v63, %v2157_v37  ;;  %v2489_v59 = vadd.f32 %v2488_v60, %v2355_v36 }
 0x276   : > { %v2393_v42 = vmul.f32 %v2385_v57, %v2373_v15  ;;  %v2394_v29 = vmul.f32 %v2385_v57, %v2374_v2  ;;  %v2356_v46 = vadd.f32 %v2346_v61, %v2239_v19  ;;  %v2357_v13 = vadd.f32 %v5291_v28, %v2240_v44 }
 0x277   : > { %2405 = vrot.lane.b32.xlu1 %v2391_v58, %s2996_s29  ;;  %2407 = vrot.lane.b32.xlu0 %v2392_v12, %s2996_s29  ;;  %v2358_v9 = vadd.f32 %v2347_v4, %v2241_v56  ;;  %v2435_v26 = vmax.f32 %v2429_v10, 0.0  ;;  %v2348_v63 = vsel %vm320_vm2, %v5302_v49, %v5304_v1  ;;  %v2243_v6 = vadd.f32 %v5260_v53, %v2159_v22 }
 0x278   : > { %v2490_v39 = vadd.f32 %v2488_v60, %v2356_v46  ;;  %v2491_v28 = vadd.f32 %v2488_v60, %v2357_v13  ;;  %v2495_v12 = vmax.f32 %v2489_v59, 0.0  ;;  %v2493_v15 = vadd.f32 %v2488_v60, %v2359_v20 }
 0x279   : > { %v2447_v0 = vpop.permute.xlu0 %2446  ;;  %v2449_v38 = vpop.permute.xlu1 %2448  ;;  %v2360_v47 = vadd.f32 %v2348_v63, %v2243_v6  ;;  %v2492_v17 = vadd.f32 %v2488_v60, %v2358_v9 }
 0x27a   : > { %v2455_v14 = vmul.f32 %v2447_v0, %v2433_v35  ;;  %v2456_v33 = vmul.f32 %v2447_v0, %v2434_v27  ;;  %v2457_v43 = vmul.f32 %v2449_v38, %v2435_v26  ;;  %v2458_v58 = vmul.f32 %v2449_v38, %v2436_v62 }
 0x27b   : > { %2409 = vrot.lane.b32.xlu1 %v2393_v42, %s2996_s29  ;;  %2411 = vrot.lane.b32.xlu0 %v2394_v29, %s2996_s29  ;;  %v2496_v57 = vmax.f32 %v2490_v39, 0.0  ;;  %v2497_v2 = vmax.f32 %v2491_v28, 0.0  ;;  %v2498_v53 = vmax.f32 %v2492_v17, 0.0  ;;  %v2494_v31 = vadd.f32 %v2488_v60, %v2360_v47 }
 0x27c   : > { %v2499_v45 = vmax.f32 %v2493_v15, 0.0 }
 0x27d   : > { %v2509_v48 = vpop.permute.xlu0 %2508  ;;  %v2511_v23 = vpop.permute.xlu1 %2510  ;;  %v2500_v42 = vmax.f32 %v2494_v31, 0.0 }
 0x27e   : > { %v2517_v50 = vmul.f32 %v2509_v48, %v2495_v12  ;;  %v2518_v1 = vmul.f32 %v2509_v48, %v2496_v57  ;;  %v2519_v49 = vmul.f32 %v2511_v23, %v2497_v2  ;;  %v2520_v55 = vmul.f32 %v2511_v23, %v2498_v53 }
 0x27f   : > { %2465 = vrot.lane.b32.xlu1 %v2453_v51, %s2996_s29  ;;  %2467 = vrot.lane.b32.xlu0 %v2454_v40, %s2996_s29 }
 0x281   : > { %v2513_v21 = vpop.permute.xlu0 %2512 }
 0x282   : > { %v2521_v29 = vmul.f32 %v2513_v21, %v2499_v45  ;;  %v2522_v7 = vmul.f32 %v2513_v21, %v2500_v42 }
 0x283   : > { %2469 = vrot.lane.b32.xlu1 %v2455_v14, %s2996_s29  ;;  %2471 = vrot.lane.b32.xlu0 %v2456_v33, %s2996_s29 }
 0x287   : > { %2473 = vrot.lane.b32.xlu1 %v2457_v43, %s2996_s29  ;;  %2475 = vrot.lane.b32.xlu0 %v2458_v58, %s2996_s29 }
 0x28b   : > { %2529 = vrot.lane.b32.xlu1 %v2517_v50, %s2996_s29  ;;  %2531 = vrot.lane.b32.xlu0 %v2518_v1, %s2996_s29 }
 0x28f   : > { %2533 = vrot.lane.b32.xlu1 %v2519_v49, %s2996_s29  ;;  %2535 = vrot.lane.b32.xlu0 %v2520_v55, %s2996_s29 }
 0x293   : > { %2537 = vrot.lane.b32.xlu1 %v2521_v29, %s2996_s29  ;;  %2539 = vrot.lane.b32.xlu0 %v2522_v7, %s2996_s29 }
 0x2e5   : > { %v2402_v24 = vpop.permute.xlu1 %2401  ;;  %v2404_v32 = vpop.permute.xlu0 %2403 }
 0x2e6   : > { %v2414_v34 = vsel %vm2413_vm3, %v2402_v24, %v2404_v32 }
 0x2e7   : > { %2420 = vst [vmem:[%s5395_s22 - $0x7] sm:$0x80] %v2414_v34 }
 0x2e9   : > { %v2406_v30 = vpop.permute.xlu1 %2405  ;;  %v2408_v54 = vpop.permute.xlu0 %2407 }
 0x2ea   : > { %v2415_v52 = vsel %vm2413_vm3, %v2406_v30, %v2408_v54 }
 0x2eb   : > { %2421 = vst [vmem:[%s5395_s22 + $0x1] sm:$0xff] %v2415_v52 }
 0x2ed   : > { %v2410_v16 = vpop.permute.xlu1 %2409  ;;  %v2412_v11 = vpop.permute.xlu0 %2411 }
 0x2ee   : > { %v2416_v18 = vsel %vm2413_vm3, %v2410_v16, %v2412_v11 }
 0x2ef   : > { %2422 = vst [vmem:[%s5395_s22 + $0x9] sm:$0x7f] %v2416_v18 }
 0x2f1   : > { %v2466_v3 = vpop.permute.xlu1 %2465  ;;  %v2468_v61 = vpop.permute.xlu0 %2467 }
 0x2f2   : > { %v2477_v19 = vsel %vm2413_vm3, %v2466_v3, %v2468_v61 }
 0x2f3   : > { %2758 = vst [vmem:[%s5395_s22 + $0x9] sm:$0x80] %v2477_v19 }
 0x2f5   : > { %v2470_v60 = vpop.permute.xlu1 %2469  ;;  %v2472_v51 = vpop.permute.xlu0 %2471 }
 0x2f6   : > { %v2478_v40 = vsel %vm2413_vm3, %v2470_v60, %v2472_v51 }
 0x2f7   : > { %2759 = vst [vmem:[%s5395_s22 + $0x11] sm:$0xff] %v2478_v40 }
 0x2f9   : > { %v2474_v8 = vpop.permute.xlu1 %2473  ;;  %v2476_v37 = vpop.permute.xlu0 %2475 }
 0x2fa   : > { %v2479_v36 = vsel %vm2413_vm3, %v2474_v8, %v2476_v37 }
 0x2fb   : > { %2760 = vst [vmem:[%s5395_s22 + $0x19] sm:$0x7f] %v2479_v36 }
 0x2fd   : > { %v2530_v35 = vpop.permute.xlu1 %2529  ;;  %v2532_v0 = vpop.permute.xlu0 %2531 }
 0x2fe   : > { %v2541_v10 = vsel %vm2413_vm3, %v2530_v35, %v2532_v0 }
 0x2ff   : > { %2764 = vst [vmem:[%s5395_s22 + $0x19] sm:$0x80] %v2541_v10 }
 0x301   : > { %v2534_v46 = vpop.permute.xlu1 %2533  ;;  %v2536_v25 = vpop.permute.xlu0 %2535 }
 0x302   : > { %v2542_v27 = vsel %vm2413_vm3, %v2534_v46, %v2536_v25 }
 0x303   : > { %2765 = vst [vmem:[%s5395_s22 + $0x21] sm:$0xff] %v2542_v27 }
 0x305   : > { %v2538_v44 = vpop.permute.xlu1 %2537  ;;  %v2540_v4 = vpop.permute.xlu0 %2539 }
 0x306   : > { %v2543_v56 = vsel %vm2413_vm3, %v2538_v44, %v2540_v4 }
 0x307   : > { %2766 = vst [vmem:[%s5395_s22 + $0x29] sm:$0x7f] %v2543_v56 }
 0x308   : > { %2926 = shalt.err (!%p2923_p9)
}
 0x309   : > { %s2927_s10 = scalar_lea.hbm %s5417_s7, 768  ;;  %s2931_s17 = scalar_lea.hbm %s5468_s3, 1536 }
 0x30a   : > { %p2928_p2 = scmp.ne.s32.totalorder %s5417_s7, %s2927_s10  ;;  %p2932_p4 = scmp.lt.u32.totalorder %s5417_s7, %s5468_s3 }
 0x30b   : > { %p2933_p5 = scmp.lt.u32.totalorder %s2931_s17, %s2927_s10  ;;  %p2935_p3 = scmp.lt.u32.totalorder %s2927_s10, %s5417_s7 }
 0x30c   : > { %p2929_p11 = pnand %p2928_p2, %p5964_p0 }
 0x30d   : > { %p2934_p13 = por %p2933_p5, %p2932_p4 }
 0x30e   : > { %p2930_p1 = pneg %p2929_p11 }
 0x30f   : > { %p2936_p8 = por %p2935_p3, %p2934_p13 }
 0x311   : > { %p2937_p10 = pnand %p2936_p8, %p2930_p1 }
 0x313   : > { %2940 = shalt.err (!%p2937_p10)
}
 0x314   : > { %s2998_s23 = smov 128   ;;  %s2999_s22 = smov 8  }
 0x315   : > { %2784 = dma.vmem_to_hbm [thread:$0]  (%p5964_p0), %s5419_s27, 768, %s5417_s7, %s2552_s16, %s2998_s23, %s2998_s23, %s2999_s22  }
 0x316 PF: > { %s2580_s26 = sand.u32 1, %s2975_s12   ;;  %p5965_p6 = scmp.ne.s32.totalorder %s5598_s25, 0 }
 0x317   : > { %p5966_p12 = scmp.ge.s32.totalorder %s2987_s15, 2  ;;  %s2581_s28 = scalar_lea.sflag [#allocation4], %s2580_s26 }
 0x319   : > { %p2798_p7 = pnand %p5966_p12, %p5965_p6 }
 0x31b   : > { %2970 = dma.done.wait (!%p2798_p7), %s2581_s28, 768  }
 0x31c   : > { %2972 = vsyncadd (!%p2798_p7), %s2581_s28, 4294966528  ;;  %p18_p9 = scmp.ge.s32.totalorder %s3045_s18, 4   ;;  %s5967_s12 = smov %s2979_s13 }
 0x31d   : > { %s5968_s13 = smov %s2983_s14  ;;  %s5969_s14 = smov %s3057_s21 }
 0x31e   : > { %s5970_s15 = smov %s3045_s18  ;;  %20 = sbr.rel (!%p18_p9) target bundleno = 7 (0x7), region = 91 }
 0x325   :  { %2586 = vsyncpa [#allocation3], 1 }
 0x326   :  { %2588 = vsyncpa [#allocation3 + $0x1], 1 }
 0x327   :  { %2589 = vsyncpa [#allocation4], 1 }
 0x328   :  { %2591 = vsyncpa [#allocation4 + $0x1], 1 }
 0x329   :  { %2592 = vsyncpa [#allocation5], 1 }
 0x32a   :  { %2594 = vsyncpa [#allocation5 + $0x1], 1 }
 0x32b   :  { %2595 = vsyncpa [#allocation6], 1 }
 0x32c   :  { %2597 = vsyncpa [#allocation6 + $0x1], 1 }

</bundles_post_ra>
